<compile_context>
chip_gen: v5e
topology: v5e:2x2
jax: 0.10.0
libtpu: 0.0.40
codegen_flags: <defaults>
</compile_context>

<pallas_src>
import functools

import jax
import jax.numpy as jnp
from jax.experimental import pallas as pl
from jax.experimental.pallas import tpu as pltpu


def _round_up(x, m):
    return (x + m - 1) // m * m


def _conv3x3_folded(src, w_ref, ho, wo, stride):
    """3x3 conv over a zero-padded slab as 3 accumulating MXU matmuls (K=3*C).

    src   : (Hp, Wp, C) value, zero-padded by 1 pixel, compute dtype (bf16).
    w_ref : (9*C, Cout) ref; rows ordered (kw, kh, cin); BN scale pre-folded.
    Returns an (ho*wo, Cout) f32 accumulator (pre-bias, pre-ReLU).
    """
    hp, _, c = src.shape
    acc = None
    for kw in range(3):
        # One sublane(W)-axis shift per kw; the kh taps below are free
        # major-axis slices of the shifted slab.
        slab = jax.lax.slice(
            src, (0, kw, 0), (hp, kw + (wo - 1) * stride + 1, c),
            (1, stride, 1))                                   # (Hp, wo, C)
        taps = [
            jax.lax.slice(
                slab, (kh, 0, 0), (kh + (ho - 1) * stride + 1, wo, c),
                (stride, 1, 1)).reshape(ho * wo, c)
            for kh in range(3)
        ]
        patch = jnp.concatenate(taps, axis=-1)                # (ho*wo, 3C), lane-aligned
        part = jnp.dot(patch, w_ref[kw * 3 * c:(kw + 1) * 3 * c, :],
                       preferred_element_type=jnp.float32)
        acc = part if acc is None else acc + part
    return acc


def _fused_block_kernel(xpad_ref, w1_ref, b1_ref, w2_ref, b2_ref, out_ref,
                        ypad_ref, *, stride, Ho, Wo):
    """One batch element: conv1+BN1+ReLU -> conv2+BN2+ReLU, entirely in VMEM.

    xpad_ref: (1, H+2, W+2, Cinp)   zero-padded, channel-padded input (bf16)
    w1_ref  : (9*Cinp, Coutp)       conv1 weights * BN1 scale, (kw, kh, cin) rows
    b1_ref  : (1, Coutp)            folded BN1 bias (f32)
    w2_ref  : (9*Coutp, Coutp)      conv2 weights * BN2 scale (bf16)
    b2_ref  : (1, Coutp)            folded BN2 bias (f32)
    out_ref : (1, Ho, Wo, Coutp)    final output (bf16)
    ypad_ref: (Ho+2, Wo+2, Coutp)   VMEM scratch: zero-padded conv1 output
    """
    cdt = ypad_ref.dtype
    coutp = out_ref.shape[-1]

    # Zero ONLY the 1-pixel halo border of the conv1-output slab (the interior
    # is fully overwritten below).  Done every step -> megacore-safe.
    zrow = jnp.zeros((1, Wo + 2, coutp), cdt)
    ypad_ref[0:1, :, :] = zrow
    ypad_ref[Ho + 1:Ho + 2, :, :] = zrow
    zcol = jnp.zeros((Ho + 2, 1, coutp), cdt)
    ypad_ref[:, 0:1, :] = zcol
    ypad_ref[:, Wo + 1:Wo + 2, :] = zcol

    # ---- stage 1: conv1 (BN1 scale folded into weights) + bias + ReLU -------
    acc1 = _conv3x3_folded(xpad_ref[0], w1_ref, Ho, Wo, stride)
    y1 = jnp.maximum(acc1 + b1_ref[...], 0.0).astype(cdt)
    ypad_ref[1:Ho + 1, 1:Wo + 1, :] = y1.reshape(Ho, Wo, coutp)

    # ---- stage 2: conv2 (+BN2 scale) + bias + ReLU; intermediate stays in VMEM
    acc2 = _conv3x3_folded(ypad_ref[...], w2_ref, Ho, Wo, 1)
    y2 = jnp.maximum(acc2 + b2_ref[...], 0.0)
    out_ref[0] = y2.reshape(Ho, Wo, coutp).astype(out_ref.dtype)


def _fold_bn(gamma, beta, mean, var, eps=1e-5):
    scale = gamma / jnp.sqrt(var + eps)
    bias = beta - mean * scale
    return scale, bias


def _prep_weights(w, scale, cinp, coutp, compute_dtype):
    """Fold BN scale into conv weights (f32, BEFORE the bf16 cast), pad channels,
    and reorder rows to (kw, kh, cin) for the kernel's per-kw K=3*C matmuls."""
    _, _, cin, cout = w.shape
    ws = (w.astype(jnp.float32) * scale.astype(jnp.float32))       # fold in f32
    ws = jnp.pad(ws, ((0, 0), (0, 0), (0, cinp - cin), (0, coutp - cout)))
    ws = jnp.transpose(ws, (1, 0, 2, 3))                            # (kw, kh, cin, cout)
    return ws.reshape(9 * cinp, coutp).astype(compute_dtype)


def _vmem_limit_bytes(H, W, Ho, Wo, Cinp, Coutp, bpe=2):
    """Budget derived from actual block + scratch + transient sizes, with
    headroom; capped at 48 MiB for v7x's 64 MiB physical VMEM."""
    x_blk = (H + 2) * (W + 2) * Cinp * bpe
    out_blk = Ho * Wo * Coutp * bpe
    w_bytes = (9 * Cinp * Coutp + 9 * Coutp * Coutp) * bpe + 2 * Coutp * 4
    ypad = (Ho + 2) * (Wo + 2) * Coutp * bpe
    patches = 2 * (Ho * Wo) * 3 * max(Cinp, Coutp) * bpe   # transient im2col tiles
    accs = 2 * Ho * Wo * Coutp * 4                          # f32 accumulators
    est = 2 * (x_blk + out_blk) + 2 * w_bytes + ypad + patches + accs
    return int(min(48 * 1024 * 1024, max(32 * 1024 * 1024, 2 * est)))


def block_forward(x_nchw, params, stride=1, compute_dtype=jnp.bfloat16):
    """Forward pass of `Block` (eval-mode BN). NCHW in / NCHW out like PyTorch.
    Output dtype is `compute_dtype` (bf16) to halve the HBM writeback."""
    w1, bn1, w2, bn2 = params["w1"], params["bn1"], params["w2"], params["bn2"]
    N, Cin, H, W = x_nchw.shape
    Cout = w1.shape[-1]
    Ho = (H - 1) // stride + 1
    Wo = (W - 1) // stride + 1
    Cinp = _round_up(Cin, 128)                  # lane-dense channel padding
    Coutp = _round_up(Cout, 128)

    s1, b1 = _fold_bn(*bn1)
    s2, b2 = _fold_bn(*bn2)

    # Padded cin rows of the weights are zero; padded cout columns are zero and
    # the zero bias keeps padded output channels at exactly 0 (sliced off below).
    w1p = _prep_weights(w1, s1, Cinp, Coutp, compute_dtype)
    w2p = _prep_weights(w2, s2, Coutp, Coutp, compute_dtype)
    b1p = jnp.pad(b1, (0, Coutp - Cout)).reshape(1, Coutp).astype(jnp.float32)
    b2p = jnp.pad(b2, (0, Coutp - Cout)).reshape(1, Coutp).astype(jnp.float32)

    # NCHW -> NHWC; the 1-pixel spatial halo and the channel pad are ONE pad op
    # (fuses with the transpose + cast), so the kernel gets a ready-to-use
    # zero-padded slab via the BlockSpec DMA — no in-kernel copy or memset.
    x_nhwc = jnp.transpose(x_nchw, (0, 2, 3, 1))
    x_pad = jnp.pad(x_nhwc, ((0, 0), (1, 1), (1, 1), (0, Cinp - Cin)))
    x_pad = x_pad.astype(compute_dtype)

    kernel = functools.partial(_fused_block_kernel, stride=stride, Ho=Ho, Wo=Wo)

    out = pl.pallas_call(
        kernel,
        out_shape=jax.ShapeDtypeStruct((N, Ho, Wo, Coutp), compute_dtype),
        grid=(N,),
        in_specs=[
            pl.BlockSpec((1, H + 2, W + 2, Cinp), lambda n: (n, 0, 0, 0)),
            pl.BlockSpec((9 * Cinp, Coutp), lambda n: (0, 0)),
            pl.BlockSpec((1, Coutp), lambda n: (0, 0)),
            pl.BlockSpec((9 * Coutp, Coutp), lambda n: (0, 0)),
            pl.BlockSpec((1, Coutp), lambda n: (0, 0)),
        ],
        out_specs=pl.BlockSpec((1, Ho, Wo, Coutp), lambda n: (n, 0, 0, 0)),
        scratch_shapes=[
            pltpu.VMEM((Ho + 2, Wo + 2, Coutp), compute_dtype),
        ],
        compiler_params=pltpu.CompilerParams(
            dimension_semantics=("parallel",),
            vmem_limit_bytes=_vmem_limit_bytes(H, W, Ho, Wo, Cinp, Coutp),
        ),
    )(x_pad, w1p, b1p, w2p, b2p)

    out = out[..., :Cout]                        # drop padded channels
    return jnp.transpose(out, (0, 3, 1, 2))      # NHWC -> NCHW (bf16)


def block_reference(x_nchw, params, stride=1, compute_dtype=jnp.bfloat16):
    """Pure-JAX reference (lax.conv) with the same BN-fold / bf16-f32 mix."""
    w1, bn1, w2, bn2 = params["w1"], params["bn1"], params["w2"], params["bn2"]
    s1, b1 = _fold_bn(*bn1)
    s2, b2 = _fold_bn(*bn2)
    dn = ("NHWC", "HWIO", "NHWC")

    x = jnp.transpose(x_nchw, (0, 2, 3, 1)).astype(compute_dtype)
    y = jax.lax.conv_general_dilated(
        x, (w1 * s1).astype(compute_dtype), (stride, stride), [(1, 1), (1, 1)],
        dimension_numbers=dn, preferred_element_type=jnp.float32)
    y = jnp.maximum(y + b1, 0.0).astype(compute_dtype)
    y = jax.lax.conv_general_dilated(
        y, (w2 * s2).astype(compute_dtype), (1, 1), [(1, 1), (1, 1)],
        dimension_numbers=dn, preferred_element_type=jnp.float32)
    y = jnp.maximum(y + b2, 0.0)
    return jnp.transpose(y, (0, 3, 1, 2))


def make_params(key, inchannel, outchannel):
    """Deterministic synthetic parameters (shapes match the PyTorch module)."""
    k = jax.random.split(key, 10)
    w1 = jax.random.normal(k[0], (3, 3, inchannel, outchannel), jnp.float32) * 0.1
    w2 = jax.random.normal(k[1], (3, 3, outchannel, outchannel), jnp.float32) * 0.1
    bn1 = (1.0 + 0.1 * jax.random.normal(k[2], (outchannel,), jnp.float32),    # gamma
           0.1 * jax.random.normal(k[3], (outchannel,), jnp.float32),          # beta
           0.1 * jax.random.normal(k[4], (outchannel,), jnp.float32),          # running_mean
           jnp.abs(jax.random.normal(k[5], (outchannel,), jnp.float32)) + 0.5)  # running_var
    bn2 = (1.0 + 0.1 * jax.random.normal(k[6], (outchannel,), jnp.float32),
           0.1 * jax.random.normal(k[7], (outchannel,), jnp.float32),
           0.1 * jax.random.normal(k[8], (outchannel,), jnp.float32),
           jnp.abs(jax.random.normal(k[9], (outchannel,), jnp.float32)) + 0.5)
    return {"w1": w1, "bn1": bn1, "w2": w2, "bn2": bn2}


if __name__ == "__main__":
    key = jax.random.PRNGKey(0)
    kx, kp = jax.random.split(key)

    N, Cin, Cout, H, W, stride = 2, 4, 8, 16, 16, 1
    x = jax.random.normal(kx, (N, Cin, H, W), jnp.float32)   # NCHW like PyTorch
    params = make_params(kp, Cin, Cout)

    out = jax.block_until_ready(block_forward(x, params, stride=stride))
    ref = jax.block_until_ready(block_reference(x, params, stride=stride))

    assert out.shape == ref.shape == (N, Cout, H, W)
    out_f32 = out.astype(jnp.float32)
    max_err = float(jnp.max(jnp.abs(out_f32 - ref)))
    assert jnp.allclose(out_f32, ref, rtol=2e-2, atol=2e-2), f"max abs err = {max_err}"

    print("KERNEL_OK")
</pallas_src>

<mosaic_0001>
module attributes {stable_mosaic.version = 11 : i64} {
  func.func @_fused_block_kernel(%arg0: i32, %arg1: memref<1x18x18x128xbf16, #tpu.memory_space<vmem>>, %arg2: memref<1152x128xbf16, #tpu.memory_space<vmem>>, %arg3: memref<1x128xf32, #tpu.memory_space<vmem>>, %arg4: memref<1152x128xbf16, #tpu.memory_space<vmem>>, %arg5: memref<1x128xf32, #tpu.memory_space<vmem>>, %arg6: memref<1x16x16x128xbf16, #tpu.memory_space<vmem>>, %arg7: memref<18x18x128xbf16, #tpu.memory_space<vmem>>) attributes {dimension_semantics = [#tpu.dimension_semantics<parallel>], iteration_bounds = array<i64: 2>, scalar_prefetch = 0 : i64, scratch_operands = 1 : i64, tpu.core_type = #tpu.core_type<tc>, window_params = [{transform_indices = @transform_0, window_bounds = array<i64: 1, 18, 18, 128>}, {pipeline_mode = #tpu.pipeline_mode<synchronous>, transform_indices = @transform_1, window_bounds = array<i64: 1152, 128>}, {pipeline_mode = #tpu.pipeline_mode<synchronous>, transform_indices = @transform_2, window_bounds = array<i64: 1, 128>}, {pipeline_mode = #tpu.pipeline_mode<synchronous>, transform_indices = @transform_3, window_bounds = array<i64: 1152, 128>}, {pipeline_mode = #tpu.pipeline_mode<synchronous>, transform_indices = @transform_4, window_bounds = array<i64: 1, 128>}, {transform_indices = @transform_5, window_bounds = array<i64: 1, 16, 16, 128>}]} {
    %cst = arith.constant 0.000000e+00 : bf16
    %0 = vector.broadcast %cst : bf16 to vector<1x18x128xbf16>
    %c0 = arith.constant 0 : index
    %c0_0 = arith.constant 0 : index
    %c0_1 = arith.constant 0 : index
    %1 = vector.load %arg7[%c0, %c0_0, %c0_1] : memref<18x18x128xbf16, #tpu.memory_space<vmem>>, vector<1x18x128xbf16>
    tpu.vector_store %arg7[%c0, %c0_0, %c0_1], %0 {strides = array<i32>} : memref<18x18x128xbf16, #tpu.memory_space<vmem>>, vector<1x18x128xbf16>,
    %c17 = arith.constant 17 : index
    %c0_2 = arith.constant 0 : index
    %c0_3 = arith.constant 0 : index
    %2 = vector.load %arg7[%c17, %c0_2, %c0_3] : memref<18x18x128xbf16, #tpu.memory_space<vmem>>, vector<1x18x128xbf16>
    tpu.vector_store %arg7[%c17, %c0_2, %c0_3], %0 {strides = array<i32>} : memref<18x18x128xbf16, #tpu.memory_space<vmem>>, vector<1x18x128xbf16>,
    %cst_4 = arith.constant 0.000000e+00 : bf16
    %3 = vector.broadcast %cst_4 : bf16 to vector<18x1x128xbf16>
    %c0_5 = arith.constant 0 : index
    %c0_6 = arith.constant 0 : index
    %c0_7 = arith.constant 0 : index
    %4 = vector.load %arg7[%c0_5, %c0_6, %c0_7] : memref<18x18x128xbf16, #tpu.memory_space<vmem>>, vector<18x1x128xbf16>
    tpu.vector_store %arg7[%c0_5, %c0_6, %c0_7], %3 {strides = array<i32>} : memref<18x18x128xbf16, #tpu.memory_space<vmem>>, vector<18x1x128xbf16>,
    %c0_8 = arith.constant 0 : index
    %c17_9 = arith.constant 17 : index
    %c0_10 = arith.constant 0 : index
    %5 = vector.load %arg7[%c0_8, %c17_9, %c0_10] : memref<18x18x128xbf16, #tpu.memory_space<vmem>>, vector<18x1x128xbf16>
    tpu.vector_store %arg7[%c0_8, %c17_9, %c0_10], %3 {strides = array<i32>} : memref<18x18x128xbf16, #tpu.memory_space<vmem>>, vector<18x1x128xbf16>,
    %c0_11 = arith.constant 0 : index
    %c0_12 = arith.constant 0 : index
    %c0_13 = arith.constant 0 : index
    %c0_14 = arith.constant 0 : index
    %6 = vector.load %arg1[%c0_11, %c0_12, %c0_13, %c0_14] : memref<1x18x18x128xbf16, #tpu.memory_space<vmem>>, vector<1x18x18x128xbf16>
    %7 = vector.shape_cast %6 : vector<1x18x18x128xbf16> to vector<18x18x128xbf16>
    %8 = vector.extract_strided_slice %7 {offsets = [0, 0, 0], sizes = [18, 16, 128], strides = [1, 1, 1]} : vector<18x18x128xbf16> to vector<18x16x128xbf16>
    %9 = vector.extract_strided_slice %8 {offsets = [0, 0, 0], sizes = [16, 16, 128], strides = [1, 1, 1]} : vector<18x16x128xbf16> to vector<16x16x128xbf16>
    %10 = vector.shape_cast %9 : vector<16x16x128xbf16> to vector<256x128xbf16>
    %11 = vector.extract_strided_slice %8 {offsets = [1, 0, 0], sizes = [16, 16, 128], strides = [1, 1, 1]} : vector<18x16x128xbf16> to vector<16x16x128xbf16>
    %12 = vector.shape_cast %11 : vector<16x16x128xbf16> to vector<256x128xbf16>
    %13 = vector.extract_strided_slice %8 {offsets = [2, 0, 0], sizes = [16, 16, 128], strides = [1, 1, 1]} : vector<18x16x128xbf16> to vector<16x16x128xbf16>
    %14 = vector.shape_cast %13 : vector<16x16x128xbf16> to vector<256x128xbf16>
    %15 = tpu.concatenate %10, %12, %14 in 1 : vector<256x128xbf16>, vector<256x128xbf16>, vector<256x128xbf16> -> vector<256x384xbf16>
    %c0_15 = arith.constant 0 : index
    %c0_16 = arith.constant 0 : index
    %16 = vector.load %arg2[%c0_15, %c0_16] : memref<1152x128xbf16, #tpu.memory_space<vmem>>, vector<384x128xbf16>
    %cst_17 = arith.constant dense<0.000000e+00> : vector<256x128xf32>
    %17 = tpu.matmul %15, %16, %cst_17 {dimension_numbers = #tpu.dot_dimension_numbers<[1], [0], [0], [1], [0, 0, 1, 1], [], []>} : vector<256x384xbf16>, vector<384x128xbf16>, vector<256x128xf32> -> vector<256x128xf32>
    %18 = vector.extract_strided_slice %7 {offsets = [0, 1, 0], sizes = [18, 16, 128], strides = [1, 1, 1]} : vector<18x18x128xbf16> to vector<18x16x128xbf16>
    %19 = vector.extract_strided_slice %18 {offsets = [0, 0, 0], sizes = [16, 16, 128], strides = [1, 1, 1]} : vector<18x16x128xbf16> to vector<16x16x128xbf16>
    %20 = vector.shape_cast %19 : vector<16x16x128xbf16> to vector<256x128xbf16>
    %21 = vector.extract_strided_slice %18 {offsets = [1, 0, 0], sizes = [16, 16, 128], strides = [1, 1, 1]} : vector<18x16x128xbf16> to vector<16x16x128xbf16>
    %22 = vector.shape_cast %21 : vector<16x16x128xbf16> to vector<256x128xbf16>
    %23 = vector.extract_strided_slice %18 {offsets = [2, 0, 0], sizes = [16, 16, 128], strides = [1, 1, 1]} : vector<18x16x128xbf16> to vector<16x16x128xbf16>
    %24 = vector.shape_cast %23 : vector<16x16x128xbf16> to vector<256x128xbf16>
    %25 = tpu.concatenate %20, %22, %24 in 1 : vector<256x128xbf16>, vector<256x128xbf16>, vector<256x128xbf16> -> vector<256x384xbf16>
    %c384 = arith.constant 384 : index
    %c0_18 = arith.constant 0 : index
    %26 = vector.load %arg2[%c384, %c0_18] : memref<1152x128xbf16, #tpu.memory_space<vmem>>, vector<384x128xbf16>
    %cst_19 = arith.constant dense<0.000000e+00> : vector<256x128xf32>
    %27 = tpu.matmul %25, %26, %cst_19 {dimension_numbers = #tpu.dot_dimension_numbers<[1], [0], [0], [1], [0, 0, 1, 1], [], []>} : vector<256x384xbf16>, vector<384x128xbf16>, vector<256x128xf32> -> vector<256x128xf32>
    %28 = arith.addf %17, %27 : vector<256x128xf32>
    %29 = vector.extract_strided_slice %7 {offsets = [0, 2, 0], sizes = [18, 16, 128], strides = [1, 1, 1]} : vector<18x18x128xbf16> to vector<18x16x128xbf16>
    %30 = vector.extract_strided_slice %29 {offsets = [0, 0, 0], sizes = [16, 16, 128], strides = [1, 1, 1]} : vector<18x16x128xbf16> to vector<16x16x128xbf16>
    %31 = vector.shape_cast %30 : vector<16x16x128xbf16> to vector<256x128xbf16>
    %32 = vector.extract_strided_slice %29 {offsets = [1, 0, 0], sizes = [16, 16, 128], strides = [1, 1, 1]} : vector<18x16x128xbf16> to vector<16x16x128xbf16>
    %33 = vector.shape_cast %32 : vector<16x16x128xbf16> to vector<256x128xbf16>
    %34 = vector.extract_strided_slice %29 {offsets = [2, 0, 0], sizes = [16, 16, 128], strides = [1, 1, 1]} : vector<18x16x128xbf16> to vector<16x16x128xbf16>
    %35 = vector.shape_cast %34 : vector<16x16x128xbf16> to vector<256x128xbf16>
    %36 = tpu.concatenate %31, %33, %35 in 1 : vector<256x128xbf16>, vector<256x128xbf16>, vector<256x128xbf16> -> vector<256x384xbf16>
    %c768 = arith.constant 768 : index
    %c0_20 = arith.constant 0 : index
    %37 = vector.load %arg2[%c768, %c0_20] : memref<1152x128xbf16, #tpu.memory_space<vmem>>, vector<384x128xbf16>
    %cst_21 = arith.constant dense<0.000000e+00> : vector<256x128xf32>
    %38 = tpu.matmul %36, %37, %cst_21 {dimension_numbers = #tpu.dot_dimension_numbers<[1], [0], [0], [1], [0, 0, 1, 1], [], []>} : vector<256x384xbf16>, vector<384x128xbf16>, vector<256x128xf32> -> vector<256x128xf32>
    %39 = arith.addf %28, %38 : vector<256x128xf32>
    %c0_22 = arith.constant 0 : index
    %c0_23 = arith.constant 0 : index
    %40 = vector.load %arg3[%c0_22, %c0_23] : memref<1x128xf32, #tpu.memory_space<vmem>>, vector<1x128xf32>
    %41 = vector.broadcast %40 : vector<1x128xf32> to vector<256x128xf32>
    %42 = arith.addf %39, %41 : vector<256x128xf32>
    %cst_24 = arith.constant 0.000000e+00 : f32
    %43 = vector.broadcast %cst_24 : f32 to vector<256x128xf32>
    %44 = arith.maximumf %42, %43 : vector<256x128xf32>
    %45 = arith.truncf %44 : vector<256x128xf32> to vector<256x128xbf16>
    %46 = vector.shape_cast %45 : vector<256x128xbf16> to vector<16x16x128xbf16>
    %c1 = arith.constant 1 : index
    %c1_25 = arith.constant 1 : index
    %c0_26 = arith.constant 0 : index
    %47 = vector.load %arg7[%c1, %c1_25, %c0_26] : memref<18x18x128xbf16, #tpu.memory_space<vmem>>, vector<16x16x128xbf16>
    tpu.vector_store %arg7[%c1, %c1_25, %c0_26], %46 {strides = array<i32>} : memref<18x18x128xbf16, #tpu.memory_space<vmem>>, vector<16x16x128xbf16>,
    %c0_27 = arith.constant 0 : index
    %c0_28 = arith.constant 0 : index
    %c0_29 = arith.constant 0 : index
    %48 = vector.load %arg7[%c0_27, %c0_28, %c0_29] : memref<18x18x128xbf16, #tpu.memory_space<vmem>>, vector<18x18x128xbf16>
    %49 = vector.extract_strided_slice %48 {offsets = [0, 0, 0], sizes = [18, 16, 128], strides = [1, 1, 1]} : vector<18x18x128xbf16> to vector<18x16x128xbf16>
    %50 = vector.extract_strided_slice %49 {offsets = [0, 0, 0], sizes = [16, 16, 128], strides = [1, 1, 1]} : vector<18x16x128xbf16> to vector<16x16x128xbf16>
    %51 = vector.shape_cast %50 : vector<16x16x128xbf16> to vector<256x128xbf16>
    %52 = vector.extract_strided_slice %49 {offsets = [1, 0, 0], sizes = [16, 16, 128], strides = [1, 1, 1]} : vector<18x16x128xbf16> to vector<16x16x128xbf16>
    %53 = vector.shape_cast %52 : vector<16x16x128xbf16> to vector<256x128xbf16>
    %54 = vector.extract_strided_slice %49 {offsets = [2, 0, 0], sizes = [16, 16, 128], strides = [1, 1, 1]} : vector<18x16x128xbf16> to vector<16x16x128xbf16>
    %55 = vector.shape_cast %54 : vector<16x16x128xbf16> to vector<256x128xbf16>
    %56 = tpu.concatenate %51, %53, %55 in 1 : vector<256x128xbf16>, vector<256x128xbf16>, vector<256x128xbf16> -> vector<256x384xbf16>
    %c0_30 = arith.constant 0 : index
    %c0_31 = arith.constant 0 : index
    %57 = vector.load %arg4[%c0_30, %c0_31] : memref<1152x128xbf16, #tpu.memory_space<vmem>>, vector<384x128xbf16>
    %cst_32 = arith.constant dense<0.000000e+00> : vector<256x128xf32>
    %58 = tpu.matmul %56, %57, %cst_32 {dimension_numbers = #tpu.dot_dimension_numbers<[1], [0], [0], [1], [0, 0, 1, 1], [], []>} : vector<256x384xbf16>, vector<384x128xbf16>, vector<256x128xf32> -> vector<256x128xf32>
    %59 = vector.extract_strided_slice %48 {offsets = [0, 1, 0], sizes = [18, 16, 128], strides = [1, 1, 1]} : vector<18x18x128xbf16> to vector<18x16x128xbf16>
    %60 = vector.extract_strided_slice %59 {offsets = [0, 0, 0], sizes = [16, 16, 128], strides = [1, 1, 1]} : vector<18x16x128xbf16> to vector<16x16x128xbf16>
    %61 = vector.shape_cast %60 : vector<16x16x128xbf16> to vector<256x128xbf16>
    %62 = vector.extract_strided_slice %59 {offsets = [1, 0, 0], sizes = [16, 16, 128], strides = [1, 1, 1]} : vector<18x16x128xbf16> to vector<16x16x128xbf16>
    %63 = vector.shape_cast %62 : vector<16x16x128xbf16> to vector<256x128xbf16>
    %64 = vector.extract_strided_slice %59 {offsets = [2, 0, 0], sizes = [16, 16, 128], strides = [1, 1, 1]} : vector<18x16x128xbf16> to vector<16x16x128xbf16>
    %65 = vector.shape_cast %64 : vector<16x16x128xbf16> to vector<256x128xbf16>
    %66 = tpu.concatenate %61, %63, %65 in 1 : vector<256x128xbf16>, vector<256x128xbf16>, vector<256x128xbf16> -> vector<256x384xbf16>
    %c384_33 = arith.constant 384 : index
    %c0_34 = arith.constant 0 : index
    %67 = vector.load %arg4[%c384_33, %c0_34] : memref<1152x128xbf16, #tpu.memory_space<vmem>>, vector<384x128xbf16>
    %cst_35 = arith.constant dense<0.000000e+00> : vector<256x128xf32>
    %68 = tpu.matmul %66, %67, %cst_35 {dimension_numbers = #tpu.dot_dimension_numbers<[1], [0], [0], [1], [0, 0, 1, 1], [], []>} : vector<256x384xbf16>, vector<384x128xbf16>, vector<256x128xf32> -> vector<256x128xf32>
    %69 = arith.addf %58, %68 : vector<256x128xf32>
    %70 = vector.extract_strided_slice %48 {offsets = [0, 2, 0], sizes = [18, 16, 128], strides = [1, 1, 1]} : vector<18x18x128xbf16> to vector<18x16x128xbf16>
    %71 = vector.extract_strided_slice %70 {offsets = [0, 0, 0], sizes = [16, 16, 128], strides = [1, 1, 1]} : vector<18x16x128xbf16> to vector<16x16x128xbf16>
    %72 = vector.shape_cast %71 : vector<16x16x128xbf16> to vector<256x128xbf16>
    %73 = vector.extract_strided_slice %70 {offsets = [1, 0, 0], sizes = [16, 16, 128], strides = [1, 1, 1]} : vector<18x16x128xbf16> to vector<16x16x128xbf16>
    %74 = vector.shape_cast %73 : vector<16x16x128xbf16> to vector<256x128xbf16>
    %75 = vector.extract_strided_slice %70 {offsets = [2, 0, 0], sizes = [16, 16, 128], strides = [1, 1, 1]} : vector<18x16x128xbf16> to vector<16x16x128xbf16>
    %76 = vector.shape_cast %75 : vector<16x16x128xbf16> to vector<256x128xbf16>
    %77 = tpu.concatenate %72, %74, %76 in 1 : vector<256x128xbf16>, vector<256x128xbf16>, vector<256x128xbf16> -> vector<256x384xbf16>
    %c768_36 = arith.constant 768 : index
    %c0_37 = arith.constant 0 : index
    %78 = vector.load %arg4[%c768_36, %c0_37] : memref<1152x128xbf16, #tpu.memory_space<vmem>>, vector<384x128xbf16>
    %cst_38 = arith.constant dense<0.000000e+00> : vector<256x128xf32>
    %79 = tpu.matmul %77, %78, %cst_38 {dimension_numbers = #tpu.dot_dimension_numbers<[1], [0], [0], [1], [0, 0, 1, 1], [], []>} : vector<256x384xbf16>, vector<384x128xbf16>, vector<256x128xf32> -> vector<256x128xf32>
    %80 = arith.addf %69, %79 : vector<256x128xf32>
    %c0_39 = arith.constant 0 : index
    %c0_40 = arith.constant 0 : index
    %81 = vector.load %arg5[%c0_39, %c0_40] : memref<1x128xf32, #tpu.memory_space<vmem>>, vector<1x128xf32>
    %82 = vector.broadcast %81 : vector<1x128xf32> to vector<256x128xf32>
    %83 = arith.addf %80, %82 : vector<256x128xf32>
    %cst_41 = arith.constant 0.000000e+00 : f32
    %84 = vector.broadcast %cst_41 : f32 to vector<256x128xf32>
    %85 = arith.maximumf %83, %84 : vector<256x128xf32>
    %86 = vector.shape_cast %85 : vector<256x128xf32> to vector<16x16x128xf32>
    %87 = arith.truncf %86 : vector<16x16x128xf32> to vector<16x16x128xbf16>
    %c0_42 = arith.constant 0 : index
    %c0_43 = arith.constant 0 : index
    %c0_44 = arith.constant 0 : index
    %c0_45 = arith.constant 0 : index
    %88 = vector.load %arg6[%c0_42, %c0_43, %c0_44, %c0_45] : memref<1x16x16x128xbf16, #tpu.memory_space<vmem>>, vector<1x16x16x128xbf16>
    %89 = vector.shape_cast %88 : vector<1x16x16x128xbf16> to vector<16x16x128xbf16>
    %90 = vector.shape_cast %87 : vector<16x16x128xbf16> to vector<1x16x16x128xbf16>
    tpu.vector_store %arg6[%c0_42, %c0_43, %c0_44, %c0_45], %90 {strides = array<i32>} : memref<1x16x16x128xbf16, #tpu.memory_space<vmem>>, vector<1x16x16x128xbf16>,
    return
  }
  func.func @transform_0(%arg0: i32) -> (i32, i32, i32, i32) {
    %c0_i32 = arith.constant 0 : i32
    %c0_i32_0 = arith.constant 0 : i32
    %c0_i32_1 = arith.constant 0 : i32
    %c0_i32_2 = arith.constant 0 : i32
    return %arg0, %c0_i32, %c0_i32_0, %c0_i32_1 : i32, i32, i32, i32
  }
  func.func @transform_1(%arg0: i32) -> (i32, i32) {
    %c0_i32 = arith.constant 0 : i32
    %c0_i32_0 = arith.constant 0 : i32
    %c0_i32_1 = arith.constant 0 : i32
    return %c0_i32, %c0_i32_0 : i32, i32
  }
  func.func @transform_2(%arg0: i32) -> (i32, i32) {
    %c0_i32 = arith.constant 0 : i32
    %c0_i32_0 = arith.constant 0 : i32
    %c0_i32_1 = arith.constant 0 : i32
    return %c0_i32, %c0_i32_0 : i32, i32
  }
  func.func @transform_3(%arg0: i32) -> (i32, i32) {
    %c0_i32 = arith.constant 0 : i32
    %c0_i32_0 = arith.constant 0 : i32
    %c0_i32_1 = arith.constant 0 : i32
    return %c0_i32, %c0_i32_0 : i32, i32
  }
  func.func @transform_4(%arg0: i32) -> (i32, i32) {
    %c0_i32 = arith.constant 0 : i32
    %c0_i32_0 = arith.constant 0 : i32
    %c0_i32_1 = arith.constant 0 : i32
    return %c0_i32, %c0_i32_0 : i32, i32
  }
  func.func @transform_5(%arg0: i32) -> (i32, i32, i32, i32) {
    %c0_i32 = arith.constant 0 : i32
    %c0_i32_0 = arith.constant 0 : i32
    %c0_i32_1 = arith.constant 0 : i32
    %c0_i32_2 = arith.constant 0 : i32
    return %arg0, %c0_i32, %c0_i32_0, %c0_i32_1 : i32, i32, i32, i32
  }
}

</mosaic_0001>

<bundles_post_ra>
// kernel: tpu_custom_call.1
= control target key start
LH: loop header
LB: loop body
LE: loop exit
PB: predicated region body
PF: predicated region fallthrough
CT: control target
= control target key end

     0   :  { %10 = vsyncpa [#allocation4], 0  ;;  %s9217_s0 = inlined_call_operand.vmem [shape: bf16[2,18,18,128], index: 0, kind: input, shape index: {}]   ;;  %s9218_s1 = inlined_call_operand.vmem [shape: bf16[1152,128], index: 1, kind: input, shape index: {}]   ;;  %s9219_s2 = inlined_call_operand.vmem [shape: f32[1,128], index: 2, kind: input, shape index: {}]   ;;  %s9220_s3 = inlined_call_operand.hbm [shape: bf16[1152,128], index: 3, kind: input, shape index: {}]   ;;  %s9221_s4 = inlined_call_operand.vmem [shape: f32[1,128], index: 4, kind: input, shape index: {}]   ;;  %s9222_s5 = inlined_call_operand.hbm [shape: bf16[2,16,16,128], index: 5, kind: output, shape index: {}]  }
   0x1   :  { %11 = vsyncpa [#allocation5], 0 }
   0x2   :  { %13 = vsyncpa [#allocation5 + $0x1], 0  ;;  %s7029_s18 = smov 0   ;;  %s7031_s19 = smov 0  }
   0x3   :  { %s7033_s20 = smov 0   ;;  %s7035_s21 = smov 0  }
   0x4 LB: > { %s7050_s22 = sadd.s32 4294967295, %s6991_s21   ;;  %s5708_s23 = sadd.s32 4294967294, %s6991_s21   ;;  %s6991_s21 = sphi %s7035_s21, %s9326_s21   ;;  %s6987_s20 = sphi %s7033_s20, %s9325_s20   ;;  %s6983_s19 = sphi %s7031_s19, %s9324_s19   ;;  %s6979_s18 = sphi %s7029_s18, %s9323_s18  }
   0x5   : > { %s7054_s24 = sadd.s32 1, %s6991_s21   ;;  %s136_s25 = sadd.s32 1, %s6987_s20 }
   0x6   : > { %s133_s26 = ssub.s32 %s6991_s21, %s7054_s24  ;;  %p146_p0 = scmp.ne.s32.totalorder %s6987_s20, %s6983_s19 }
   0x7   : > { %p134_p1 = scmp.eq.s32.totalorder %s133_s26, 0  ;;  %p147_p2 = scmp.eq.s32.totalorder %s7050_s22, 1 }
   0x8   : > { %p152_p3 = scmp.ne.s32.totalorder %s6983_s19, %s6979_s18  ;;  %p153_p4 = scmp.eq.s32.totalorder %s5708_s23, 1 }
   0x9   : > { %s7065_s27 = scalar_select %p134_p1, %s6987_s20, %s136_s25  }
   0xa   : > { %p7067_p5 = por %p147_p2, %p146_p0  ;;  %p7071_p6 = por %p153_p4, %p152_p3 }
   0xb   : > { %p5709_p7 = scmp.ge.s32.totalorder %s6991_s21, 1  ;;  %p160_p8 = scmp.lt.s32.totalorder %s6991_s21, 3 }
   0xc   : > { %p6784_p9 = scmp.eq.s32.totalorder %s7050_s22, 0  ;;  %s177_s7 = sshll.u32 %s9220_s3, 4  ;;  %s178_s7 = int_to_ptr.hbm [resolvable:$true] %s177_s7 }
   0xd   : > { %p161_p10 = pnand %p5709_p7, %p160_p8  ;;  %s6993_s8 = smov [#allocation3]  }
   0xe   : > { %s179_s9 = sshll.u32 %s6993_s8, 4  ;;  %s6994_s10 = smov 64   ;;  %s180_s9 = int_to_ptr.vmem [resolvable:$true] %s179_s9 }
   0xf   : > { %p6776_p11 = pneg %p161_p10  ;;  %s6995_s11 = smov 4  }
  0x10   : > { %206 = sbr.rel (%p161_p10) target bundleno = 1507 (0x5e3), region = 40 }
  0x11   : > { %p6777_p12 = pnand %p6784_p9, %p6776_p11 }
  0x13   : > { %6779 = dma.hbm_to_vmem [thread:$0]  (!%p6777_p12), %s178_s7, 9216, %s180_s9, [#allocation4], %s6994_s10, %s6994_s10, %s6995_s11  }
  0x15   : > { %6970 = dma.done.wait (%p6784_p9), [#allocation4], 9216  }
  0x16   : > { %6972 = vsyncadd (%p6784_p9), [#allocation4], 4294958080  ;;  %p235_p13 = scmp.lt.s32.totalorder %s7050_s22, 1  ;;  %v6526_v0 = vld [vmem:[%s9218_s1 + $0xf8] sm:$0xff]  ;;  %v6525_v2 = vld [vmem:[%s9218_s1 + $0xf0] sm:$0xff]  ;;  %vm1964_vm3 = vcmask 1042432  }
  0x17   : > { %v6534_v1 = vld [vmem:[%s9218_s1 + $0x138] sm:$0xff]  ;;  %1270 = vmatpush.bf16.msra.mxu0 %v6526_v0  ;;  %6753 = vmatpush.bf16.msra.mxu2 %v6526_v0  ;;  %v6533_v3 = vld [vmem:[%s9218_s1 + $0x130] sm:$0xff]  ;;  %vm571_vm0 = vsmask.f32 3328  ;;  %v6524_v4 = vld [vmem:[%s9218_s1 + $0xe8] sm:$0xff]  ;;  %vm1965_vm4 = vcmask 1046532  }
  0x18   : > { %s236_s12 = scalar_select %p235_p13, %s7050_s22, 1  ;;  %1359 = vmatpush.bf16.msra.mxu1 %v6534_v1  ;;  %6761 = vmatpush.bf16.msra.mxu3 %v6534_v1  ;;  %v6532_v12 = vld [vmem:[%s9218_s1 + $0x128] sm:$0xff]  ;;  %vm572_vm1 = vsmask.f32 7440  ;;  %v6523_v24 = vld [vmem:[%s9218_s1 + $0xe0] sm:$0xff]  ;;  %v6522_v45 = vld [vmem:[%s9218_s1 + $0xd8] sm:$0xff] }
  0x19   : > { %v6531_v25 = vld [vmem:[%s9218_s1 + $0x120] sm:$0xff]  ;;  %vm7128_vm2 = vmor %vm571_vm0, %vm572_vm1  ;;  %v6530_v49 = vld [vmem:[%s9218_s1 + $0x118] sm:$0xff]  ;;  %vm248_vm6 = vcmask 1040384   ;;  %vm249_vm7 = vsmask.f32 256  ;;  %vm3081_vm11 = vcmask 1043456  }
  0x1a   : > { %s6769_s13 = smul.u32 216, %s236_s12  ;;  %v6521_v61 = vld [vmem:[%s9218_s1 + $0xd0] sm:$0xff]  ;;  %vm7661_vm5 = vmor %vm1964_vm3, %vm1965_vm4  ;;  %vm305_vm9 = vsmask.f32 7938  ;;  %vm2758_vm13 = vsmask.f32 4368 }
  0x1b   : > { %1271 = vmatpush.bf16.msra.mxu0 %v6525_v2  ;;  %6754 = vmatpush.bf16.msra.mxu2 %v6525_v2  ;;  %v6529_v62 = vld [vmem:[%s9218_s1 + $0x110] sm:$0xff]  ;;  %vm7839_vm8 = vmand %vm248_vm6, %vm249_vm7  ;;  %s232_s17 = sand.u32 1, %s6983_s19   ;;  %s6657_s26 = sshll.u32 %s7050_s22, 7 }
  0x1c   : > { %s7101_s6 = scalar_lea.vmem %s9217_s0, %s6769_s13  ;;  %1360 = vmatpush.bf16.msra.mxu1 %v6533_v3  ;;  %6762 = vmatpush.bf16.msra.mxu3 %v6533_v3  ;;  %vm7853_vm10 = vmand %vm248_vm6, %vm305_vm9  ;;  %s5714_s23 = sshll.u32 %s232_s17, 7 }
  0x1d   : > { %v361_v5 = vld [vmem:[%s7101_s6] sm:$0xf]  ;;  %v362_v6 = vld [vmem:[%s7101_s6 + $0x4] sm:$0xf]  ;;  %v363_v7 = vld [vmem:[%s7101_s6 + $0x8] sm:$0x1]  ;;  %s5630_s8 = scalar_lea.hbm %s9222_s5, %s6657_s26 }
  0x1e   : > { %v575_v8 = vshrl.u32 %v361_v5, 16  ;;  %v578_v9 = vshll.u32 %v361_v5, 16  ;;  %v584_v10 = vshll.u32 %v362_v6, 16  ;;  %v588_v11 = vshrl.u32 %v362_v6, 16  ;;  %v385_v14 = vld [vmem:[%s7101_s6 + $0x60] sm:$0xf]  ;;  %vm7930_vm12 = vmand %vm3081_vm11, %vm305_vm9 }
  0x1f   : > { %v594_v13 = vshll.u32 %v363_v7, 16  ;;  %v386_v19 = vld [vmem:[%s7101_s6 + $0x64] sm:$0xf]  ;;  %v387_v21 = vld [vmem:[%s7101_s6 + $0x68] sm:$0x1]  ;;  %v767_v22 = vshrl.u32 %v385_v14, 16  ;;  %1272 = vmatpush.bf16.msra.mxu0 %v6524_v4  ;;  %6755 = vmatpush.bf16.msra.mxu2 %v6524_v4  ;;  %vm7944_vm14 = vmor %vm249_vm7, %vm2758_vm13 }
  0x20   : > { %v577_v15 = vrot.slane %v575_v8, 4  ;;  %v580_v16 = vrot.slane %v578_v9, 5  ;;  %v586_v17 = vrot.slane %v584_v10, 5  ;;  %v590_v18 = vrot.slane %v588_v11, 4  ;;  %v364_v30 = vld [vmem:[%s7101_s6 + $0xc] sm:$0xf]  ;;  %1361 = vmatpush.bf16.msra.mxu1 %v6532_v12  ;;  %6763 = vmatpush.bf16.msra.mxu3 %v6532_v12 }
  0x21   : > { %v596_v20 = vrot.slane %v594_v13, 5  ;;  %v770_v23 = vshll.u32 %v385_v14, 16  ;;  %v776_v28 = vshll.u32 %v386_v19, 16  ;;  %v780_v29 = vshrl.u32 %v386_v19, 16  ;;  %v365_v34 = vld [vmem:[%s7101_s6 + $0x10] sm:$0xf] }
  0x22   : > { %v581_v26 = vor.u32 %v580_v16, %v577_v15  ;;  %v591_v27 = vor.u32 %v590_v18, %v586_v17  ;;  %v769_v31 = vrot.slane %v767_v22, 4  ;;  %v786_v33 = vshll.u32 %v387_v21, 16  ;;  %v366_v42 = vld [vmem:[%s7101_s6 + $0x14] sm:$0x1]  ;;  %v388_v59 = vld [vmem:[%s7101_s6 + $0x6c] sm:$0xf] }
  0x23   : > { %v772_v32 = vrot.slane %v770_v23, 5  ;;  %v599_v35 = vshrl.u32 %v364_v30, 16  ;;  %v778_v39 = vrot.slane %v776_v28, 5  ;;  %v782_v40 = vrot.slane %v780_v29, 4  ;;  %1273 = vmatpush.bf16.msra.mxu0 %v6523_v24  ;;  %6756 = vmatpush.bf16.msra.mxu2 %v6523_v24  ;;  %v389_v60 = vld [vmem:[%s7101_s6 + $0x70] sm:$0xf] }
  0x24   : > { %v582_v37 = vrot.slane %v581_v26, 4  ;;  %v592_v38 = vrot.slane %v591_v27, 4  ;;  %v602_v44 = vshll.u32 %v364_v30, 16  ;;  %v788_v47 = vrot.slane %v786_v33, 5  ;;  %1362 = vmatpush.bf16.msra.mxu1 %v6531_v25  ;;  %6764 = vmatpush.bf16.msra.mxu3 %v6531_v25  ;;  %v390_v6 = vld [vmem:[%s7101_s6 + $0x74] sm:$0x1] }
  0x25   : > { %v773_v41 = vor.u32 %v772_v32, %v769_v31  ;;  %v601_v43 = vrot.slane %v599_v35, 4  ;;  %v783_v46 = vor.u32 %v782_v40, %v778_v39  ;;  %v608_v48 = vshll.u32 %v365_v34, 16  ;;  %v367_v11 = vld [vmem:[%s7101_s6 + $0x18] sm:$0xf]  ;;  %v368_v16 = vld [vmem:[%s7101_s6 + $0x1c] sm:$0xf] }
  0x26   : > { %v587_v50 = vsel %vm7128_vm2, %v582_v37, %v586_v17  ;;  %v597_v51 = vsel %vm7128_vm2, %v592_v38, %v596_v20  ;;  %v604_v53 = vrot.slane %v602_v44, 5  ;;  %v612_v56 = vshrl.u32 %v365_v34, 16  ;;  %v6520_v17 = vld [vmem:[%s9218_s1 + $0xc8] sm:$0xff]  ;;  %v6519_v35 = vld [vmem:[%s9218_s1 + $0xc0] sm:$0xff]  ;;  %s9080_s25 = scalar_lea.vmem [#allocation6], %s5714_s23  ;;  %s5633_s10 = sshll.u32 %s5630_s8, 4  ;;  %s5634_s10 = int_to_ptr.hbm [resolvable:$true] %s5633_s10 }
  0x27   : > { %v774_v52 = vrot.slane %v773_v41, 4  ;;  %v784_v54 = vrot.slane %v783_v46, 4  ;;  %v610_v55 = vrot.slane %v608_v48, 5  ;;  %v618_v57 = vshll.u32 %v366_v42, 16  ;;  %1274 = vmatpush.bf16.msra.mxu0 %v6522_v45  ;;  %6757 = vmatpush.bf16.msra.mxu2 %v6522_v45  ;;  %v6528_v18 = vld [vmem:[%s9218_s1 + $0x108] sm:$0xff]  ;;  %v6527_v41 = vld [vmem:[%s9218_s1 + $0x100] sm:$0xff] }
  0x28   : > { %v605_v58 = vor.u32 %v604_v53, %v601_v43  ;;  %v614_v1 = vrot.slane %v612_v56, 4  ;;  %1363 = vmatpush.bf16.msra.mxu1 %v6530_v49  ;;  %6765 = vmatpush.bf16.msra.mxu3 %v6530_v49  ;;  %v7155_v2 = vunpack.c.l.b16 %v587_v50  ;;  %v7157_v3 = vunpack.c.l.b16 %v597_v51  ;;  %v6542_v43 = vld [vmem:[%s9218_s1 + $0x178] sm:$0xff]  ;;  %v369_v44 = vld [vmem:[%s7101_s6 + $0x20] sm:$0x1]  ;;  %s5631_s9 = sshll.u32 %s9080_s25, 4  ;;  %s5619_s22 = scalar_lea.sflag [#allocation5], %s232_s17  ;;  %s5632_s9 = int_to_ptr.vmem [resolvable:$true] %s5631_s9 }
  0x29   : > { %v779_v63 = vsel %vm7128_vm2, %v774_v52, %v778_v39  ;;  %v789_v0 = vsel %vm7128_vm2, %v784_v54, %v788_v47  ;;  %v620_v5 = vrot.slane %v618_v57, 5  ;;  %v791_v8 = vshrl.u32 %v388_v59, 16  ;;  %v6502_v46 = vld [vmem:[%s9218_s1 + $0x38] sm:$0xff]  ;;  %s6939_s11 = sshra.s32 %s5634_s10, 4  ;;  %s6945_s14 = scalar_lea.hbm %s9222_s5, 256  ;;  %s6940_s11 = int_to_ptr.hbm [resolvable:$true] %s6939_s11 }
  0x2a   : > { %v606_v4 = vrot.slane %v605_v58, 4  ;;  %v615_v7 = vor.u32 %v614_v1, %v610_v55  ;;  %v794_v9 = vshll.u32 %v388_v59, 16  ;;  %v800_v10 = vshll.u32 %v389_v60, 16  ;;  %v391_v49 = vld [vmem:[%s7101_s6 + $0x78] sm:$0xf]  ;;  %p6946_p3 = scmp.lt.s32.totalorder %s6940_s11, %s9222_s5 }
  0x2b   : > { %v1022_v12 = vunpack.c.l.b16 %v779_v63  ;;  %v1023_v13 = vunpack.c.l.b16 %v789_v0  ;;  %v804_v15 = vshrl.u32 %v389_v60, 16  ;;  %1275 = vmatpush.bf16.msra.mxu0 %v6521_v61  ;;  %6758 = vmatpush.bf16.msra.mxu2 %v6521_v61  ;;  %v793_v21 = vrot.slane %v791_v8, 4  ;;  %v392_v50 = vld [vmem:[%s7101_s6 + $0x7c] sm:$0xf] }
  0x2c   : > { %v611_v14 = vsel %vm7128_vm2, %v606_v4, %v610_v55  ;;  %v616_v19 = vrot.slane %v615_v7, 4  ;;  %v796_v22 = vrot.slane %v794_v9, 5  ;;  %1364 = vmatpush.bf16.msra.mxu1 %v6529_v62  ;;  %6766 = vmatpush.bf16.msra.mxu3 %v6529_v62  ;;  %v802_v23 = vrot.slane %v800_v10, 5  ;;  %v393_v55 = vld [vmem:[%s7101_s6 + $0x80] sm:$0x1]  ;;  %v6510_v60 = vld [vmem:[%s9218_s1 + $0x78] sm:$0xff] }
  0x2d   : > { %v1008_v20 = vunpack.c.l.b16 %v611_v14  ;;  %v806_v24 = vrot.slane %v804_v15, 4  ;;  %v810_v25 = vshll.u32 %v390_v6, 16  ;;  %v623_v26 = vshrl.u32 %v367_v11, 16  ;;  %v6541_v4 = vld [vmem:[%s9218_s1 + $0x170] sm:$0xff]  ;;  %v370_v9 = vld [vmem:[%s7101_s6 + $0x24] sm:$0xf] }
  0x2e   : > { %v621_v27 = vsel %vm7128_vm2, %v616_v19, %v620_v5  ;;  %v797_v28 = vor.u32 %v796_v22, %v793_v21  ;;  %v626_v29 = vshll.u32 %v367_v11, 16  ;;  %v632_v30 = vshll.u32 %v368_v16, 16  ;;  %v6501_v5 = vld [vmem:[%s9218_s1 + $0x30] sm:$0xff]  ;;  %v6540_v21 = vld [vmem:[%s9218_s1 + $0x168] sm:$0xff] }
  0x2f   : > { %v1009_v31 = vunpack.c.l.b16 %v621_v27  ;;  %v807_v32 = vor.u32 %v806_v24, %v802_v23  ;;  %v812_v33 = vrot.slane %v810_v25, 5  ;;  %v625_v34 = vrot.slane %v623_v26, 4  ;;  %1276 = vmatpush.bf16.msra.mxu0 %v6520_v17  ;;  %6759 = vmatpush.bf16.msra.mxu2 %v6520_v17  ;;  %v6509_v15 = vld [vmem:[%s9218_s1 + $0x70] sm:$0xff]  ;;  %v6500_v22 = vld [vmem:[%s9218_s1 + $0x28] sm:$0xff] }
  0x30   : > { %v798_v37 = vrot.slane %v797_v28, 4  ;;  %v628_v38 = vrot.slane %v626_v29, 5  ;;  %v7175_v39 = vrot.slane %v632_v30, 5  ;;  %v636_v40 = vshrl.u32 %v368_v16, 16  ;;  %1365 = vmatpush.bf16.msra.mxu1 %v6528_v18  ;;  %6767 = vmatpush.bf16.msra.mxu3 %v6528_v18  ;;  %v394_v16 = vld [vmem:[%s7101_s6 + $0x84] sm:$0xf] }
  0x31   : > { %v808_v42 = vrot.slane %v807_v32, 4  ;;  %v1038_v51 = vpack.c.b16 %v7157_v3, %v7155_v2  ;;  %v7193_v52 = vpack.c.b16 %v1023_v13, %v1022_v12  ;;  %v7198_v56 = vpack.c.b16 %v1009_v31, %v1008_v20  ;;  %v371_v13 = vld [vmem:[%s7101_s6 + $0x28] sm:$0xf] }
  0x32   : > { %v803_v45 = vsel %vm7128_vm2, %v798_v37, %v802_v23  ;;  %v629_v47 = vor.u32 %v628_v38, %v625_v34  ;;  %v638_v48 = vrot.slane %v636_v40, 4  ;;  %v642_v59 = vshll.u32 %v369_v44, 16  ;;  %v395_v20 = vld [vmem:[%s7101_s6 + $0x88] sm:$0xf]  ;;  %v372_v44 = vld [vmem:[%s7101_s6 + $0x2c] sm:$0x1] }
  0x33   : > { %v813_v53 = vsel %vm7128_vm2, %v808_v42, %v812_v33  ;;  %v1024_v54 = vunpack.c.l.b16 %v803_v45  ;;  %1277 = vmatpush.bf16.msra.mxu0 %v6519_v35  ;;  %6760 = vmatpush.bf16.msra.mxu2 %v6519_v35  ;;  %v815_v61 = vshrl.u32 %v391_v49, 16  ;;  %v818_v62 = vshll.u32 %v391_v49, 16  ;;  %v6508_v34 = vld [vmem:[%s9218_s1 + $0x68] sm:$0xff] }
  0x34   : > { %v1025_v57 = vunpack.c.l.b16 %v813_v53  ;;  %v639_v58 = vor.u32 %v638_v48, %v7175_v39  ;;  %1366 = vmatpush.bf16.msra.mxu1 %v6527_v41  ;;  %6768 = vmatpush.bf16.msra.mxu3 %v6527_v41  ;;  %v824_v63 = vshll.u32 %v392_v50, 16  ;;  %v828_v0 = vshrl.u32 %v392_v50, 16  ;;  %v396_v50 = vld [vmem:[%s7101_s6 + $0x8c] sm:$0x1] }
  0x35   : > { %v630_v2 = vrot.slane %v629_v47, 4  ;;  %v834_v3 = vshll.u32 %v393_v55, 16  ;;  %v817_v6 = vrot.slane %v815_v61, 4  ;;  %v820_v7 = vrot.slane %v818_v62, 5  ;;  %v373_v62 = vld [vmem:[%s7101_s6 + $0x30] sm:$0xf] }
  0x36   : > { %v7204_v1 = vpack.c.b16 %v1025_v57, %v1024_v54  ;;  %1278 = vmatmul.bf16.vlgmr.msra.gmra.mxu0 %v1038_v51  ;;  %1318 = vmatmul.bf16.vlgmr.msra.gmra.mxu2 %v7193_v52  ;;  %v826_v8 = vrot.slane %v824_v63, 5  ;;  %v640_v10 = vrot.slane %v639_v58, 4  ;;  %v644_v11 = vrot.slane %v642_v59, 5  ;;  %v374_v63 = vld [vmem:[%s7101_s6 + $0x34] sm:$0xf] }
  0x37   : > { %1448 = vmatpush.bf16.msrb.mxu2 %v6542_v43  ;;  %1367 = vmatmul.bf16.vlgmr.msra.gmra.mxu1 %v7198_v56  ;;  %v830_v12 = vrot.slane %v828_v0, 4  ;;  %v821_v14 = vor.u32 %v820_v7, %v817_v6  ;;  %v635_v17 = vsel %vm7128_vm2, %v630_v2, %v7175_v39  ;;  %v836_v19 = vrot.slane %v834_v3, 5 }
  0x38   : > { %1681 = vmatpush.bf16.msrb.mxu3 %v6502_v46  ;;  %1770 = vmatpush.bf16.msrb.mxu0 %v6510_v60  ;;  %v647_v24 = vshrl.u32 %v370_v9, 16  ;;  %v650_v25 = vshll.u32 %v370_v9, 16  ;;  %v656_v26 = vshll.u32 %v371_v13, 16  ;;  %v645_v27 = vsel %vm7128_vm2, %v640_v10, %v644_v11  ;;  %v397_v9 = vld [vmem:[%s7101_s6 + $0x90] sm:$0xf] }
  0x39   : > { %1407 = vmatmul.bf16.vlgmr.msra.gmra.mxu3 %v7204_v1  ;;  %v831_v18 = vor.u32 %v830_v12, %v826_v8  ;;  %v822_v23 = vrot.slane %v821_v14, 4  ;;  %v660_v29 = vshrl.u32 %v371_v13, 16  ;;  %v839_v31 = vshrl.u32 %v394_v16, 16  ;;  %v398_v14 = vld [vmem:[%s7101_s6 + $0x94] sm:$0xf] }
  0x3a   : > { %v842_v32 = vshll.u32 %v394_v16, 16  ;;  %v848_v33 = vshll.u32 %v395_v20, 16  ;;  %v1010_v35 = vunpack.c.l.b16 %v635_v17  ;;  %v1011_v38 = vunpack.c.l.b16 %v645_v27 }
  0x3b   : > { %1449 = vmatpush.bf16.msrb.mxu2 %v6541_v4  ;;  %v832_v28 = vrot.slane %v831_v18, 4  ;;  %v827_v30 = vsel %vm7128_vm2, %v822_v23, %v826_v8  ;;  %v649_v39 = vrot.slane %v647_v24, 4  ;;  %v652_v40 = vrot.slane %v650_v25, 5  ;;  %v6539_v4 = vld [vmem:[%s9218_s1 + $0x160] sm:$0xff] }
  0x3c   : > { %1682 = vmatpush.bf16.msrb.mxu3 %v6501_v5  ;;  %1771 = vmatpush.bf16.msrb.mxu0 %v6509_v15  ;;  %v658_v41 = vrot.slane %v656_v26, 5  ;;  %v1026_v42 = vunpack.c.l.b16 %v827_v30  ;;  %v662_v45 = vrot.slane %v660_v29, 4  ;;  %v852_v46 = vshrl.u32 %v395_v20, 16  ;;  %v6507_v5 = vld [vmem:[%s9218_s1 + $0x60] sm:$0xff]  ;;  %v375_v29 = vld [vmem:[%s7101_s6 + $0x38] sm:$0x1] }
  0x3d   : > { %v837_v37 = vsel %vm7128_vm2, %v832_v28, %v836_v19  ;;  %v841_v47 = vrot.slane %v839_v31, 4  ;;  %v844_v48 = vrot.slane %v842_v32, 5  ;;  %v850_v49 = vrot.slane %v848_v33, 5 }
  0x3e   : > { %v1027_v43 = vunpack.c.l.b16 %v837_v37  ;;  %v854_v51 = vrot.slane %v852_v46, 4  ;;  %v666_v53 = vshll.u32 %v372_v44, 16  ;;  %v7242_v54 = vpack.c.b16 %v1011_v38, %v1010_v35 }
  0x3f   : > { %1450 = vmatpush.bf16.msrb.mxu2 %v6540_v21  ;;  %v653_v57 = vor.u32 %v652_v40, %v649_v39  ;;  %v663_v58 = vor.u32 %v662_v45, %v658_v41  ;;  %v845_v59 = vor.u32 %v844_v48, %v841_v47  ;;  %v858_v61 = vshll.u32 %v396_v50, 16  ;;  %v399_v40 = vld [vmem:[%s7101_s6 + $0x98] sm:$0x1]  ;;  %v377_v50 = vld [vmem:[%s7101_s6 + $0x40] sm:$0xf] }
  0x40   : > { %1683 = vmatpush.bf16.msrb.mxu3 %v6500_v22  ;;  %1772 = vmatpush.bf16.msrb.mxu0 %v6508_v34  ;;  %v7244_v55 = vpack.c.b16 %v1027_v43, %v1026_v42  ;;  %v855_v60 = vor.u32 %v854_v51, %v850_v49  ;;  %v668_v3 = vrot.slane %v666_v53, 5  ;;  %v671_v10 = vshrl.u32 %v373_v62, 16  ;;  %v400_v51 = vld [vmem:[%s7101_s6 + $0x9c] sm:$0xf] }
  0x41   : > { %v654_v0 = vrot.slane %v653_v57, 4  ;;  %v664_v2 = vrot.slane %v663_v58, 4  ;;  %v846_v6 = vrot.slane %v845_v59, 4  ;;  %v860_v8 = vrot.slane %v858_v61, 5  ;;  %v6538_v57 = vld [vmem:[%s9218_s1 + $0x158] sm:$0xff] }
  0x42   : > { %v856_v7 = vrot.slane %v855_v60, 4  ;;  %v674_v11 = vshll.u32 %v373_v62, 16  ;;  %v680_v12 = vshll.u32 %v374_v63, 16  ;;  %v684_v13 = vshrl.u32 %v374_v63, 16  ;;  %v6498_v58 = vld [vmem:[%s9218_s1 + $0x18] sm:$0xff] }
  0x43   : > { %1451 = vmatpush.bf16.msrb.mxu2 %v6539_v4  ;;  %v659_v15 = vsel %vm7128_vm2, %v654_v0, %v658_v41  ;;  %v669_v16 = vsel %vm7128_vm2, %v664_v2, %v668_v3  ;;  %v863_v17 = vshrl.u32 %v397_v9, 16  ;;  %v866_v18 = vshll.u32 %v397_v9, 16  ;;  %v6506_v59 = vld [vmem:[%s9218_s1 + $0x58] sm:$0xff]  ;;  %v401_v62 = vld [vmem:[%s7101_s6 + $0xa0] sm:$0xf] }
  0x44   : > { %1773 = vmatpush.bf16.msrb.mxu0 %v6507_v5  ;;  %v851_v19 = vsel %vm7128_vm2, %v846_v6, %v850_v49  ;;  %v861_v20 = vsel %vm7128_vm2, %v856_v7, %v860_v8  ;;  %v872_v21 = vshll.u32 %v398_v14, 16  ;;  %v876_v22 = vshrl.u32 %v398_v14, 16  ;;  %v376_v49 = vld [vmem:[%s7101_s6 + $0x3c] sm:$0xf] }
  0x45   : > { %v673_v23 = vrot.slane %v671_v10, 4  ;;  %v676_v24 = vrot.slane %v674_v11, 5  ;;  %v682_v25 = vrot.slane %v680_v12, 5  ;;  %v686_v26 = vrot.slane %v684_v13, 4 }
  0x46   : > { %1283 = vmatmul.bf16.gmra.mxu0 %v7198_v56  ;;  %1323 = vmatmul.bf16.gmra.mxu2 %v7204_v1  ;;  %v6499_v56 = vld [vmem:[%s9218_s1 + $0x20] sm:$0xff]  ;;  %v1012_v27 = vunpack.c.l.b16 %v659_v15  ;;  %v1013_v28 = vunpack.c.l.b16 %v669_v16  ;;  %v1028_v30 = vunpack.c.l.b16 %v851_v19  ;;  %v1029_v31 = vunpack.c.l.b16 %v861_v20 }
  0x47   : > { %1372 = vmatmul.bf16.gmra.mxu1 %v7242_v54  ;;  %1684 = vmatpush.bf16.msrb.mxu3 %v6499_v56  ;;  %v865_v32 = vrot.slane %v863_v17, 4  ;;  %v868_v33 = vrot.slane %v866_v18, 5  ;;  %v874_v34 = vrot.slane %v872_v21, 5  ;;  %v878_v35 = vrot.slane %v876_v22, 4  ;;  %v378_v16 = vld [vmem:[%s7101_s6 + $0x44] sm:$0x1] }
  0x48   : > { %v677_v37 = vor.u32 %v676_v24, %v673_v23  ;;  %v687_v38 = vor.u32 %v686_v26, %v682_v25  ;;  %v690_v39 = vshll.u32 %v375_v29, 16  ;;  %v7273_v41 = vpack.c.b16 %v1013_v28, %v1012_v27  ;;  %1452 = vmatpush.bf16.msrb.mxu2 %v6538_v57  ;;  %1774 = vmatpush.bf16.msrb.mxu0 %v6506_v59  ;;  %v402_v24 = vld [vmem:[%s7101_s6 + $0xa4] sm:$0x1] }
  0x49   : > { %1412 = vmatmul.bf16.gmra.mxu3 %v7244_v55  ;;  %v7275_v42 = vpack.c.b16 %v1029_v31, %v1028_v30  ;;  %v869_v43 = vor.u32 %v868_v33, %v865_v32  ;;  %v879_v44 = vor.u32 %v878_v35, %v874_v34  ;;  %v882_v45 = vshll.u32 %v399_v40, 16  ;;  %v380_v35 = vld [vmem:[%s7101_s6 + $0x4c] sm:$0xf] }
  0x4a   : > { %v678_v46 = vrot.slane %v677_v37, 4  ;;  %v688_v47 = vrot.slane %v687_v38, 4  ;;  %v692_v48 = vrot.slane %v690_v39, 5  ;;  %v695_v0 = vshrl.u32 %v376_v49, 16  ;;  %v403_v39 = vld [vmem:[%s7101_s6 + $0xa8] sm:$0xf] }
  0x4b   : > { %v870_v53 = vrot.slane %v869_v43, 4  ;;  %v880_v60 = vrot.slane %v879_v44, 4  ;;  %v884_v61 = vrot.slane %v882_v45, 5  ;;  %v698_v2 = vshll.u32 %v376_v49, 16  ;;  %1685 = vmatpush.bf16.msrb.mxu3 %v6498_v58  ;;  %v404_v40 = vld [vmem:[%s7101_s6 + $0xac] sm:$0xf] }
  0x4c   : > { %v683_v63 = vsel %vm7128_vm2, %v678_v46, %v682_v25  ;;  %v693_v3 = vsel %vm7128_vm2, %v688_v47, %v692_v48  ;;  %v704_v4 = vshll.u32 %v377_v50, 16  ;;  %v708_v56 = vshrl.u32 %v377_v50, 16  ;;  %v6537_v46 = vld [vmem:[%s9218_s1 + $0x150] sm:$0xff] }
  0x4d   : > { %v887_v5 = vshrl.u32 %v400_v51, 16  ;;  %v875_v6 = vsel %vm7128_vm2, %v870_v53, %v874_v34  ;;  %v890_v7 = vshll.u32 %v400_v51, 16  ;;  %v896_v8 = vshll.u32 %v401_v62, 16  ;;  %v379_v34 = vld [vmem:[%s7101_s6 + $0x48] sm:$0xf]  ;;  %v6497_v47 = vld [vmem:[%s9218_s1 + $0x10] sm:$0xff]  ;;  %1453 = vmatpush.bf16.msrb.mxu2 %v6537_v46 }
  0x4e   : > { %v900_v9 = vshrl.u32 %v401_v62, 16  ;;  %v885_v10 = vsel %vm7128_vm2, %v880_v60, %v884_v61  ;;  %v1014_v11 = vunpack.c.l.b16 %v683_v63  ;;  %v1015_v12 = vunpack.c.l.b16 %v693_v3  ;;  %v6505_v48 = vld [vmem:[%s9218_s1 + $0x50] sm:$0xff] }
  0x4f   : > { %v697_v13 = vrot.slane %v695_v0, 4  ;;  %v700_v14 = vrot.slane %v698_v2, 5  ;;  %v1030_v15 = vunpack.c.l.b16 %v875_v6  ;;  %v706_v17 = vrot.slane %v704_v4, 5  ;;  %1686 = vmatpush.bf16.msrb.mxu3 %v6497_v47  ;;  %1775 = vmatpush.bf16.msrb.mxu0 %v6505_v48 }
  0x50   : > { %v710_v18 = vrot.slane %v708_v56, 4  ;;  %v889_v19 = vrot.slane %v887_v5, 4  ;;  %v1031_v20 = vunpack.c.l.b16 %v885_v10  ;;  %v892_v21 = vrot.slane %v890_v7, 5  ;;  %v381_v5 = vld [vmem:[%s7101_s6 + $0x50] sm:$0x1] }
  0x51   : > { %v898_v22 = vrot.slane %v896_v8, 5  ;;  %v902_v23 = vrot.slane %v900_v9, 4  ;;  %v714_v25 = vshll.u32 %v378_v16, 16  ;;  %v7304_v26 = vpack.c.b16 %v1015_v12, %v1014_v11  ;;  %v405_v10 = vld [vmem:[%s7101_s6 + $0xb0] sm:$0x1] }
  0x52   : > { %v701_v27 = vor.u32 %v700_v14, %v697_v13  ;;  %v711_v28 = vor.u32 %v710_v18, %v706_v17  ;;  %v7306_v29 = vpack.c.b16 %v1031_v20, %v1030_v15  ;;  %v893_v30 = vor.u32 %v892_v21, %v889_v19 }
  0x53   : > { %v903_v31 = vor.u32 %v902_v23, %v898_v22  ;;  %v906_v32 = vshll.u32 %v402_v24, 16  ;;  %v716_v33 = vrot.slane %v714_v25, 5  ;;  %v719_v49 = vshrl.u32 %v379_v34, 16 }
  0x54   : > { %v702_v37 = vrot.slane %v701_v27, 4  ;;  %v712_v38 = vrot.slane %v711_v28, 4  ;;  %v894_v43 = vrot.slane %v893_v30, 4  ;;  %v722_v50 = vshll.u32 %v379_v34, 16  ;;  %v6496_v34 = vld [vmem:[%s9218_s1 + $0x8] sm:$0xff] }
  0x55   : > { %v904_v44 = vrot.slane %v903_v31, 4  ;;  %v908_v45 = vrot.slane %v906_v32, 5  ;;  %v728_v51 = vshll.u32 %v380_v35, 16  ;;  %v732_v53 = vshrl.u32 %v380_v35, 16  ;;  %v382_v31 = vld [vmem:[%s7101_s6 + $0x54] sm:$0xf]  ;;  %1687 = vmatpush.bf16.msrb.mxu3 %v6496_v34 }
  0x56   : > { %1288 = vmatmul.bf16.gmra.mxu0 %v7242_v54  ;;  %1328 = vmatmul.bf16.gmra.mxu2 %v7244_v55  ;;  %v911_v57 = vshrl.u32 %v403_v39, 16  ;;  %v914_v58 = vshll.u32 %v403_v39, 16  ;;  %v920_v59 = vshll.u32 %v404_v40, 16  ;;  %v924_v60 = vshrl.u32 %v404_v40, 16  ;;  %v383_v32 = vld [vmem:[%s7101_s6 + $0x58] sm:$0xf] }
  0x57   : > { %1377 = vmatmul.bf16.gmra.mxu1 %v7273_v41  ;;  %v707_v61 = vsel %vm7128_vm2, %v702_v37, %v706_v17  ;;  %v717_v62 = vsel %vm7128_vm2, %v712_v38, %v716_v33  ;;  %v899_v63 = vsel %vm7128_vm2, %v894_v43, %v898_v22  ;;  %v909_v0 = vsel %vm7128_vm2, %v904_v44, %v908_v45  ;;  %v6536_v33 = vld [vmem:[%s9218_s1 + $0x148] sm:$0xff]  ;;  %v406_v38 = vld [vmem:[%s7101_s6 + $0xb4] sm:$0xf]  ;;  %v407_v39 = vld [vmem:[%s7101_s6 + $0xb8] sm:$0xf] }
  0x58   : > { %v721_v2 = vrot.slane %v719_v49, 4  ;;  %v724_v3 = vrot.slane %v722_v50, 5  ;;  %v730_v4 = vrot.slane %v728_v51, 5  ;;  %v734_v56 = vrot.slane %v732_v53, 4  ;;  %v6504_v35 = vld [vmem:[%s9218_s1 + $0x48] sm:$0xff]  ;;  %v6518_v40 = vld [vmem:[%s9218_s1 + $0xb8] sm:$0xff]  ;;  %1454 = vmatpush.bf16.msrb.mxu2 %v6536_v33 }
  0x59   : > { %1417 = vmatmul.bf16.gmra.mxu3 %v7275_v42  ;;  %v913_v6 = vrot.slane %v911_v57, 4  ;;  %v916_v7 = vrot.slane %v914_v58, 5  ;;  %v922_v8 = vrot.slane %v920_v59, 5  ;;  %v926_v9 = vrot.slane %v924_v60, 4  ;;  %1776 = vmatpush.bf16.msrb.mxu0 %v6504_v35 }
  0x5a   : > { %v1016_v11 = vunpack.c.l.b16 %v707_v61  ;;  %v1017_v12 = vunpack.c.l.b16 %v717_v62  ;;  %v1032_v13 = vunpack.c.l.b16 %v899_v63  ;;  %v1033_v14 = vunpack.c.l.b16 %v909_v0  ;;  %1859 = vmatpush.bf16.msrb.mxu1 %v6518_v40 }
  0x5b   : > { %v725_v15 = vor.u32 %v724_v3, %v721_v2  ;;  %v738_v16 = vshll.u32 %v381_v5, 16  ;;  %v735_v17 = vor.u32 %v734_v56, %v730_v4  ;;  %v917_v18 = vor.u32 %v916_v7, %v913_v6  ;;  %v384_v3 = vld [vmem:[%s7101_s6 + $0x5c] sm:$0x1] }
  0x5c   : > { %v927_v19 = vor.u32 %v926_v9, %v922_v8  ;;  %v930_v20 = vshll.u32 %v405_v10, 16  ;;  %v7335_v21 = vpack.c.b16 %v1017_v12, %v1016_v11  ;;  %v7337_v22 = vpack.c.b16 %v1033_v14, %v1032_v13  ;;  %v408_v7 = vld [vmem:[%s7101_s6 + $0xbc] sm:$0x1] }
  0x5d   : > { %v726_v23 = vrot.slane %v725_v15, 4  ;;  %v740_v24 = vrot.slane %v738_v16, 5  ;;  %v736_v25 = vrot.slane %v735_v17, 4  ;;  %v918_v27 = vrot.slane %v917_v18, 4  ;;  %v6517_v18 = vld [vmem:[%s9218_s1 + $0xb0] sm:$0xff] }
  0x5e   : > { %v928_v28 = vrot.slane %v927_v19, 4  ;;  %v932_v30 = vrot.slane %v930_v20, 5  ;;  %v743_v46 = vshrl.u32 %v382_v31, 16  ;;  %v746_v47 = vshll.u32 %v382_v31, 16  ;;  %1860 = vmatpush.bf16.msrb.mxu1 %v6517_v18  ;;  %v409_v31 = vld [vmem:[%s7101_s6 + $0xc0] sm:$0xf] }
  0x5f   : > { %v731_v37 = vsel %vm7128_vm2, %v726_v23, %v730_v4  ;;  %v741_v43 = vsel %vm7128_vm2, %v736_v25, %v740_v24  ;;  %v923_v44 = vsel %vm7128_vm2, %v918_v27, %v922_v8  ;;  %v752_v48 = vshll.u32 %v383_v32, 16  ;;  %v6535_v25 = vld [vmem:[%s9218_s1 + $0x140] sm:$0xff] }
  0x60   : > { %v933_v45 = vsel %vm7128_vm2, %v928_v28, %v932_v30  ;;  %v756_v49 = vshrl.u32 %v383_v32, 16  ;;  %v935_v50 = vshrl.u32 %v406_v38, 16  ;;  %v938_v51 = vshll.u32 %v406_v38, 16  ;;  %v6495_v27 = vld [vmem:[%s9218_s1] sm:$0xff]  ;;  %v6516_v28 = vld [vmem:[%s9218_s1 + $0xa8] sm:$0xff]  ;;  %1455 = vmatpush.bf16.msrb.mxu2 %v6535_v25  ;;  %v6557_v25 = vld [vmem:[%s9218_s1 + $0x1f0] sm:$0xff] }
  0x61   : > { %v944_v53 = vshll.u32 %v407_v39, 16  ;;  %v948_v57 = vshrl.u32 %v407_v39, 16  ;;  %v1018_v58 = vunpack.c.l.b16 %v731_v37  ;;  %v1019_v59 = vunpack.c.l.b16 %v741_v43  ;;  %v6503_v30 = vld [vmem:[%s9218_s1 + $0x40] sm:$0xff]  ;;  %1688 = vmatpush.bf16.msrb.mxu3 %v6495_v27 }
  0x62   : > { %v1034_v60 = vunpack.c.l.b16 %v923_v44  ;;  %v1035_v61 = vunpack.c.l.b16 %v933_v45  ;;  %v745_v62 = vrot.slane %v743_v46, 4  ;;  %v748_v63 = vrot.slane %v746_v47, 5  ;;  %v410_v32 = vld [vmem:[%s7101_s6 + $0xc4] sm:$0xf]  ;;  %1777 = vmatpush.bf16.msrb.mxu0 %v6503_v30  ;;  %1861 = vmatpush.bf16.msrb.mxu1 %v6516_v28 }
  0x63   : > { %v754_v0 = vrot.slane %v752_v48, 5  ;;  %v758_v2 = vrot.slane %v756_v49, 4  ;;  %v937_v4 = vrot.slane %v935_v50, 4  ;;  %v940_v56 = vrot.slane %v938_v51, 5  ;;  %v6515_v44 = vld [vmem:[%s9218_s1 + $0xa0] sm:$0xff] }
  0x64   : > { %v946_v5 = vrot.slane %v944_v53, 5  ;;  %v950_v6 = vrot.slane %v948_v57, 4  ;;  %v7369_v8 = vpack.c.b16 %v1019_v59, %v1018_v58  ;;  %v7371_v9 = vpack.c.b16 %v1035_v61, %v1034_v60  ;;  %v411_v57 = vld [vmem:[%s7101_s6 + $0xc8] sm:$0x1]  ;;  %v6514_v58 = vld [vmem:[%s9218_s1 + $0x98] sm:$0xff]  ;;  %v6477_v18 = vld [vmem:[%s7101_s6] sm:$0xff] }
  0x65   : > { %v749_v10 = vor.u32 %v748_v63, %v745_v62  ;;  %v762_v11 = vshll.u32 %v384_v3, 16  ;;  %v759_v12 = vor.u32 %v758_v2, %v754_v0  ;;  %v941_v13 = vor.u32 %v940_v56, %v937_v4  ;;  %v6550_v2 = vld [vmem:[%s9218_s1 + $0x1b8] sm:$0xff] }
  0x66   : > { %1293 = vmatmul.bf16.gmra.mxu0 %v7273_v41  ;;  %1333 = vmatmul.bf16.gmra.mxu2 %v7275_v42  ;;  %v951_v14 = vor.u32 %v950_v6, %v946_v5  ;;  %v954_v15 = vshll.u32 %v408_v7, 16  ;;  %v959_v38 = vshrl.u32 %v409_v31, 16  ;;  %v962_v39 = vshll.u32 %v409_v31, 16  ;;  %v6558_v3 = vld [vmem:[%s9218_s1 + $0x1f8] sm:$0xff]  ;;  %v6512_v6 = vld [vmem:[%s9218_s1 + $0x88] sm:$0xff] }
  0x67   : > { %1382 = vmatmul.bf16.gmra.mxu1 %v7304_v26  ;;  %v750_v16 = vrot.slane %v749_v10, 4  ;;  %v764_v17 = vrot.slane %v762_v11, 5  ;;  %v760_v19 = vrot.slane %v759_v12, 4  ;;  %v942_v20 = vrot.slane %v941_v13, 4  ;;  %2359 = vmatpush.bf16.msra.mxu2 %v6550_v2  ;;  %v6566_v11 = vld [vmem:[%s9218_s1 + $0x238] sm:$0xff]  ;;  %v6511_v12 = vld [vmem:[%s9218_s1 + $0x80] sm:$0xff] }
  0x68   : > { %v952_v23 = vrot.slane %v951_v14, 4  ;;  %v956_v24 = vrot.slane %v954_v15, 5  ;;  %v968_v40 = vshll.u32 %v410_v32, 16  ;;  %v972_v43 = vshrl.u32 %v410_v32, 16  ;;  %1862 = vmatpush.bf16.msrb.mxu1 %v6515_v44  ;;  %2448 = vmatpush.bf16.msra.mxu3 %v6558_v3 }
  0x69   : > { %1422 = vmatmul.bf16.gmra.mxu3 %v7306_v29  ;;  %v755_v33 = vsel %vm7128_vm2, %v750_v16, %v754_v0  ;;  %v765_v34 = vsel %vm7128_vm2, %v760_v19, %v764_v17  ;;  %v947_v35 = vsel %vm7128_vm2, %v942_v20, %v946_v5  ;;  %v961_v49 = vrot.slane %v959_v38, 4  ;;  %v6513_v0 = vld [vmem:[%s9218_s1 + $0x90] sm:$0xff]  ;;  %2537 = vmatpush.bf16.msra.mxu0 %v6566_v11  ;;  %v6479_v19 = vld [vmem:[%s7101_s6 + $0x18] sm:$0xff] }
  0x6a   : > { %v957_v37 = vsel %vm7128_vm2, %v952_v23, %v956_v24  ;;  %v1020_v45 = vunpack.c.l.b16 %v755_v33  ;;  %v1021_v46 = vunpack.c.l.b16 %v765_v34  ;;  %v1036_v47 = vunpack.c.l.b16 %v947_v35  ;;  %v6478_v16 = vld [vmem:[%s7101_s6 + $0xc] sm:$0xff] }
  0x6b   : > { %v1037_v48 = vunpack.c.l.b16 %v957_v37  ;;  %v964_v50 = vrot.slane %v962_v39, 5  ;;  %v970_v51 = vrot.slane %v968_v40, 5  ;;  %v974_v53 = vrot.slane %v972_v43, 4  ;;  %v6549_v24 = vld [vmem:[%s9218_s1 + $0x1b0] sm:$0xff]  ;;  %v6480_v39 = vld [vmem:[%s7101_s6 + $0x24] sm:$0xff] }
  0x6c   : > { %v7409_v59 = vpack.c.b16 %v1021_v46, %v1020_v45  ;;  %v978_v63 = vshll.u32 %v411_v57, 16  ;;  %1863 = vmatpush.bf16.msrb.mxu1 %v6514_v58  ;;  %2360 = vmatpush.bf16.msra.mxu2 %v6549_v24  ;;  %v6565_v33 = vld [vmem:[%s9218_s1 + $0x230] sm:$0xff] }
  0x6d   : > { %v7411_v60 = vpack.c.b16 %v1037_v48, %v1036_v47  ;;  %v965_v61 = vor.u32 %v964_v50, %v961_v49  ;;  %v975_v62 = vor.u32 %v974_v53, %v970_v51  ;;  %2449 = vmatpush.bf16.msra.mxu3 %v6557_v25  ;;  %2538 = vmatpush.bf16.msra.mxu0 %v6565_v33  ;;  %v6481_v58 = vld [vmem:[%s7101_s6 + $0x30] sm:$0xff] }
  0x6e   : > { %v980_v5 = vrot.slane %v978_v63, 5  ;;  %v6556_v63 = vld [vmem:[%s9218_s1 + $0x1e8] sm:$0xff] }
  0x6f   : > { %v966_v4 = vrot.slane %v965_v61, 4  ;;  %v976_v56 = vrot.slane %v975_v62, 4 }
  0x70   : > { %1864 = vmatpush.bf16.msrb.mxu1 %v6513_v0 }
  0x71   : > { %v971_v7 = vsel %vm7128_vm2, %v966_v4, %v970_v51  ;;  %v981_v10 = vsel %vm7128_vm2, %v976_v56, %v980_v5  ;;  %2450 = vmatpush.bf16.msra.mxu3 %v6556_v63  ;;  %v6564_v5 = vld [vmem:[%s9218_s1 + $0x228] sm:$0xff] }
  0x72   : > { %v1070_v13 = vunpack.c.l.b16 %v971_v7  ;;  %v1071_v14 = vunpack.c.l.b16 %v981_v10  ;;  %2539 = vmatpush.bf16.msra.mxu0 %v6564_v5 }
  0x74   : > { %1865 = vmatpush.bf16.msrb.mxu1 %v6512_v6  ;;  %v7439_v15 = vpack.c.b16 %v1071_v14, %v1070_v13 }
  0x76   : > { %1298 = vmatmul.bf16.gmra.mxu0 %v7304_v26  ;;  %1338 = vmatmul.bf16.gmra.mxu2 %v7306_v29 }
  0x77   : > { %1387 = vmatmul.bf16.gmra.mxu1 %v7335_v21 }
  0x78   : > { %1866 = vmatpush.bf16.msrb.mxu1 %v6511_v12  ;;  %v6482_v12 = vld [vmem:[%s7101_s6 + $0x3c] sm:$0xff] }
  0x79   : > { %1427 = vmatmul.bf16.gmra.mxu3 %v7337_v22 }
  0x86   : > { %1303 = vmatmul.bf16.gmra.mxu0 %v7335_v21  ;;  %1343 = vmatmul.bf16.gmra.mxu2 %v7337_v22 }
  0x87   : > { %1392 = vmatmul.bf16.gmra.mxu1 %v7369_v8 }
  0x89   : > { %1432 = vmatmul.bf16.gmra.mxu3 %v7371_v9 }
  0x96   : > { %1308 = vmatmul.bf16.gmra.mxu0 %v7369_v8  ;;  %1348 = vmatmul.bf16.gmra.mxu2 %v7371_v9 }
  0x97   : > { %1397 = vmatmul.bf16.gmra.mxu1 %v7409_v59 }
  0x99   : > { %1437 = vmatmul.bf16.gmra.mxu3 %v7411_v60 }
  0xa6   : > { %1313 = vmatmul.bf16.gmra.mxu0 %v7409_v59  ;;  %1353 = vmatmul.bf16.gmra.mxu2 %v7411_v60 }
  0xa7   : > { %1402 = vmatmul.bf16.gmra.mxu1 %v7193_v52 }
  0xa9   : > { %1442 = vmatmul.bf16.gmra.mxu3 %v7439_v15 }
  0xb3   : > { %v1279_v17 = vpop.f32.mrf.mxu0 }
  0xb4   : > { %v1368_v20 = vpop.f32.mrf.mxu1 }
  0xb5   : > { %v7448_v23 = vadd.f32 %v1368_v20, %v1279_v17 }
  0xb6   : > { %1456 = vmatmul.bf16.vlgmr.msrb.gmra.mxu2 %v7242_v54  ;;  %1778 = vmatmul.bf16.vlgmr.msrb.gmra.mxu0 %v6478_v16 }
  0xb7   : > { %1867 = vmatmul.bf16.vlgmr.msrb.gmra.mxu1 %v6479_v19 }
  0xb9   : > { %1689 = vmatmul.bf16.vlgmr.msrb.gmra.mxu3 %v6477_v18  ;;  %v1319_v27 = vpop.f32.mrf.mxu2 }
  0xbb   : > { %v1281_v31 = vpop.f32.mrf.mxu0 }
  0xbc   : > { %v1408_v28 = vpop.f32.mrf.mxu3  ;;  %v1370_v54 = vpop.f32.mrf.mxu1 }
  0xbd   : > { %v7457_v30 = vadd.f32 %v1408_v28, %v1319_v27  ;;  %v7459_v32 = vadd.f32 %v1370_v54, %v1281_v31  ;;  %v6483_v54 = vld [vmem:[%s7101_s6 + $0x48] sm:$0xff] }
  0xc1   : > { %v1321_v34 = vpop.f32.mrf.mxu2 }
  0xc3   : > { %v1284_v38 = vpop.f32.mrf.mxu0 }
  0xc4   : > { %v1410_v35 = vpop.f32.mrf.mxu3  ;;  %v1373_v40 = vpop.f32.mrf.mxu1 }
  0xc5   : > { %v7464_v37 = vadd.f32 %v1410_v35, %v1321_v34  ;;  %v7467_v43 = vadd.f32 %v1373_v40, %v1284_v38  ;;  %v6555_v35 = vld [vmem:[%s9218_s1 + $0x1e0] sm:$0xff] }
  0xc6   : > { %1461 = vmatmul.bf16.gmra.mxu2 %v7273_v41  ;;  %1783 = vmatmul.bf16.gmra.mxu0 %v6479_v19  ;;  %v6548_v41 = vld [vmem:[%s9218_s1 + $0x1a8] sm:$0xff] }
  0xc7   : > { %1872 = vmatmul.bf16.gmra.mxu1 %v6480_v39  ;;  %2361 = vmatpush.bf16.msra.mxu2 %v6548_v41 }
  0xc8   : > { %2451 = vmatpush.bf16.msra.mxu3 %v6555_v35 }
  0xc9   : > { %1694 = vmatmul.bf16.gmra.mxu3 %v6478_v16  ;;  %v1324_v44 = vpop.f32.mrf.mxu2 }
  0xcb   : > { %v1286_v47 = vpop.f32.mrf.mxu0 }
  0xcc   : > { %v1413_v45 = vpop.f32.mrf.mxu3  ;;  %v1375_v48 = vpop.f32.mrf.mxu1 }
  0xcd   : > { %v7470_v46 = vadd.f32 %v1413_v45, %v1324_v44  ;;  %v7472_v49 = vadd.f32 %v1375_v48, %v1286_v47  ;;  %v6563_v47 = vld [vmem:[%s9218_s1 + $0x220] sm:$0xff] }
  0xce   : > { %2540 = vmatpush.bf16.msra.mxu0 %v6563_v47 }
  0xd1   : > { %v1326_v50 = vpop.f32.mrf.mxu2 }
  0xd3   : > { %v1289_v57 = vpop.f32.mrf.mxu0 }
  0xd4   : > { %v1415_v51 = vpop.f32.mrf.mxu3  ;;  %v1378_v61 = vpop.f32.mrf.mxu1 }
  0xd5   : > { %v7474_v53 = vadd.f32 %v1415_v51, %v1326_v50  ;;  %v7477_v62 = vadd.f32 %v1378_v61, %v1289_v57 }
  0xd6   : > { %1466 = vmatmul.bf16.gmra.mxu2 %v7304_v26  ;;  %1788 = vmatmul.bf16.gmra.mxu0 %v6480_v39 }
  0xd7   : > { %1877 = vmatmul.bf16.gmra.mxu1 %v6481_v58 }
  0xd9   : > { %1699 = vmatmul.bf16.gmra.mxu3 %v6479_v19  ;;  %v1329_v0 = vpop.f32.mrf.mxu2 }
  0xdb   : > { %v1291_v4 = vpop.f32.mrf.mxu0 }
  0xdc   : > { %v1418_v2 = vpop.f32.mrf.mxu3  ;;  %v1380_v26 = vpop.f32.mrf.mxu1 }
  0xdd   : > { %v7486_v3 = vadd.f32 %v1418_v2, %v1329_v0  ;;  %v7488_v56 = vadd.f32 %v1380_v26, %v1291_v4 }
  0xe1   : > { %v1331_v6 = vpop.f32.mrf.mxu2 }
  0xe3   : > { %v1294_v11 = vpop.f32.mrf.mxu0 }
  0xe4   : > { %v1420_v7 = vpop.f32.mrf.mxu3  ;;  %v1383_v13 = vpop.f32.mrf.mxu1 }
  0xe5   : > { %v7493_v10 = vadd.f32 %v1420_v7, %v1331_v6  ;;  %v7496_v14 = vadd.f32 %v1383_v13, %v1294_v11 }
  0xe6   : > { %1471 = vmatmul.bf16.gmra.mxu2 %v7335_v21  ;;  %1793 = vmatmul.bf16.gmra.mxu0 %v6481_v58  ;;  %v6547_v21 = vld [vmem:[%s9218_s1 + $0x1a0] sm:$0xff] }
  0xe7   : > { %1882 = vmatmul.bf16.gmra.mxu1 %v6482_v12  ;;  %2362 = vmatpush.bf16.msra.mxu2 %v6547_v21 }
  0xe9   : > { %1704 = vmatmul.bf16.gmra.mxu3 %v6480_v39  ;;  %v1334_v16 = vpop.f32.mrf.mxu2 }
  0xeb   : > { %v1296_v19 = vpop.f32.mrf.mxu0 }
  0xec   : > { %v1423_v17 = vpop.f32.mrf.mxu3  ;;  %v1385_v20 = vpop.f32.mrf.mxu1 }
  0xed   : > { %v7499_v18 = vadd.f32 %v1423_v17, %v1334_v16  ;;  %v7501_v24 = vadd.f32 %v1385_v20, %v1296_v19  ;;  %v6485_v16 = vld [vmem:[%s7101_s6 + $0x60] sm:$0xff] }
  0xf1   : > { %v1336_v25 = vpop.f32.mrf.mxu2 }
  0xf3   : > { %v1299_v31 = vpop.f32.mrf.mxu0 }
  0xf4   : > { %v1425_v27 = vpop.f32.mrf.mxu3  ;;  %v1388_v33 = vpop.f32.mrf.mxu1 }
  0xf5   : > { %v7503_v28 = vadd.f32 %v1425_v27, %v1336_v25  ;;  %v7506_v34 = vadd.f32 %v1388_v33, %v1299_v31 }
  0xf6   : > { %1476 = vmatmul.bf16.gmra.mxu2 %v7369_v8  ;;  %1798 = vmatmul.bf16.gmra.mxu0 %v6482_v12 }
  0xf7   : > { %1887 = vmatmul.bf16.gmra.mxu1 %v6483_v54 }
  0xf9   : > { %1709 = vmatmul.bf16.gmra.mxu3 %v6481_v58  ;;  %v1339_v38 = vpop.f32.mrf.mxu2  ;;  %v6484_v58 = vld [vmem:[%s7101_s6 + $0x54] sm:$0xff] }
  0xfb   : > { %v1301_v44 = vpop.f32.mrf.mxu0 }
  0xfc   : > { %v1428_v39 = vpop.f32.mrf.mxu3  ;;  %v1390_v8 = vpop.f32.mrf.mxu1 }
  0xfd   : > { %v7515_v40 = vadd.f32 %v1428_v39, %v1339_v38  ;;  %v7517_v45 = vadd.f32 %v1390_v8, %v1301_v44  ;;  %v6486_v44 = vld [vmem:[%s7101_s6 + $0x6c] sm:$0xff] }
 0x101   : > { %v1341_v48 = vpop.f32.mrf.mxu2 }
 0x103   : > { %v1304_v57 = vpop.f32.mrf.mxu0 }
 0x104   : > { %v1430_v50 = vpop.f32.mrf.mxu3  ;;  %v1393_v61 = vpop.f32.mrf.mxu1 }
 0x105   : > { %v7522_v51 = vadd.f32 %v1430_v50, %v1341_v48  ;;  %v7525_v41 = vadd.f32 %v1393_v61, %v1304_v57 }
 0x106   : > { %1481 = vmatmul.bf16.gmra.mxu2 %v7409_v59  ;;  %1803 = vmatmul.bf16.gmra.mxu0 %v6483_v54  ;;  %v6546_v59 = vld [vmem:[%s9218_s1 + $0x198] sm:$0xff] }
 0x107   : > { %1892 = vmatmul.bf16.gmra.mxu1 %v6484_v58  ;;  %2363 = vmatpush.bf16.msra.mxu2 %v6546_v59 }
 0x109   : > { %1714 = vmatmul.bf16.gmra.mxu3 %v6482_v12  ;;  %v1344_v63 = vpop.f32.mrf.mxu2  ;;  %v6554_v12 = vld [vmem:[%s9218_s1 + $0x1d8] sm:$0xff] }
 0x10a   : > { %2452 = vmatpush.bf16.msra.mxu3 %v6554_v12 }
 0x10b   : > { %v1306_v4 = vpop.f32.mrf.mxu0 }
 0x10c   : > { %v1433_v0 = vpop.f32.mrf.mxu3  ;;  %v1395_v26 = vpop.f32.mrf.mxu1 }
 0x10d   : > { %v7528_v2 = vadd.f32 %v1433_v0, %v1344_v63  ;;  %v7530_v5 = vadd.f32 %v1395_v26, %v1306_v4 }
 0x111   : > { %v1346_v6 = vpop.f32.mrf.mxu2 }
 0x113   : > { %v1309_v13 = vpop.f32.mrf.mxu0 }
 0x114   : > { %v1435_v7 = vpop.f32.mrf.mxu3  ;;  %v1398_v17 = vpop.f32.mrf.mxu1 }
 0x115   : > { %v7532_v11 = vadd.f32 %v1435_v7, %v1346_v6  ;;  %v7535_v19 = vadd.f32 %v1398_v17, %v1309_v13  ;;  %v6487_v13 = vld [vmem:[%s7101_s6 + $0x78] sm:$0xff] }
 0x116   : > { %1486 = vmatmul.bf16.gmra.mxu2 %v7193_v52  ;;  %1808 = vmatmul.bf16.gmra.mxu0 %v6484_v58 }
 0x117   : > { %1897 = vmatmul.bf16.gmra.mxu1 %v6485_v16 }
 0x119   : > { %1719 = vmatmul.bf16.gmra.mxu3 %v6483_v54  ;;  %v1349_v20 = vpop.f32.mrf.mxu2  ;;  %v6562_v54 = vld [vmem:[%s9218_s1 + $0x218] sm:$0xff] }
 0x11a   : > { %2541 = vmatpush.bf16.msra.mxu0 %v6562_v54 }
 0x11b   : > { %v1311_v31 = vpop.f32.mrf.mxu0 }
 0x11c   : > { %v1438_v25 = vpop.f32.mrf.mxu3  ;;  %v1400_v52 = vpop.f32.mrf.mxu1 }
 0x11d   : > { %v7544_v27 = vadd.f32 %v1438_v25, %v1349_v20  ;;  %v7549_v33 = vadd.f32 %v1400_v52, %v1311_v31  ;;  %v6561_v52 = vld [vmem:[%s9218_s1 + $0x210] sm:$0xff] }
 0x11e   : > { %2542 = vmatpush.bf16.msra.mxu0 %v6561_v52 }
 0x121   : > { %v1351_v21 = vpop.f32.mrf.mxu2 }
 0x123   : > { %v1314_v39 = vpop.f32.mrf.mxu0 }
 0x124   : > { %v1440_v35 = vpop.f32.mrf.mxu3  ;;  %v1403_v8 = vpop.f32.mrf.mxu1 }
 0x125   : > { %v7551_v38 = vadd.f32 %v1440_v35, %v1351_v21  ;;  %v7554_v47 = vadd.f32 %v1403_v8, %v1314_v39 }
 0x126   : > { %1491 = vmatmul.bf16.gmra.mxu2 %v7204_v1  ;;  %1813 = vmatmul.bf16.gmra.mxu0 %v6485_v16  ;;  %v6545_v1 = vld [vmem:[%s9218_s1 + $0x190] sm:$0xff] }
 0x127   : > { %1902 = vmatmul.bf16.gmra.mxu1 %v6486_v44  ;;  %2364 = vmatpush.bf16.msra.mxu2 %v6545_v1 }
 0x129   : > { %1724 = vmatmul.bf16.gmra.mxu3 %v6484_v58  ;;  %v1354_v48 = vpop.f32.mrf.mxu2  ;;  %v6553_v58 = vld [vmem:[%s9218_s1 + $0x1d0] sm:$0xff] }
 0x12a   : > { %2453 = vmatpush.bf16.msra.mxu3 %v6553_v58 }
 0x12b   : > { %v1316_v61 = vpop.f32.mrf.mxu0 }
 0x12c   : > { %v1443_v50 = vpop.f32.mrf.mxu3  ;;  %v1405_v63 = vpop.f32.mrf.mxu1 }
 0x12d   : > { %v7557_v57 = vadd.f32 %v1443_v50, %v1354_v48  ;;  %v7559_v0 = vadd.f32 %v1405_v63, %v1316_v61 }
 0x131   : > { %v1356_v4 = vpop.f32.mrf.mxu2 }
 0x133   : > { %v1779_v7 = vpop.f32.mrf.mxu0 }
 0x134   : > { %v1445_v26 = vpop.f32.mrf.mxu3  ;;  %v1868_v17 = vpop.f32.mrf.mxu1 }
 0x135   : > { %v7561_v6 = vadd.f32 %v1445_v26, %v1356_v4 }
 0x136   : > { %1496 = vmatmul.bf16.gmra.mxu2 %v7244_v55  ;;  %1818 = vmatmul.bf16.gmra.mxu0 %v6486_v44 }
 0x137   : > { %1907 = vmatmul.bf16.gmra.mxu1 %v6487_v13 }
 0x139   : > { %1729 = vmatmul.bf16.gmra.mxu3 %v6485_v16  ;;  %v1457_v59 = vpop.f32.mrf.mxu2  ;;  %v6616_v16 = vld [vmem:[#allocation3 + $0xf8] sm:$0xff] }
 0x13a   : > { %v1458_v12 = vadd.f32 %v1457_v59, %v7448_v23  ;;  %4101 = vmatpush.bf16.msra.mxu1 %v6616_v16  ;;  %v6488_v23 = vld [vmem:[%s7101_s6 + $0x84] sm:$0xff]  ;;  %v6489_v16 = vld [vmem:[%s7101_s6 + $0x90] sm:$0xff] }
 0x13b   : > { %v1781_v25 = vpop.f32.mrf.mxu0 }
 0x13c   : > { %v1690_v20 = vpop.f32.mrf.mxu3  ;;  %v1870_v31 = vpop.f32.mrf.mxu1 }
 0x13d   : > { %v1691_v55 = vadd.f32 %v1690_v20, %v1458_v12 }
 0x13f   : > { %v1780_v54 = vadd.f32 %v1779_v7, %v1691_v55 }
 0x141   : > { %v7575_v21 = vadd.f32 %v1868_v17, %v1780_v54  ;;  %v1459_v35 = vpop.f32.mrf.mxu2  ;;  %v6552_v54 = vld [vmem:[%s9218_s1 + $0x1c8] sm:$0xff] }
 0x142   : > { %v1460_v39 = vadd.f32 %v1459_v35, %v7459_v32  ;;  %2454 = vmatpush.bf16.msra.mxu3 %v6552_v54 }
 0x143   : > { %v1784_v48 = vpop.f32.mrf.mxu0 }
 0x144   : > { %v1692_v8 = vpop.f32.mrf.mxu3  ;;  %v1873_v61 = vpop.f32.mrf.mxu1 }
 0x145   : > { %v1693_v50 = vadd.f32 %v1692_v8, %v1460_v39 }
 0x146   : > { %1501 = vmatmul.bf16.gmra.mxu2 %v7275_v42  ;;  %1823 = vmatmul.bf16.gmra.mxu0 %v6487_v13 }
 0x147   : > { %v1782_v63 = vadd.f32 %v1781_v25, %v1693_v50  ;;  %1912 = vmatmul.bf16.gmra.mxu1 %v6488_v23  ;;  %v6615_v50 = vld [vmem:[#allocation3 + $0xf0] sm:$0xff] }
 0x148   : > { %4102 = vmatpush.bf16.msra.mxu1 %v6615_v50 }
 0x149   : > { %1734 = vmatmul.bf16.gmra.mxu3 %v6486_v44  ;;  %v7580_v4 = vadd.f32 %v1870_v31, %v1782_v63  ;;  %v1462_v26 = vpop.f32.mrf.mxu2 }
 0x14a   : > { %v1463_v7 = vadd.f32 %v1462_v26, %v7467_v43  ;;  %v6544_v43 = vld [vmem:[%s9218_s1 + $0x188] sm:$0xff] }
 0x14b   : > { %v1786_v1 = vpop.f32.mrf.mxu0  ;;  %2365 = vmatpush.bf16.msra.mxu2 %v6544_v43 }
 0x14c   : > { %v1695_v17 = vpop.f32.mrf.mxu3  ;;  %v1875_v58 = vpop.f32.mrf.mxu1 }
 0x14d   : > { %v1696_v32 = vadd.f32 %v1695_v17, %v1463_v7 }
 0x14f   : > { %v1785_v59 = vadd.f32 %v1784_v48, %v1696_v32 }
 0x151   : > { %v7583_v12 = vadd.f32 %v1873_v61, %v1785_v59  ;;  %v1464_v20 = vpop.f32.mrf.mxu2  ;;  %v6560_v61 = vld [vmem:[%s9218_s1 + $0x208] sm:$0xff] }
 0x152   : > { %v1465_v42 = vadd.f32 %v1464_v20, %v7472_v49  ;;  %2543 = vmatpush.bf16.msra.mxu0 %v6560_v61 }
 0x153   : > { %v1789_v25 = vpop.f32.mrf.mxu0 }
 0x154   : > { %v1697_v55 = vpop.f32.mrf.mxu3  ;;  %v1878_v52 = vpop.f32.mrf.mxu1 }
 0x155   : > { %v1698_v44 = vadd.f32 %v1697_v55, %v1465_v42 }
 0x156   : > { %1506 = vmatmul.bf16.gmra.mxu2 %v7306_v29  ;;  %1828 = vmatmul.bf16.gmra.mxu0 %v6488_v23 }
 0x157   : > { %v1787_v31 = vadd.f32 %v1786_v1, %v1698_v44  ;;  %1917 = vmatmul.bf16.gmra.mxu1 %v6489_v16 }
 0x159   : > { %1739 = vmatmul.bf16.gmra.mxu3 %v6487_v13  ;;  %v7594_v49 = vadd.f32 %v1875_v58, %v1787_v31  ;;  %v1467_v35 = vpop.f32.mrf.mxu2 }
 0x15a   : > { %v1468_v29 = vadd.f32 %v1467_v35, %v7477_v62  ;;  %v6490_v62 = vld [vmem:[%s7101_s6 + $0x9c] sm:$0xff] }
 0x15b   : > { %v1791_v8 = vpop.f32.mrf.mxu0 }
 0x15c   : > { %v1700_v39 = vpop.f32.mrf.mxu3  ;;  %v1880_v48 = vpop.f32.mrf.mxu1 }
 0x15d   : > { %v1701_v13 = vadd.f32 %v1700_v39, %v1468_v29 }
 0x15f   : > { %v1790_v63 = vadd.f32 %v1789_v25, %v1701_v13 }
 0x161   : > { %v7600_v26 = vadd.f32 %v1878_v52, %v1790_v63  ;;  %v1469_v7 = vpop.f32.mrf.mxu2 }
 0x162   : > { %v1470_v17 = vadd.f32 %v1469_v7, %v7488_v56 }
 0x163   : > { %v1794_v32 = vpop.f32.mrf.mxu0 }
 0x164   : > { %v1702_v1 = vpop.f32.mrf.mxu3  ;;  %v1883_v59 = vpop.f32.mrf.mxu1 }
 0x165   : > { %v1703_v58 = vadd.f32 %v1702_v1, %v1470_v17  ;;  %v6614_v1 = vld [vmem:[#allocation3 + $0xe8] sm:$0xff] }
 0x166   : > { %1511 = vmatmul.bf16.gmra.mxu2 %v7337_v22  ;;  %1833 = vmatmul.bf16.gmra.mxu0 %v6489_v16 }
 0x167   : > { %v1792_v20 = vadd.f32 %v1791_v8, %v1703_v58  ;;  %1922 = vmatmul.bf16.gmra.mxu1 %v6490_v62  ;;  %v7612_v8 = vld [vmem:[%s7101_s6 + $0xa8] sm:$0xff] }
 0x168   : > { %4103 = vmatpush.bf16.msra.mxu1 %v6614_v1 }
 0x169   : > { %1744 = vmatmul.bf16.gmra.mxu3 %v6488_v23  ;;  %v7605_v42 = vadd.f32 %v1880_v48, %v1792_v20  ;;  %v1472_v55 = vpop.f32.mrf.mxu2  ;;  %v6543_v48 = vld [vmem:[%s9218_s1 + $0x180] sm:$0xff] }
 0x16a   : > { %v1473_v25 = vadd.f32 %v1472_v55, %v7496_v14  ;;  %2366 = vmatpush.bf16.msra.mxu2 %v6543_v48 }
 0x16b   : > { %v1796_v52 = vpop.f32.mrf.mxu0 }
 0x16c   : > { %v1705_v44 = vpop.f32.mrf.mxu3  ;;  %v1885_v31 = vpop.f32.mrf.mxu1 }
 0x16d   : > { %v1706_v56 = vadd.f32 %v1705_v44, %v1473_v25  ;;  %v7634_v44 = vld [vmem:[%s7101_s6 + $0xb4] sm:$0xff] }
 0x16f   : > { %v1795_v43 = vadd.f32 %v1794_v32, %v1706_v56  ;;  %v6559_v32 = vld [vmem:[%s9218_s1 + $0x200] sm:$0xff] }
 0x170   : > { %2544 = vmatpush.bf16.msra.mxu0 %v6559_v32 }
 0x171   : > { %v7608_v54 = vadd.f32 %v1883_v59, %v1795_v43  ;;  %v1474_v35 = vpop.f32.mrf.mxu2  ;;  %v412_v43 = vld [vmem:[%s7101_s6 + $0xcc] sm:$0xf] }
 0x172   : > { %v1475_v22 = vadd.f32 %v1474_v35, %v7501_v24  ;;  %v6551_v24 = vld [vmem:[%s9218_s1 + $0x1c0] sm:$0xff]  ;;  %v413_v35 = vld [vmem:[%s7101_s6 + $0xd0] sm:$0xf] }
 0x173   : > { %9241 = vst [vmem:[#allocation9_spill] sm:$0xff] %v7608_v54  ;;  %v1799_v39 = vpop.f32.mrf.mxu0  ;;  %2455 = vmatpush.bf16.msra.mxu3 %v6551_v24  ;;  %v6828_v24 = vld [vmem:[%s7101_s6 + $0x10] sm:$0xf] }
 0x174   : > { %v1707_v29 = vpop.f32.mrf.mxu3  ;;  %v1888_v13 = vpop.f32.mrf.mxu1 }
 0x175   : > { %v1708_v23 = vadd.f32 %v1707_v29, %v1475_v22  ;;  %v983_v22 = vshrl.u32 %v412_v43, 16  ;;  %v986_v29 = vshll.u32 %v412_v43, 16 }
 0x176   : > { %1516 = vmatmul.bf16.gmra.mxu2 %v7371_v9  ;;  %1838 = vmatmul.bf16.gmra.mxu0 %v6490_v62 }
 0x177   : > { %v1797_v14 = vadd.f32 %v1796_v52, %v1708_v23  ;;  %1927 = vmatmul.bf16.gmra.mxu1 %v7612_v8  ;;  %v996_v23 = vshrl.u32 %v413_v35, 16 }
 0x179   : > { %1749 = vmatmul.bf16.gmra.mxu3 %v6489_v16  ;;  %v7622_v50 = vadd.f32 %v1885_v31, %v1797_v14  ;;  %v1477_v61 = vpop.f32.mrf.mxu2 }
 0x17a   : > { %v1478_v9 = vadd.f32 %v1477_v61, %v7506_v34  ;;  %v1976_v61 = vrot.slane %v6828_v24, 5  ;;  %v414_v24 = vld [vmem:[%s7101_s6 + $0xd4] sm:$0x1] }
 0x17b   : > { %9242 = vst [vmem:[#allocation10_spill] sm:$0xff] %v7622_v50  ;;  %v1801_v16 = vpop.f32.mrf.mxu0  ;;  %v6835_v50 = vld [vmem:[%s7101_s6 + $0x20] sm:$0x1] }
 0x17c   : > { %v1710_v63 = vpop.f32.mrf.mxu3  ;;  %v7625_v17 = vpop.f32.mrf.mxu1 }
 0x17d   : > { %v1711_v7 = vadd.f32 %v1710_v63, %v1478_v9  ;;  %v6829_v63 = vld [vmem:[%s7101_s6] sm:$0xf] }
 0x17f   : > { %v1800_v58 = vadd.f32 %v1799_v39, %v1711_v7  ;;  %v992_v39 = vshll.u32 %v413_v35, 16  ;;  %v6832_v35 = vld [vmem:[%s7101_s6 + $0xc] sm:$0xf] }
 0x181   : > { %v7630_v59 = vadd.f32 %v1888_v13, %v1800_v58  ;;  %v1479_v20 = vpop.f32.mrf.mxu2  ;;  %v6827_v13 = vld [vmem:[%s7101_s6 + $0x4] sm:$0xf]  ;;  %v985_v58 = vrot.slane %v983_v22, 4 }
 0x182   : > { %v1480_v34 = vadd.f32 %v1479_v20, %v7517_v45  ;;  %v1969_v14 = vrot.slane %v6827_v13, 5  ;;  %v988_v20 = vrot.slane %v986_v29, 5 }
 0x183   : > { %9243 = vst [vmem:[#allocation11_spill] sm:$0xff] %v7630_v59  ;;  %v1804_v25 = vpop.f32.mrf.mxu0  ;;  %v6833_v59 = vld [vmem:[%s7101_s6 + $0x14] sm:$0x1] }
 0x184   : > { %v1712_v55 = vpop.f32.mrf.mxu3  ;;  %v1893_v56 = vpop.f32.mrf.mxu1 }
 0x185   : > { %v1713_v52 = vadd.f32 %v1712_v55, %v1480_v34  ;;  %v998_v34 = vrot.slane %v996_v23, 4  ;;  %v1971_v55 = vrot.slane %v1969_v14, 4  ;;  %v989_v23 = vor.u32 %v988_v20, %v985_v58  ;;  %v6493_v20 = vld [vmem:[%s7101_s6 + $0xc0] sm:$0xff] }
 0x186   : > { %1521 = vmatmul.bf16.gmra.mxu2 %v7411_v60  ;;  %1843 = vmatmul.bf16.gmra.mxu0 %v7612_v8 }
 0x187   : > { %v7638_v31 = vadd.f32 %v1801_v16, %v1713_v52  ;;  %1932 = vmatmul.bf16.gmra.mxu1 %v7634_v44  ;;  %v6830_v16 = vld [vmem:[%s7101_s6 + $0x1c] sm:$0xf]  ;;  %v6831_v52 = vld [vmem:[%s7101_s6 + $0x8] sm:$0x1] }
 0x188   : > { %v1983_v7 = vrot.slane %v6830_v16, 5  ;;  %v1972_v43 = vrot.slane %v6831_v52, 5  ;;  %v1979_v16 = vrot.slane %v6833_v59, 5 }
 0x189   : > { %1754 = vmatmul.bf16.gmra.mxu3 %v6490_v62  ;;  %v1482_v45 = vpop.f32.mrf.mxu2  ;;  %v5980_v62 = vrot.slane %v6829_v63, 9  ;;  %v1978_v63 = vrot.slane %v1976_v61, 4 }
 0x18a   : > { %v1483_v60 = vadd.f32 %v1482_v45, %v7525_v41  ;;  %v7650_v41 = vrot.slane %v992_v39, 5  ;;  %v5981_v45 = vrot.slane %v6832_v35, 9  ;;  %v1985_v22 = vrot.slane %v1983_v7, 4 }
 0x18b   : > { %v1806_v9 = vpop.f32.mrf.mxu0  ;;  %v1002_v35 = vshll.u32 %v414_v24, 16 }
 0x18c   : > { %v1715_v48 = vpop.f32.mrf.mxu3  ;;  %v7648_v32 = vpop.f32.mrf.mxu1  ;;  %v999_v52 = vor.u32 %v998_v34, %v7650_v41 }
 0x18d   : > { %v1716_v1 = vadd.f32 %v1715_v48, %v1483_v60  ;;  %9244 = vst [vmem:[#allocation12_spill] sm:$0xff] %v7648_v32  ;;  %v6834_v60 = vld [vmem:[%s7101_s6 + $0x18] sm:$0xf]  ;;  %v1986_v32 = vrot.slane %v6835_v50, 5  ;;  %v1970_v50 = vsel %vm7661_vm5, %v5980_v62, %v1969_v14 }
 0x18e   : > { %v5982_v48 = vrot.slane %v6834_v60, 9  ;;  %v2095_v34 = vunpack.c.l.b16 %v1970_v50  ;;  %v1980_v60 = vsel %vm7661_vm5, %v1978_v63, %v1979_v16  ;;  %v990_v16 = vrot.slane %v989_v23, 4 }
 0x18f   : > { %v1805_v13 = vadd.f32 %v1804_v25, %v1716_v1  ;;  %v1987_v62 = vsel %vm7661_vm5, %v1985_v22, %v1986_v32 }
 0x190   : > { %v1984_v14 = vsel %vm7661_vm5, %v5982_v48, %v1983_v7  ;;  %v1004_v7 = vrot.slane %v1002_v35, 5 }
 0x191   : > { %v7658_v29 = vadd.f32 %v1893_v56, %v1805_v13  ;;  %v1484_v39 = vpop.f32.mrf.mxu2  ;;  %v1973_v56 = vsel %vm7661_vm5, %v1971_v55, %v1972_v43  ;;  %v1977_v13 = vsel %vm7661_vm5, %v5981_v45, %v1976_v61  ;;  %v2099_v43 = vunpack.c.l.b16 %v1984_v14 }
 0x192   : > { %v1485_v59 = vadd.f32 %v1484_v39, %v7530_v5  ;;  %v2096_v24 = vunpack.c.l.b16 %v1973_v56  ;;  %v2098_v39 = vunpack.c.l.b16 %v1980_v60  ;;  %v2100_v61 = vunpack.c.l.b16 %v1987_v62 }
 0x193   : > { %9245 = vst [vmem:[#allocation13_spill] sm:$0xff] %v7658_v29  ;;  %v1809_v58 = vpop.f32.mrf.mxu0  ;;  %v2097_v29 = vunpack.c.l.b16 %v1977_v13 }
 0x194   : > { %v1717_v1 = vpop.f32.mrf.mxu3  ;;  %v1898_v5 = vpop.f32.mrf.mxu1  ;;  %v2127_v55 = vpack.c.b16 %v2096_v24, %v2095_v34  ;;  %v7686_v48 = vpack.c.b16 %v2100_v61, %v2099_v43 }
 0x195   : > { %v1718_v54 = vadd.f32 %v1717_v1, %v1485_v59  ;;  %v7683_v63 = vpack.c.b16 %v2098_v39, %v2097_v29  ;;  %v1000_v59 = vrot.slane %v999_v52, 4  ;;  %v6613_v29 = vld [vmem:[#allocation3 + $0xe0] sm:$0xff] }
 0x196   : > { %1526 = vmatmul.bf16.gmra.mxu2 %v7439_v15  ;;  %1848 = vmatmul.bf16.gmra.mxu0 %v7634_v44  ;;  %v995_v15 = vsel %vm7128_vm2, %v990_v16, %v7650_v41  ;;  %v6494_v41 = vld [vmem:[%s7101_s6 + $0xcc] sm:$0xff] }
 0x197   : > { %v7681_v45 = vadd.f32 %v1806_v9, %v1718_v54  ;;  %1937 = vmatmul.bf16.gmra.mxu1 %v6493_v20  ;;  %v1005_v54 = vsel %vm7128_vm2, %v1000_v59, %v1004_v7  ;;  %v1074_v52 = vunpack.c.l.b16 %v995_v15 }
 0x198   : > { %v1075_v35 = vunpack.c.l.b16 %v1005_v54  ;;  %4104 = vmatpush.bf16.msra.mxu1 %v6613_v29 }
 0x199   : > { %1759 = vmatmul.bf16.gmra.mxu3 %v7612_v8  ;;  %v1487_v32 = vpop.f32.mrf.mxu2 }
 0x19a   : > { %v1488_v22 = vadd.f32 %v1487_v32, %v7535_v19  ;;  %v1076_v24 = vpack.c.b16 %v1075_v35, %v1074_v52  ;;  %v6838_v52 = vld [vmem:[%s7101_s6 + $0x2c] sm:$0x1] }
 0x19b   : > { %v1811_v50 = vpop.f32.mrf.mxu0  ;;  %v1993_v35 = vrot.slane %v6838_v52, 5 }
 0x19c   : > { %v1720_v1 = vpop.f32.mrf.mxu3  ;;  %v7694_v9 = vpop.f32.mrf.mxu1 }
 0x19d   : > { %v1721_v8 = vadd.f32 %v1720_v1, %v1488_v22 }
 0x19f   : > { %v1810_v23 = vadd.f32 %v1809_v58, %v1721_v8  ;;  %v6837_v8 = vld [vmem:[%s7101_s6 + $0x24] sm:$0xf] }
 0x1a0   : > { %v5983_v29 = vrot.slane %v6837_v8, 9 }
 0x1a1   : > { %v7696_v56 = vadd.f32 %v1898_v5, %v1810_v23  ;;  %v1489_v19 = vpop.f32.mrf.mxu2 }
 0x1a2   : > { %v1490_v13 = vadd.f32 %v1489_v19, %v7549_v33 }
 0x1a3   : > { %v1814_v60 = vpop.f32.mrf.mxu0 }
 0x1a4   : > { %v1722_v34 = vpop.f32.mrf.mxu3  ;;  %v1903_v14 = vpop.f32.mrf.mxu1 }
 0x1a5   : > { %v1723_v39 = vadd.f32 %v1722_v34, %v1490_v13 }
 0x1a6   : > { %1531 = vmatmul.bf16.gmra.mxu2 %v1076_v24  ;;  %1853 = vmatmul.bf16.gmra.mxu0 %v6493_v20 }
 0x1a7   : > { %v7700_v62 = vadd.f32 %v1811_v50, %v1723_v39  ;;  %1942 = vmatmul.bf16.gmra.mxu1 %v6494_v41  ;;  %v6612_v39 = vld [vmem:[#allocation3 + $0xd8] sm:$0xff] }
 0x1a8   : > { %4105 = vmatpush.bf16.msra.mxu1 %v6612_v39 }
 0x1a9   : > { %1764 = vmatmul.bf16.gmra.mxu3 %v7634_v44  ;;  %v1492_v58 = vpop.f32.mrf.mxu2  ;;  %v6836_v44 = vld [vmem:[%s7101_s6 + $0x28] sm:$0xf] }
 0x1aa   : > { %v1493_v5 = vadd.f32 %v1492_v58, %v7554_v47  ;;  %v1990_v50 = vrot.slane %v6836_v44, 5 }
 0x1ab   : > { %v1816_v61 = vpop.f32.mrf.mxu0 }
 0x1ac   : > { %v1725_v43 = vpop.f32.mrf.mxu3  ;;  %v7704_v16 = vpop.f32.mrf.mxu1  ;;  %v1992_v23 = vrot.slane %v1990_v50, 4 }
 0x1ad   : > { %v1726_v33 = vadd.f32 %v1725_v43, %v1493_v5 }
 0x1ae   : > { %v1994_v24 = vsel %vm7661_vm5, %v1992_v23, %v1993_v35 }
 0x1af   : > { %v1815_v59 = vadd.f32 %v1814_v60, %v1726_v33  ;;  %v2102_v5 = vunpack.c.l.b16 %v1994_v24 }
 0x1b1   : > { %v7706_v7 = vadd.f32 %v1903_v14, %v1815_v59  ;;  %v1494_v20 = vpop.f32.mrf.mxu2 }
 0x1b2   : > { %v1495_v32 = vadd.f32 %v1494_v20, %v7559_v0 }
 0x1b3   : > { %v1819_v1 = vpop.f32.mrf.mxu0 }
 0x1b4   : > { %v1727_v22 = vpop.f32.mrf.mxu3  ;;  %v1908_v54 = vpop.f32.mrf.mxu1 }
 0x1b5   : > { %v1728_v15 = vadd.f32 %v1727_v22, %v1495_v32  ;;  %v6839_v32 = vld [vmem:[%s7101_s6 + $0x34] sm:$0xf] }
 0x1b6   : > { %2367 = vmatmul.bf16.vlgmr.msra.gmra.mxu2 %v2127_v55  ;;  %2545 = vmatmul.bf16.vlgmr.msra.gmra.mxu0 %v7686_v48  ;;  %v1991_v55 = vsel %vm7661_vm5, %v5983_v29, %v1990_v50  ;;  %v1997_v22 = vrot.slane %v6839_v32, 5 }
 0x1b7   : > { %v7711_v47 = vadd.f32 %v1816_v61, %v1728_v15  ;;  %v2101_v58 = vunpack.c.l.b16 %v1991_v55  ;;  %v6840_v15 = vld [vmem:[%s7101_s6 + $0x30] sm:$0xf] }
 0x1b8   : > { %v1999_v8 = vrot.slane %v1997_v22, 4 }
 0x1b9   : > { %2456 = vmatmul.bf16.vlgmr.msra.gmra.mxu3 %v7683_v63  ;;  %v1497_v19 = vpop.f32.mrf.mxu2  ;;  %v7726_v59 = vpack.c.b16 %v2102_v5, %v2101_v58 }
 0x1ba   : > { %v1498_v0 = vadd.f32 %v1497_v19, %v7457_v30 }
 0x1bb   : > { %v1821_v34 = vpop.f32.mrf.mxu0 }
 0x1bc   : > { %v1730_v13 = vpop.f32.mrf.mxu3  ;;  %v7721_v41 = vpop.f32.mrf.mxu1 }
 0x1bd   : > { %v1731_v60 = vadd.f32 %v1730_v13, %v1498_v0 }
 0x1bf   : > { %v1820_v14 = vadd.f32 %v1819_v1, %v1731_v60 }
 0x1c1   : > { %v7723_v43 = vadd.f32 %v1908_v54, %v1820_v14  ;;  %v1499_v30 = vpop.f32.mrf.mxu2  ;;  %v5984_v54 = vrot.slane %v6840_v15, 9 }
 0x1c2   : > { %v1500_v61 = vadd.f32 %v1499_v30, %v7464_v37  ;;  %v6841_v37 = vld [vmem:[%s7101_s6 + $0x38] sm:$0x1] }
 0x1c3   : > { %v1824_v20 = vpop.f32.mrf.mxu0  ;;  %v2000_v29 = vrot.slane %v6841_v37, 5 }
 0x1c4   : > { %v1732_v33 = vpop.f32.mrf.mxu3  ;;  %v1913_v50 = vpop.f32.mrf.mxu1 }
 0x1c5   : > { %v1733_v44 = vadd.f32 %v1732_v33, %v1500_v61  ;;  %v2001_v0 = vsel %vm7661_vm5, %v1999_v8, %v2000_v29  ;;  %v6842_v61 = vld [vmem:[%s7101_s6 + $0x40] sm:$0xf] }
 0x1c6   : > { %2372 = vmatmul.bf16.gmra.mxu2 %v7683_v63  ;;  %2550 = vmatmul.bf16.gmra.mxu0 %v7726_v59  ;;  %v1998_v63 = vsel %vm7661_vm5, %v5984_v54, %v1997_v22  ;;  %v2104_v60 = vunpack.c.l.b16 %v2001_v0  ;;  %v2004_v33 = vrot.slane %v6842_v61, 5  ;;  %v6845_v61 = vld [vmem:[%s7101_s6 + $0x4c] sm:$0xf] }
 0x1c7   : > { %v7731_v1 = vadd.f32 %v1821_v34, %v1733_v44  ;;  %v2103_v24 = vunpack.c.l.b16 %v1998_v63  ;;  %v6843_v44 = vld [vmem:[%s7101_s6 + $0x3c] sm:$0xf]  ;;  %v6611_v63 = vld [vmem:[#allocation3 + $0xd0] sm:$0xff] }
 0x1c8   : > { %v2006_v15 = vrot.slane %v2004_v33, 4  ;;  %4106 = vmatpush.bf16.msra.mxu1 %v6611_v63 }
 0x1c9   : > { %2461 = vmatmul.bf16.gmra.mxu3 %v7686_v48  ;;  %v1502_v23 = vpop.f32.mrf.mxu2  ;;  %v7746_v5 = vpack.c.b16 %v2104_v60, %v2103_v24 }
 0x1ca   : > { %v1503_v52 = vadd.f32 %v1502_v23, %v7470_v46 }
 0x1cb   : > { %v1826_v19 = vpop.f32.mrf.mxu0 }
 0x1cc   : > { %v1735_v35 = vpop.f32.mrf.mxu3  ;;  %v7741_v34 = vpop.f32.mrf.mxu1 }
 0x1cd   : > { %v1736_v13 = vadd.f32 %v1735_v35, %v1503_v52 }
 0x1cf   : > { %v1825_v55 = vadd.f32 %v1824_v20, %v1736_v13 }
 0x1d1   : > { %v7743_v39 = vadd.f32 %v1913_v50, %v1825_v55  ;;  %v1504_v14 = vpop.f32.mrf.mxu2  ;;  %v5985_v50 = vrot.slane %v6843_v44, 9 }
 0x1d2   : > { %v1505_v46 = vadd.f32 %v1504_v14, %v7474_v53  ;;  %v6844_v53 = vld [vmem:[%s7101_s6 + $0x44] sm:$0x1] }
 0x1d3   : > { %v1829_v30 = vpop.f32.mrf.mxu0  ;;  %v2007_v54 = vrot.slane %v6844_v53, 5 }
 0x1d4   : > { %v1737_v58 = vpop.f32.mrf.mxu3  ;;  %v1918_v22 = vpop.f32.mrf.mxu1 }
 0x1d5   : > { %v1738_v32 = vadd.f32 %v1737_v58, %v1505_v46  ;;  %v2008_v52 = vsel %vm7661_vm5, %v2006_v15, %v2007_v54 }
 0x1d6   : > { %2377 = vmatmul.bf16.gmra.mxu2 %v7686_v48  ;;  %2555 = vmatmul.bf16.gmra.mxu0 %v7746_v5  ;;  %v2005_v48 = vsel %vm7661_vm5, %v5985_v50, %v2004_v33  ;;  %v2106_v55 = vunpack.c.l.b16 %v2008_v52  ;;  %v2011_v33 = vrot.slane %v6845_v61, 5  ;;  %v6848_v61 = vld [vmem:[%s7101_s6 + $0x58] sm:$0xf] }
 0x1d7   : > { %v7751_v20 = vadd.f32 %v1826_v19, %v1738_v32  ;;  %v2105_v13 = vunpack.c.l.b16 %v2005_v48 }
 0x1d8   : > { %v2013_v15 = vrot.slane %v2011_v33, 4 }
 0x1d9   : > { %2466 = vmatmul.bf16.gmra.mxu3 %v7726_v59  ;;  %v1507_v8 = vpop.f32.mrf.mxu2  ;;  %v7766_v46 = vpack.c.b16 %v2106_v55, %v2105_v13 }
 0x1da   : > { %v1508_v37 = vadd.f32 %v1507_v8, %v7486_v3 }
 0x1db   : > { %v1831_v23 = vpop.f32.mrf.mxu0 }
 0x1dc   : > { %v1740_v29 = vpop.f32.mrf.mxu3  ;;  %v7761_v19 = vpop.f32.mrf.mxu1 }
 0x1dd   : > { %v1741_v35 = vadd.f32 %v1740_v29, %v1508_v37 }
 0x1df   : > { %v1830_v0 = vadd.f32 %v1829_v30, %v1741_v35 }
 0x1e1   : > { %v7763_v24 = vadd.f32 %v1918_v22, %v1830_v0  ;;  %v1509_v3 = vpop.f32.mrf.mxu2  ;;  %v6846_v22 = vld [vmem:[%s7101_s6 + $0x48] sm:$0xf] }
 0x1e2   : > { %v1510_v60 = vadd.f32 %v1509_v3, %v7493_v10  ;;  %v5986_v50 = vrot.slane %v6846_v22, 9  ;;  %v6847_v10 = vld [vmem:[%s7101_s6 + $0x50] sm:$0x1] }
 0x1e3   : > { %v1834_v58 = vpop.f32.mrf.mxu0  ;;  %v2014_v53 = vrot.slane %v6847_v10, 5 }
 0x1e4   : > { %v1742_v14 = vpop.f32.mrf.mxu3  ;;  %v1923_v44 = vpop.f32.mrf.mxu1 }
 0x1e5   : > { %v1743_v32 = vadd.f32 %v1742_v14, %v1510_v60 }
 0x1e6   : > { %2382 = vmatmul.bf16.gmra.mxu2 %v7726_v59  ;;  %2560 = vmatmul.bf16.gmra.mxu0 %v7766_v46  ;;  %v2012_v59 = vsel %vm7661_vm5, %v5986_v50, %v2011_v33  ;;  %v2018_v33 = vrot.slane %v6848_v61, 5 }
 0x1e7   : > { %v7771_v30 = vadd.f32 %v1831_v23, %v1743_v32  ;;  %v2015_v23 = vsel %vm7661_vm5, %v2013_v15, %v2014_v53  ;;  %v2107_v63 = vunpack.c.l.b16 %v2012_v59 }
 0x1e8   : > { %v2108_v0 = vunpack.c.l.b16 %v2015_v23  ;;  %v2020_v15 = vrot.slane %v2018_v33, 4 }
 0x1e9   : > { %2471 = vmatmul.bf16.gmra.mxu3 %v7746_v5  ;;  %v1512_v54 = vpop.f32.mrf.mxu2 }
 0x1ea   : > { %v1513_v8 = vadd.f32 %v1512_v54, %v7499_v18  ;;  %v7786_v60 = vpack.c.b16 %v2108_v0, %v2107_v63 }
 0x1eb   : > { %v1836_v29 = vpop.f32.mrf.mxu0 }
 0x1ec   : > { %v1745_v37 = vpop.f32.mrf.mxu3  ;;  %v7781_v52 = vpop.f32.mrf.mxu1 }
 0x1ed   : > { %v1746_v48 = vadd.f32 %v1745_v37, %v1513_v8  ;;  %9248 = vst [vmem:[#allocation14_spill] sm:$0xff] %v7781_v52 }
 0x1ef   : > { %v1835_v35 = vadd.f32 %v1834_v58, %v1746_v48  ;;  %v6610_v48 = vld [vmem:[#allocation3 + $0xc8] sm:$0xff] }
 0x1f0   : > { %4107 = vmatpush.bf16.msra.mxu1 %v6610_v48 }
 0x1f1   : > { %v7783_v13 = vadd.f32 %v1923_v44, %v1835_v35  ;;  %v1514_v55 = vpop.f32.mrf.mxu2  ;;  %v6849_v44 = vld [vmem:[%s7101_s6 + $0x54] sm:$0xf] }
 0x1f2   : > { %v1515_v18 = vadd.f32 %v1514_v55, %v7503_v28  ;;  %v5987_v50 = vrot.slane %v6849_v44, 9  ;;  %v6850_v28 = vld [vmem:[%s7101_s6 + $0x5c] sm:$0x1] }
 0x1f3   : > { %9249 = vst [vmem:[#allocation15_spill] sm:$0xff] %v7783_v13  ;;  %v1839_v14 = vpop.f32.mrf.mxu0  ;;  %v2021_v10 = vrot.slane %v6850_v28, 5 }
 0x1f4   : > { %v1747_v3 = vpop.f32.mrf.mxu3  ;;  %v1928_v22 = vpop.f32.mrf.mxu1 }
 0x1f5   : > { %v1748_v32 = vadd.f32 %v1747_v3, %v1515_v18 }
 0x1f6   : > { %2387 = vmatmul.bf16.gmra.mxu2 %v7746_v5  ;;  %2565 = vmatmul.bf16.gmra.mxu0 %v7786_v60  ;;  %v2019_v5 = vsel %vm7661_vm5, %v5987_v50, %v2018_v33 }
 0x1f7   : > { %v7791_v58 = vadd.f32 %v1836_v29, %v1748_v32  ;;  %v2022_v29 = vsel %vm7661_vm5, %v2020_v15, %v2021_v10  ;;  %v2109_v63 = vunpack.c.l.b16 %v2019_v5  ;;  %v6851_v32 = vld [vmem:[%s7101_s6 + $0x64] sm:$0xf] }
 0x1f8   : > { %v2110_v0 = vunpack.c.l.b16 %v2022_v29  ;;  %v2025_v44 = vrot.slane %v6851_v32, 5 }
 0x1f9   : > { %2476 = vmatmul.bf16.gmra.mxu3 %v7766_v46  ;;  %v1517_v53 = vpop.f32.mrf.mxu2 }
 0x1fa   : > { %v1518_v54 = vadd.f32 %v1517_v53, %v7515_v40  ;;  %v7806_v61 = vpack.c.b16 %v2110_v0, %v2109_v63  ;;  %v2027_v10 = vrot.slane %v2025_v44, 4 }
 0x1fb   : > { %v1841_v37 = vpop.f32.mrf.mxu0 }
 0x1fc   : > { %v1750_v8 = vpop.f32.mrf.mxu3  ;;  %v7801_v23 = vpop.f32.mrf.mxu1 }
 0x1fd   : > { %v1751_v59 = vadd.f32 %v1750_v8, %v1518_v54  ;;  %9250 = vst [vmem:[#allocation16_spill] sm:$0xff] %v7801_v23 }
 0x1ff   : > { %v1840_v35 = vadd.f32 %v1839_v14, %v1751_v59 }
 0x201   : > { %v7803_v55 = vadd.f32 %v1928_v22, %v1840_v35  ;;  %v1519_v40 = vpop.f32.mrf.mxu2  ;;  %v6852_v22 = vld [vmem:[%s7101_s6 + $0x60] sm:$0xf] }
 0x202   : > { %v1520_v18 = vadd.f32 %v1519_v40, %v7522_v51  ;;  %v5988_v28 = vrot.slane %v6852_v22, 9  ;;  %v6853_v51 = vld [vmem:[%s7101_s6 + $0x68] sm:$0x1] }
 0x203   : > { %9251 = vst [vmem:[#allocation17_spill] sm:$0xff] %v7803_v55  ;;  %v1844_v33 = vpop.f32.mrf.mxu0  ;;  %v2028_v53 = vrot.slane %v6853_v51, 5 }
 0x204   : > { %v1752_v3 = vpop.f32.mrf.mxu3  ;;  %v1933_v15 = vpop.f32.mrf.mxu1 }
 0x205   : > { %v1753_v50 = vadd.f32 %v1752_v3, %v1520_v18 }
 0x206   : > { %2392 = vmatmul.bf16.gmra.mxu2 %v7766_v46  ;;  %2570 = vmatmul.bf16.gmra.mxu0 %v7806_v61  ;;  %v2026_v46 = vsel %vm7661_vm5, %v5988_v28, %v2025_v44 }
 0x207   : > { %v7811_v14 = vadd.f32 %v1841_v37, %v1753_v50  ;;  %v2029_v37 = vsel %vm7661_vm5, %v2027_v10, %v2028_v53  ;;  %v2111_v35 = vunpack.c.l.b16 %v2026_v46  ;;  %v6854_v50 = vld [vmem:[%s7101_s6 + $0x70] sm:$0xf]  ;;  %v6996_v10 = vmov 0   ;;  %v6856_v53 = vld [vmem:[%s7101_s6 + $0x74] sm:$0x1] }
 0x208   : > { %v2112_v63 = vunpack.c.l.b16 %v2029_v37  ;;  %v2032_v22 = vrot.slane %v6854_v50, 5  ;;  %241 = vst [vmem:[#allocation2] sm:$0xf] %v6996_v10 }
 0x209   : > { %9252 = vst [vmem:[#allocation18_spill] sm:$0xff] %v7811_v14  ;;  %2481 = vmatmul.bf16.gmra.mxu3 %v7786_v60  ;;  %v1522_v54 = vpop.f32.mrf.mxu2 }
 0x20a   : > { %v1523_v8 = vadd.f32 %v1522_v54, %v7528_v2  ;;  %v7826_v32 = vpack.c.b16 %v2112_v63, %v2111_v35  ;;  %v2034_v51 = vrot.slane %v2032_v22, 4  ;;  %v2035_v54 = vrot.slane %v6856_v53, 5  ;;  %242 = vst [vmem:[#allocation2 + $0x4] sm:$0xf] %v6996_v10 }
 0x20b   : > { %v1846_v29 = vpop.f32.mrf.mxu0  ;;  %243 = vst [vmem:[#allocation2 + $0x8] sm:$0x1] %v6996_v10 }
 0x20c   : > { %v1755_v5 = vpop.f32.mrf.mxu3  ;;  %v7821_v0 = vpop.f32.mrf.mxu1  ;;  %245 = vst [vmem:[#allocation2 + $0xcc] sm:$0xf] %v6996_v10  ;;  %v2036_v35 = vsel %vm7661_vm5, %v2034_v51, %v2035_v54  ;;  %v6857_v54 = vld [vmem:[%s7101_s6 + $0x7c] sm:$0xf] }
 0x20d   : > { %v1756_v59 = vadd.f32 %v1755_v5, %v1523_v8  ;;  %9253 = vst [vmem:[#allocation19_spill] sm:$0xff] %v7821_v0  ;;  %v2114_v50 = vunpack.c.l.b16 %v2036_v35 }
 0x20e   : > { %246 = vst [vmem:[#allocation2 + $0xd0] sm:$0xf] %v6996_v10 }
 0x20f   : > { %v1845_v48 = vadd.f32 %v1844_v33, %v1756_v59  ;;  %247 = vst [vmem:[#allocation2 + $0xd4] sm:$0x1] %v6996_v10 }
 0x211   : > { %v7823_v40 = vadd.f32 %v1933_v15, %v1845_v48  ;;  %v1524_v18 = vpop.f32.mrf.mxu2  ;;  %v6855_v15 = vld [vmem:[%s7101_s6 + $0x6c] sm:$0xf] }
 0x212   : > { %v1525_v2 = vadd.f32 %v1524_v18, %v7532_v11  ;;  %v5989_v11 = vrot.slane %v6855_v15, 9  ;;  %v251_v18 = vld [vmem:[#allocation2] sm:$0x1]  ;;  %v307_v51 = vld [vmem:[#allocation2 + $0x8] sm:$0x1] }
 0x213   : > { %9254 = vst [vmem:[#allocation20_spill] sm:$0xff] %v7823_v40  ;;  %v1849_v44 = vpop.f32.mrf.mxu0 }
 0x214   : > { %v1757_v3 = vpop.f32.mrf.mxu3  ;;  %v1938_v5 = vpop.f32.mrf.mxu1  ;;  %v2033_v48 = vsel %vm7661_vm5, %v5989_v11, %v2032_v22 }
 0x215   : > { %v1758_v28 = vadd.f32 %v1757_v3, %v1525_v2  ;;  %v2113_v3 = vunpack.c.l.b16 %v2033_v48 }
 0x216   : > { %2397 = vmatmul.bf16.gmra.mxu2 %v7786_v60  ;;  %2575 = vmatmul.bf16.gmra.mxu0 %v7826_v32  ;;  %v254_v60 = vld [vmem:[#allocation2 + $0xc] sm:$0x1] }
 0x217   : > { %v7831_v33 = vadd.f32 %v1846_v29, %v1758_v28  ;;  %v255_v63 = vsel %vm7839_vm8, 0, %v254_v60  ;;  %v252_v28 = vsel %vm7839_vm8, 0, %v251_v18  ;;  %v7860_v53 = vpack.c.b16 %v2114_v50, %v2113_v3  ;;  %v3196_v3 = vld [vmem:[#allocation2 + $0x4] sm:$0xf] }
 0x218   : > { %256 = vst [vmem:[#allocation2 + $0xc] sm:$0x1] %v255_v63  ;;  %v308_v60 = vsel %vm7853_vm10, 0, %v307_v51  ;;  %v3419_v51 = vshrl.u32 %v3196_v3, 16 }
 0x219   : > { %9255 = vst [vmem:[#allocation21_spill] sm:$0xff] %v7831_v33  ;;  %2486 = vmatmul.bf16.gmra.mxu3 %v7806_v61  ;;  %v1527_v8 = vpop.f32.mrf.mxu2  ;;  %v6609_v33 = vld [vmem:[#allocation3 + $0xc0] sm:$0xff] }
 0x21a   : > { %v1528_v46 = vadd.f32 %v1527_v8, %v7544_v27  ;;  %253 = vst [vmem:[#allocation2] sm:$0x1] %v252_v28  ;;  %v2039_v8 = vrot.slane %v6857_v54, 5  ;;  %4108 = vmatpush.bf16.msra.mxu1 %v6609_v33 }
 0x21b   : > { %v1851_v59 = vpop.f32.mrf.mxu0  ;;  %309 = vst [vmem:[#allocation2 + $0x8] sm:$0x1] %v308_v60 }
 0x21c   : > { %v1760_v29 = vpop.f32.mrf.mxu3  ;;  %v2041_v63 = vrot.slane %v2039_v8, 4 }
 0x21d   : > { %v1761_v27 = vadd.f32 %v1760_v29, %v1528_v46  ;;  %v7865_v29 = vpop.f32.mrf.mxu1 }
 0x21e   : > { %9261 = vst [vmem:[#allocation23_spill] sm:$0xff] %v7865_v29 }
 0x21f   : > { %v1850_v2 = vadd.f32 %v1849_v44, %v1761_v27  ;;  %v6859_v27 = vld [vmem:[%s7101_s6 + $0x80] sm:$0x1] }
 0x220   : > { %v2042_v18 = vrot.slane %v6859_v27, 5 }
 0x221   : > { %v7857_v15 = vadd.f32 %v1938_v5, %v1850_v2  ;;  %v1529_v11 = vpop.f32.mrf.mxu2  ;;  %v6858_v5 = vld [vmem:[%s7101_s6 + $0x78] sm:$0xf]  ;;  %v3195_v2 = vld [vmem:[#allocation2] sm:$0xf] }
 0x222   : > { %v1530_v10 = vadd.f32 %v1529_v11, %v7551_v38  ;;  %v5990_v35 = vrot.slane %v6858_v5, 9  ;;  %v3406_v50 = vshrl.u32 %v3195_v2, 16  ;;  %v3409_v28 = vshll.u32 %v3195_v2, 16  ;;  %v3197_v27 = vld [vmem:[#allocation2 + $0x8] sm:$0x1] }
 0x223   : > { %9260 = vst [vmem:[#allocation22_spill] sm:$0xff] %v7857_v15  ;;  %v1854_v46 = vpop.f32.mrf.mxu0  ;;  %v3415_v11 = vshll.u32 %v3196_v3, 16  ;;  %v2043_v29 = vsel %vm7661_vm5, %v2041_v63, %v2042_v18  ;;  %v3425_v3 = vshll.u32 %v3197_v27, 16  ;;  %v257_v27 = vld [vmem:[#allocation2 + $0x18] sm:$0x1] }
 0x224   : > { %v1762_v44 = vpop.f32.mrf.mxu3  ;;  %v3411_v54 = vrot.slane %v3409_v28, 5  ;;  %v258_v33 = vsel %vm7839_vm8, 0, %v257_v27 }
 0x225   : > { %v1763_v48 = vadd.f32 %v1762_v44, %v1530_v10  ;;  %v3408_v44 = vrot.slane %v3406_v50, 4  ;;  %v3417_v60 = vrot.slane %v3415_v11, 5  ;;  %v1943_v28 = vpop.f32.mrf.mxu1  ;;  %259 = vst [vmem:[#allocation2 + $0x18] sm:$0x1] %v258_v33 }
 0x226   : > { %2402 = vmatmul.bf16.gmra.mxu2 %v7806_v61  ;;  %2580 = vmatmul.bf16.gmra.mxu0 %v7860_v53  ;;  %v3421_v61 = vrot.slane %v3419_v51, 4  ;;  %v3427_v51 = vrot.slane %v3425_v3, 5 }
 0x227   : > { %v7870_v38 = vadd.f32 %v1851_v59, %v1763_v48  ;;  %v2040_v48 = vsel %vm7661_vm5, %v5990_v35, %v2039_v8  ;;  %v3412_v2 = vor.u32 %v3411_v54, %v3408_v44  ;;  %v2116_v35 = vunpack.c.l.b16 %v2043_v29 }
 0x228   : > { %v3422_v40 = vor.u32 %v3421_v61, %v3417_v60  ;;  %v2115_v8 = vunpack.c.l.b16 %v2040_v48 }
 0x229   : > { %9262 = vst [vmem:[#allocation24_spill] sm:$0xff] %v7870_v38  ;;  %2491 = vmatmul.bf16.gmra.mxu3 %v7826_v32  ;;  %v1532_v10 = vpop.f32.mrf.mxu2  ;;  %v310_v38 = vld [vmem:[#allocation2 + $0x14] sm:$0x1] }
 0x22a   : > { %v1533_v5 = vadd.f32 %v1532_v10, %v7557_v57  ;;  %v311_v50 = vsel %vm7853_vm10, 0, %v310_v38  ;;  %v3413_v57 = vrot.slane %v3412_v2, 4  ;;  %v3423_v11 = vrot.slane %v3422_v40, 4  ;;  %v6861_v2 = vld [vmem:[%s7101_s6 + $0x84] sm:$0xf] }
 0x22b   : > { %v1856_v15 = vpop.f32.mrf.mxu0  ;;  %312 = vst [vmem:[#allocation2 + $0x14] sm:$0x1] %v311_v50  ;;  %v5991_v3 = vrot.slane %v6861_v2, 9 }
 0x22c   : > { %v1765_v59 = vpop.f32.mrf.mxu3  ;;  %v3418_v63 = vsel %vm7128_vm2, %v3413_v57, %v3417_v60  ;;  %v3428_v18 = vsel %vm7128_vm2, %v3423_v11, %v3427_v51 }
 0x22d   : > { %v1766_v0 = vadd.f32 %v1765_v59, %v1533_v5  ;;  %v3837_v38 = vunpack.c.l.b16 %v3418_v63  ;;  %v3838_v54 = vunpack.c.l.b16 %v3428_v18  ;;  %v6860_v59 = vld [vmem:[%s7101_s6 + $0x88] sm:$0xf]  ;;  %v7907_v18 = vld [vmem:[%s9219_s2] ss:$0 sm:$0xff] }
 0x22e   : > { %v2046_v60 = vrot.slane %v6860_v59, 5 }
 0x22f   : > { %v1855_v10 = vadd.f32 %v1854_v46, %v1766_v0  ;;  %v7888_v46 = vpack.c.b16 %v2116_v35, %v2115_v8  ;;  %v3869_v29 = vpack.c.b16 %v3838_v54, %v3837_v38  ;;  %v313_v35 = vld [vmem:[#allocation2 + $0x20] sm:$0x1] }
 0x230   : > { %v2048_v50 = vrot.slane %v2046_v60, 4  ;;  %v314_v38 = vsel %vm7853_vm10, 0, %v313_v35 }
 0x231   : > { %v7885_v44 = vadd.f32 %v1943_v28, %v1855_v10  ;;  %v1534_v61 = vpop.f32.mrf.mxu2  ;;  %4109 = vmatmul.bf16.vlgmr.msra.gmra.mxu1 %v3869_v29  ;;  %v6862_v28 = vld [vmem:[%s7101_s6 + $0x8c] sm:$0x1]  ;;  %315 = vst [vmem:[#allocation2 + $0x20] sm:$0x1] %v314_v38  ;;  %v6624_v38 = vld [vmem:[#allocation3 + $0x138] sm:$0xff] }
 0x232   : > { %v1535_v40 = vadd.f32 %v1534_v61, %v7561_v6  ;;  %v2049_v57 = vrot.slane %v6862_v28, 5  ;;  %4190 = vmatpush.bf16.msrb.mxu2 %v6624_v38 }
 0x233   : > { %9263 = vst [vmem:[#allocation25_spill] sm:$0xff] %v7885_v44  ;;  %v2546_v5 = vpop.f32.mrf.mxu0 }
 0x234   : > { %v1767_v0 = vpop.f32.mrf.mxu3 }
 0x235   : > { %v1768_v48 = vadd.f32 %v1767_v0, %v1535_v40  ;;  %v6863_v0 = vld [vmem:[%s7101_s6 + $0x94] sm:$0xf] }
 0x236   : > { %2407 = vmatmul.bf16.gmra.mxu2 %v7826_v32  ;;  %2585 = vmatmul.bf16.gmra.mxu0 %v7888_v46  ;;  %v2047_v32 = vsel %vm7661_vm5, %v5991_v3, %v2046_v60  ;;  %v2053_v29 = vrot.slane %v6863_v0, 5  ;;  %v6864_v3 = vld [vmem:[%s7101_s6 + $0x90] sm:$0xf] }
 0x237   : > { %v7895_v6 = vadd.f32 %v1856_v15, %v1768_v48  ;;  %v2050_v15 = vsel %vm7661_vm5, %v2048_v50, %v2049_v57  ;;  %v2117_v54 = vunpack.c.l.b16 %v2047_v32  ;;  %v5992_v50 = vrot.slane %v6864_v3, 9  ;;  %v260_v57 = vld [vmem:[#allocation2 + $0x24] sm:$0x1] }
 0x238   : > { %v2118_v61 = vunpack.c.l.b16 %v2050_v15  ;;  %v2055_v28 = vrot.slane %v2053_v29, 4  ;;  %v261_v32 = vsel %vm7839_vm8, 0, %v260_v57 }
 0x239   : > { %9264 = vst [vmem:[#allocation26_spill] sm:$0xff] %v7895_v6  ;;  %2496 = vmatmul.bf16.gmra.mxu3 %v7860_v53  ;;  %v2368_v11 = vpop.f32.mrf.mxu2 }
 0x23a   : > { %v7914_v48 = vpack.c.b16 %v2118_v61, %v2117_v54  ;;  %262 = vst [vmem:[#allocation2 + $0x24] sm:$0x1] %v261_v32  ;;  %v6592_v54 = vld [vmem:[#allocation3 + $0x38] sm:$0xff] }
 0x23b   : > { %v2548_v8 = vpop.f32.mrf.mxu0  ;;  %4512 = vmatpush.bf16.msrb.mxu0 %v6592_v54  ;;  %v6600_v32 = vld [vmem:[#allocation3 + $0x78] sm:$0xff] }
 0x23c   : > { %v2457_v51 = vpop.f32.mrf.mxu3  ;;  %4601 = vmatpush.bf16.msrb.mxu1 %v6600_v32 }
 0x23d   : > { %v2458_v10 = vadd.f32 %v2457_v51, %v2368_v11 }
 0x23f   : > { %v2547_v63 = vadd.f32 %v2546_v5, %v2458_v10  ;;  %v6865_v10 = vld [vmem:[%s7101_s6 + $0x98] sm:$0x1] }
 0x241   : > { %v2626_v40 = vadd.f32 %v2547_v63, %v7575_v21  ;;  %v2370_v5 = vpop.f32.mrf.mxu2  ;;  %v2056_v21 = vrot.slane %v6865_v10, 5  ;;  %v6632_v63 = vld [vmem:[#allocation3 + $0x178] sm:$0xff] }
 0x242   : > { %4279 = vmatpush.bf16.msrb.mxu3 %v6632_v63 }
 0x243   : > { %v2662_v59 = vadd.f32 %v7907_v18, %v2626_v40  ;;  %v2551_v2 = vpop.f32.mrf.mxu0 }
 0x244   : > { %v2459_v60 = vpop.f32.mrf.mxu3 }
 0x245   : > { %v2694_v27 = vmax.f32 %v2662_v59, 0.0  ;;  %v2460_v33 = vadd.f32 %v2459_v60, %v2370_v5  ;;  %v2057_v59 = vsel %vm7661_vm5, %v2055_v28, %v2056_v21  ;;  %v3083_v5 = vld [vmem:[#allocation2 + $0xc] sm:$0xf] }
 0x246   : > { %2412 = vmatmul.bf16.gmra.mxu2 %v7860_v53  ;;  %2590 = vmatmul.bf16.gmra.mxu0 %v7914_v48  ;;  %v2120_v57 = vunpack.c.l.b16 %v2057_v59 }
 0x247   : > { %v2726_v11 = vpack.c.bf16 %v2694_v27, %v2694_v27  ;;  %v2549_v51 = vadd.f32 %v2548_v8, %v2460_v33  ;;  %v2054_v8 = vsel %vm7661_vm5, %v5992_v50, %v2053_v29 }
 0x248   : > { %v2119_v50 = vunpack.c.l.b16 %v2054_v8 }
 0x249   : > { %v2761_v15 = vshrl.u32 %v2726_v11, 16  ;;  %v2627_v35 = vadd.f32 %v2549_v51, %v7580_v4  ;;  %2501 = vmatmul.bf16.gmra.mxu3 %v7888_v46  ;;  %v2764_v40 = vshll.u32 %v2726_v11, 16  ;;  %v2373_v53 = vpop.f32.mrf.mxu2  ;;  %v316_v11 = vld [vmem:[#allocation2 + $0x2c] sm:$0x1] }
 0x24a   : > { %v317_v21 = vsel %vm7853_vm10, 0, %v316_v11 }
 0x24b   : > { %v2763_v61 = vrot.slane %v2761_v15, 7  ;;  %v2663_v0 = vadd.f32 %v7907_v18, %v2627_v35  ;;  %v2553_v3 = vpop.f32.mrf.mxu0  ;;  %v6866_v15 = vld [vmem:[%s7101_s6 + $0xa0] sm:$0xf]  ;;  %318 = vst [vmem:[#allocation2 + $0x2c] sm:$0x1] %v317_v21 }
 0x24c   : > { %v2462_v60 = vpop.f32.mrf.mxu3  ;;  %v2060_v35 = vrot.slane %v6866_v15, 5 }
 0x24d   : > { %v2766_v29 = vor.u32 %v2764_v40, %v2763_v61  ;;  %v2695_v27 = vmax.f32 %v2663_v0, 0.0  ;;  %v2463_v33 = vadd.f32 %v2462_v60, %v2373_v53  ;;  %v7941_v0 = vpack.c.b16 %v2120_v57, %v2119_v50  ;;  %v263_v50 = vld [vmem:[#allocation2 + $0x30] sm:$0x1] }
 0x24e   : > { %v2767_v53 = vrot.slane %v2763_v61, 4 }
 0x24f   : > { %v3084_v51 = vsel %vm7930_vm12, %v2766_v29, %v3083_v5  ;;  %v2727_v28 = vpack.c.bf16 %v2695_v27, %v2695_v27  ;;  %v2552_v10 = vadd.f32 %v2551_v2, %v2463_v33  ;;  %v3087_v5 = vld [vmem:[#allocation2 + $0x14] sm:$0x1]  ;;  %v6867_v29 = vld [vmem:[%s7101_s6 + $0x9c] sm:$0xf]  ;;  %v6868_v33 = vld [vmem:[%s7101_s6 + $0xa4] sm:$0x1] }
 0x250   : > { %3085 = vst [vmem:[#allocation2 + $0xc] sm:$0xf] %v3084_v51  ;;  %v5993_v27 = vrot.slane %v6867_v29, 9  ;;  %v2063_v11 = vrot.slane %v6868_v33, 5 }
 0x251   : > { %v2769_v63 = vshrl.u32 %v2727_v28, 16  ;;  %v2628_v38 = vadd.f32 %v2552_v10, %v7583_v12  ;;  %v2772_v8 = vshll.u32 %v2727_v28, 16  ;;  %v2375_v2 = vpop.f32.mrf.mxu2  ;;  %v2062_v12 = vrot.slane %v2060_v35, 4 }
 0x253   : > { %v2771_v54 = vrot.slane %v2769_v63, 7  ;;  %v2664_v40 = vadd.f32 %v7907_v18, %v2628_v38  ;;  %v2556_v32 = vpop.f32.mrf.mxu0 }
 0x254   : > { %v2464_v60 = vpop.f32.mrf.mxu3 }
 0x255   : > { %v2774_v51 = vor.u32 %v2772_v8, %v2771_v54  ;;  %v2776_v28 = vrot.slane %v2771_v54, 4  ;;  %v2696_v10 = vmax.f32 %v2664_v40, 0.0  ;;  %v2465_v21 = vadd.f32 %v2464_v60, %v2375_v2 }
 0x256   : > { %2417 = vmatmul.bf16.gmra.mxu2 %v7888_v46  ;;  %2595 = vmatmul.bf16.gmra.mxu0 %v7941_v0  ;;  %v2061_v54 = vsel %vm7661_vm5, %v5993_v27, %v2060_v35  ;;  %v264_v8 = vsel %vm7839_vm8, 0, %v263_v50  ;;  %v2064_v46 = vsel %vm7661_vm5, %v2062_v12, %v2063_v11  ;;  %v6869_v27 = vld [vmem:[%s7101_s6 + $0xac] sm:$0xf] }
 0x257   : > { %v2775_v61 = vsel %vm7944_vm14, %v2767_v53, %v2774_v51  ;;  %v3088_v57 = vsel %vm7839_vm8, %v2776_v28, %v3087_v5  ;;  %v2728_v15 = vpack.c.bf16 %v2696_v10, %v2696_v10  ;;  %v2554_v63 = vadd.f32 %v2553_v3, %v2465_v21  ;;  %v7954_v38 = vld [vmem:[#allocation2 + $0xc] sm:$0xf]  ;;  %265 = vst [vmem:[#allocation2 + $0x30] sm:$0x1] %v264_v8  ;;  %v3090_v51 = vld [vmem:[#allocation2 + $0x18] sm:$0xf] }
 0x258   : > { %3086 = vst [vmem:[#allocation2 + $0x10] sm:$0xf] %v2775_v61  ;;  %v3430_v40 = vshrl.u32 %v7954_v38, 16  ;;  %v3433_v53 = vshll.u32 %v7954_v38, 16  ;;  %v2067_v33 = vrot.slane %v6869_v27, 5  ;;  %v2122_v10 = vunpack.c.l.b16 %v2064_v46 }
 0x259   : > { %3089 = vst [vmem:[#allocation2 + $0x14] sm:$0x1] %v3088_v57  ;;  %v2778_v2 = vshrl.u32 %v2728_v15, 16  ;;  %v2629_v3 = vadd.f32 %v2554_v63, %v7594_v49  ;;  %2506 = vmatmul.bf16.gmra.mxu3 %v7914_v48  ;;  %v2781_v35 = vshll.u32 %v2728_v15, 16  ;;  %v2378_v29 = vpop.f32.mrf.mxu2  ;;  %v2121_v49 = vunpack.c.l.b16 %v2061_v54  ;;  %v6870_v63 = vld [vmem:[%s7101_s6 + $0xa8] sm:$0xf] }
 0x25a   : > { %v3432_v21 = vrot.slane %v3430_v40, 4  ;;  %v3435_v50 = vrot.slane %v3433_v53, 5  ;;  %v5994_v8 = vrot.slane %v6870_v63, 9  ;;  %v7976_v15 = vadd.f32 %v7625_v17, %v7638_v31  ;;  %v6871_v27 = vld [vmem:[%s7101_s6 + $0xb0] sm:$0x1] }
 0x25b   : > { %v7968_v5 = vrot.slane %v2778_v2, 7  ;;  %v2665_v60 = vadd.f32 %v7907_v18, %v2629_v3  ;;  %v2558_v57 = vpop.f32.mrf.mxu0  ;;  %v2069_v40 = vrot.slane %v2067_v33, 4  ;;  %v7980_v53 = vpack.c.b16 %v2122_v10, %v2121_v49 }
 0x25c   : > { %v2467_v28 = vpop.f32.mrf.mxu3 }
 0x25d   : > { %v2783_v12 = vor.u32 %v2781_v35, %v7968_v5  ;;  %v2697_v11 = vmax.f32 %v2665_v60, 0.0  ;;  %v2468_v61 = vadd.f32 %v2467_v28, %v2378_v29  ;;  %v3436_v60 = vor.u32 %v3435_v50, %v3432_v21  ;;  %v3094_v21 = vld [vmem:[#allocation2 + $0x20] sm:$0x1] }
 0x25e   : > { %v2070_v28 = vrot.slane %v6871_v27, 5 }
 0x25f   : > { %v3091_v2 = vsel %vm7930_vm12, %v2783_v12, %v3090_v51  ;;  %v2729_v3 = vpack.c.bf16 %v2697_v11, %v2697_v11  ;;  %v2557_v54 = vadd.f32 %v2556_v32, %v2468_v61  ;;  %v3199_v46 = vld [vmem:[#allocation2 + $0x10] sm:$0xf]  ;;  %v7988_v51 = vsel %vm7661_vm5, %v5994_v8, %v2067_v33  ;;  %v319_v11 = vld [vmem:[#allocation2 + $0x38] sm:$0x1] }
 0x260   : > { %3092 = vst [vmem:[#allocation2 + $0x18] sm:$0xf] %v3091_v2  ;;  %v7982_v35 = vld [vmem:[#allocation2 + $0x14] sm:$0x1]  ;;  %v3439_v29 = vshll.u32 %v3199_v46, 16  ;;  %v3443_v31 = vshrl.u32 %v3199_v46, 16 }
 0x261   : > { %v2786_v63 = vshrl.u32 %v2729_v3, 16  ;;  %v2630_v17 = vadd.f32 %v2557_v54, %v7600_v26  ;;  %v2789_v32 = vshll.u32 %v2729_v3, 16  ;;  %v3449_v49 = vshll.u32 %v7982_v35, 16  ;;  %v2380_v2 = vpop.f32.mrf.mxu2 }
 0x262   : > { %v7990_v12 = vrot.slane %v3439_v29, 5  ;;  %v4804_v10 = vrot.slane %v3199_v46, 5  ;;  %v3445_v27 = vrot.slane %v3443_v31, 4  ;;  %v320_v26 = vsel %vm7853_vm10, 0, %v319_v11 }
 0x263   : > { %v2788_v61 = vrot.slane %v2786_v63, 7  ;;  %v2666_v50 = vadd.f32 %v7907_v18, %v2630_v17  ;;  %v2784_v54 = vrot.slane %v7968_v5, 4  ;;  %v3437_v8 = vrot.slane %v3436_v60, 4  ;;  %321 = vst [vmem:[#allocation2 + $0x38] sm:$0x1] %v320_v26  ;;  %v2561_v6 = vpop.f32.mrf.mxu0  ;;  %v6623_v26 = vld [vmem:[#allocation3 + $0x130] sm:$0xff] }
 0x264   : > { %v2469_v33 = vpop.f32.mrf.mxu3  ;;  %v6359_v3 = vrot.slane %v7954_v38, 9  ;;  %v8000_v46 = vsel %vm7661_vm5, %v2069_v40, %v2070_v28  ;;  %v3446_v31 = vor.u32 %v3445_v27, %v7990_v12  ;;  %v3451_v11 = vrot.slane %v3449_v49, 5  ;;  %4191 = vmatpush.bf16.msrb.mxu2 %v6623_v26 }
 0x265   : > { %v2791_v29 = vor.u32 %v2789_v32, %v2788_v61  ;;  %v2793_v63 = vrot.slane %v2788_v61, 4  ;;  %v2698_v44 = vmax.f32 %v2666_v50, 0.0  ;;  %v2470_v17 = vadd.f32 %v2469_v33, %v2380_v2  ;;  %v266_v50 = vld [vmem:[#allocation2 + $0x3c] sm:$0x1]  ;;  %v6591_v33 = vld [vmem:[#allocation3 + $0x30] sm:$0xff] }
 0x266   : > { %v4806_v55 = vrot.slane %v4804_v10, 4  ;;  %v4807_v5 = vrot.slane %v7982_v35, 5  ;;  %2422 = vmatmul.bf16.gmra.mxu2 %v7914_v48  ;;  %2600 = vmatmul.bf16.gmra.mxu0 %v7980_v53  ;;  %v3447_v61 = vrot.slane %v3446_v31, 4  ;;  %v2123_v49 = vunpack.c.l.b16 %v7988_v51  ;;  %v6872_v35 = vld [vmem:[%s7101_s6 + $0xb4] sm:$0xf] }
 0x267   : > { %v2792_v38 = vsel %vm7944_vm14, %v2784_v54, %v2791_v29  ;;  %v3095_v60 = vsel %vm7839_vm8, %v2793_v63, %v3094_v21  ;;  %v2730_v40 = vpack.c.bf16 %v2698_v44, %v2698_v44  ;;  %v2559_v28 = vadd.f32 %v2558_v57, %v2470_v17  ;;  %v8008_v32 = vld [vmem:[#allocation2 + $0x18] sm:$0xf]  ;;  %v6631_v21 = vld [vmem:[#allocation3 + $0x170] sm:$0xff]  ;;  %4513 = vmatpush.bf16.msrb.mxu0 %v6591_v33 }
 0x268   : > { %3093 = vst [vmem:[#allocation2 + $0x1c] sm:$0xf] %v2792_v38  ;;  %v5995_v2 = vrot.slane %v6872_v35, 9  ;;  %v4805_v27 = vsel %vm7661_vm5, %v6359_v3, %v4804_v10  ;;  %v3442_v48 = vsel %vm7128_vm2, %v3437_v8, %v7990_v12  ;;  %v3454_v51 = vshrl.u32 %v8008_v32, 16  ;;  %4280 = vmatpush.bf16.msrb.mxu3 %v6631_v21  ;;  %v3097_v38 = vld [vmem:[#allocation2 + $0x24] sm:$0xf] }
 0x269   : > { %3096 = vst [vmem:[#allocation2 + $0x20] sm:$0x1] %v3095_v60  ;;  %v2795_v44 = vshrl.u32 %v2730_v40, 16  ;;  %v2631_v57 = vadd.f32 %v2559_v28, %v7605_v42  ;;  %2511 = vmatmul.bf16.gmra.mxu3 %v7941_v0  ;;  %v3452_v54 = vsel %vm7128_vm2, %v3447_v61, %v3451_v11  ;;  %v267_v10 = vsel %vm7839_vm8, 0, %v266_v50  ;;  %v6873_v42 = vld [vmem:[%s7101_s6 + $0xb8] sm:$0xf]  ;;  %v2383_v8 = vpop.f32.mrf.mxu2 }
 0x26a   : > { %v3457_v3 = vshll.u32 %v8008_v32, 16  ;;  %v2074_v29 = vrot.slane %v6873_v42, 5  ;;  %v2798_v17 = vshll.u32 %v2730_v40, 16  ;;  %v3840_v31 = vunpack.c.l.b16 %v3452_v54  ;;  %268 = vst [vmem:[#allocation2 + $0x3c] sm:$0x1] %v267_v10 }
 0x26b   : > { %v8028_v63 = vrot.slane %v2795_v44, 7  ;;  %v2667_v12 = vadd.f32 %v7907_v18, %v2631_v57  ;;  %v3839_v60 = vunpack.c.l.b16 %v3442_v48  ;;  %v2124_v28 = vunpack.c.l.b16 %v8000_v46  ;;  %v2563_v57 = vpop.f32.mrf.mxu0 }
 0x26c   : > { %v2472_v11 = vpop.f32.mrf.mxu3  ;;  %v8034_v61 = vsel %vm7661_vm5, %v5995_v2, %v2074_v29  ;;  %v4808_v40 = vsel %vm7661_vm5, %v4806_v55, %v4807_v5  ;;  %v3456_v21 = vrot.slane %v3454_v51, 4  ;;  %v3459_v48 = vrot.slane %v3457_v3, 5  ;;  %v6874_v3 = vld [vmem:[%s7101_s6 + $0xbc] sm:$0x1] }
 0x26d   : > { %v2800_v50 = vor.u32 %v2798_v17, %v8028_v63  ;;  %v2699_v35 = vmax.f32 %v2667_v12, 0.0  ;;  %v2473_v44 = vadd.f32 %v2472_v11, %v2383_v8  ;;  %v8039_v26 = vpack.c.b16 %v3840_v31, %v3839_v60  ;;  %v9270_v31 = vld [vmem:[#allocation9_spill] sm:$0xff]  ;;  %v6599_v11 = vld [vmem:[#allocation3 + $0x70] sm:$0xff] }
 0x26e   : > { %v4925_v54 = vunpack.c.l.b16 %v4805_v27  ;;  %v4926_v46 = vunpack.c.l.b16 %v4808_v40  ;;  %v2076_v55 = vrot.slane %v2074_v29, 4  ;;  %v8046_v5 = vpack.c.b16 %v2124_v28, %v2123_v49  ;;  %v322_v29 = vld [vmem:[#allocation2 + $0x44] sm:$0x1]  ;;  %4602 = vmatpush.bf16.msrb.mxu1 %v6599_v11 }
 0x26f   : > { %v3098_v33 = vsel %vm7930_vm12, %v2800_v50, %v3097_v38  ;;  %v2731_v2 = vpack.c.bf16 %v2699_v35, %v2699_v35  ;;  %v2562_v10 = vadd.f32 %v2561_v6, %v2473_v44  ;;  %v8043_v42 = vld [vmem:[#allocation2 + $0x1c] sm:$0xf]  ;;  %4114 = vmatmul.bf16.gmra.mxu1 %v8039_v26  ;;  %v2077_v27 = vrot.slane %v6874_v3, 5  ;;  %v3101_v3 = vld [vmem:[#allocation2 + $0x2c] sm:$0x1] }
 0x270   : > { %3099 = vst [vmem:[#allocation2 + $0x24] sm:$0xf] %v3098_v33  ;;  %v8048_v17 = vld [vmem:[#allocation2 + $0x20] sm:$0x1]  ;;  %v3463_v51 = vshll.u32 %v8043_v42, 16  ;;  %v8052_v12 = vpack.c.b16 %v4926_v46, %v4925_v54  ;;  %v3467_v6 = vshrl.u32 %v8043_v42, 16  ;;  %v3460_v40 = vor.u32 %v3459_v48, %v3456_v21 }
 0x271   : > { %v2803_v8 = vshrl.u32 %v2731_v2, 16  ;;  %v2632_v38 = vadd.f32 %v2562_v10, %v9270_v31  ;;  %v3473_v28 = vshll.u32 %v8048_v17, 16  ;;  %v323_v50 = vsel %vm7853_vm10, 0, %v322_v29  ;;  %v2385_v46 = vpop.f32.mrf.mxu2 }
 0x272   : > { %9269 = vst [vmem:[#allocation27_spill] sm:$0xff] %v8052_v12  ;;  %v3465_v49 = vrot.slane %v3463_v51, 5  ;;  %v2806_v44 = vshll.u32 %v2731_v2, 16  ;;  %v3469_v33 = vrot.slane %v3467_v6, 4  ;;  %v2801_v10 = vrot.slane %v8028_v63, 4 }
 0x273   : > { %v2805_v35 = vrot.slane %v2803_v8, 7  ;;  %v2668_v54 = vadd.f32 %v7907_v18, %v2632_v38  ;;  %324 = vst [vmem:[#allocation2 + $0x44] sm:$0x1] %v323_v50  ;;  %v2078_v21 = vsel %vm7661_vm5, %v2076_v55, %v2077_v27  ;;  %v6360_v48 = vrot.slane %v8008_v32, 9  ;;  %v2566_v60 = vpop.f32.mrf.mxu0  ;;  %v6875_v50 = vld [vmem:[%s7101_s6 + $0xc4] sm:$0xf] }
 0x274   : > { %v2474_v31 = vpop.f32.mrf.mxu3  ;;  %v4811_v51 = vrot.slane %v8043_v42, 5  ;;  %v3461_v6 = vrot.slane %v3460_v40, 4  ;;  %v3470_v11 = vor.u32 %v3469_v33, %v3465_v49  ;;  %v3475_v12 = vrot.slane %v3473_v28, 5  ;;  %v269_v28 = vld [vmem:[#allocation2 + $0x48] sm:$0x1] }
 0x275   : > { %v2808_v8 = vor.u32 %v2806_v44, %v2805_v35  ;;  %v2810_v2 = vrot.slane %v2805_v35, 4  ;;  %v2700_v29 = vmax.f32 %v2668_v54, 0.0  ;;  %v2475_v38 = vadd.f32 %v2474_v31, %v2385_v46  ;;  %v9271_v46 = vld [vmem:[#allocation10_spill] sm:$0xff] }
 0x276   : > { %v2082_v23 = vrot.slane %v6875_v50, 5  ;;  %2427 = vmatmul.bf16.gmra.mxu2 %v7941_v0  ;;  %2605 = vmatmul.bf16.gmra.mxu0 %v8046_v5  ;;  %v3471_v42 = vrot.slane %v3470_v11, 4  ;;  %v2126_v40 = vunpack.c.l.b16 %v2078_v21  ;;  %v4812_v44 = vsel %vm7661_vm5, %v6360_v48, %v4811_v51  ;;  %v6876_v31 = vld [vmem:[%s7101_s6 + $0xc0] sm:$0xf] }
 0x277   : > { %v2809_v63 = vsel %vm7944_vm14, %v2801_v10, %v2808_v8  ;;  %v3102_v55 = vsel %vm7839_vm8, %v2810_v2, %v3101_v3  ;;  %v2732_v27 = vpack.c.bf16 %v2700_v29, %v2700_v29  ;;  %v2564_v32 = vadd.f32 %v2563_v57, %v2475_v38  ;;  %v8071_v14 = vld [vmem:[#allocation2 + $0x24] sm:$0xf] }
 0x278   : > { %3100 = vst [vmem:[#allocation2 + $0x28] sm:$0xf] %v2809_v63  ;;  %v3478_v35 = vshrl.u32 %v8071_v14, 16  ;;  %v3466_v0 = vsel %vm7128_vm2, %v3461_v6, %v3465_v49  ;;  %v270_v33 = vsel %vm7839_vm8, 0, %v269_v28  ;;  %v3476_v10 = vsel %vm7128_vm2, %v3471_v42, %v3475_v12  ;;  %v3104_v6 = vld [vmem:[#allocation2 + $0x30] sm:$0xf] }
 0x279   : > { %3103 = vst [vmem:[#allocation2 + $0x2c] sm:$0x1] %v3102_v55  ;;  %v2812_v54 = vshrl.u32 %v2732_v27, 16  ;;  %v2633_v57 = vadd.f32 %v2564_v32, %v9271_v46  ;;  %2516 = vmatmul.bf16.gmra.mxu3 %v7980_v53  ;;  %v3481_v3 = vshll.u32 %v8071_v14, 16  ;;  %v5996_v21 = vrot.slane %v6876_v31, 9  ;;  %v2388_v38 = vpop.f32.mrf.mxu2 }
 0x27a   : > { %271 = vst [vmem:[#allocation2 + $0x48] sm:$0x1] %v270_v33  ;;  %v4814_v48 = vrot.slane %v8048_v17, 5  ;;  %v2815_v2 = vshll.u32 %v2732_v27, 16  ;;  %v3842_v49 = vunpack.c.l.b16 %v3476_v10  ;;  %v3841_v50 = vunpack.c.l.b16 %v3466_v0 }
 0x27b   : > { %v8089_v8 = vrot.slane %v2812_v54, 7  ;;  %v2669_v29 = vadd.f32 %v7907_v18, %v2633_v57  ;;  %v3480_v63 = vrot.slane %v3478_v35, 4  ;;  %v3483_v12 = vrot.slane %v3481_v3, 5  ;;  %v2568_v46 = vpop.f32.mrf.mxu0 }
 0x27c   : > { %v2477_v11 = vpop.f32.mrf.mxu3  ;;  %v4813_v55 = vrot.slane %v4811_v51, 4  ;;  %v9272_v17 = vunpack.c.l.b16 %v8034_v61  ;;  %v8097_v27 = vpack.c.b16 %v3842_v49, %v3841_v50  ;;  %v8101_v57 = vsel %vm7661_vm5, %v5996_v21, %v2082_v23  ;;  %v6877_v61 = vld [vmem:[%s7101_s6 + $0xc8] sm:$0x1]  ;;  %v3108_v50 = vld [vmem:[#allocation2 + $0x38] sm:$0x1] }
 0x27d   : > { %v2817_v32 = vor.u32 %v2815_v2, %v8089_v8  ;;  %v2701_v42 = vmax.f32 %v2669_v29, 0.0  ;;  %v2478_v28 = vadd.f32 %v2477_v11, %v2388_v38  ;;  %v2084_v0 = vrot.slane %v2082_v23, 4  ;;  %v9273_v38 = vld [vmem:[#allocation11_spill] sm:$0xff] }
 0x27e   : > { %v8095_v54 = vpack.c.b16 %v2126_v40, %v9272_v17  ;;  %v4815_v35 = vsel %vm7661_vm5, %v4813_v55, %v4814_v48  ;;  %v2085_v40 = vrot.slane %v6877_v61, 5  ;;  %v3484_v21 = vor.u32 %v3483_v12, %v3480_v63  ;;  %v6590_v61 = vld [vmem:[#allocation3 + $0x28] sm:$0xff] }
 0x27f   : > { %v3105_v51 = vsel %vm7930_vm12, %v2817_v32, %v3104_v6  ;;  %v2733_v33 = vpack.c.bf16 %v2701_v42, %v2701_v42  ;;  %v2567_v10 = vadd.f32 %v2566_v60, %v2478_v28  ;;  %v8107_v3 = vld [vmem:[#allocation2 + $0x28] sm:$0xf]  ;;  %4119 = vmatmul.bf16.gmra.mxu1 %v8097_v27  ;;  %v4927_v2 = vunpack.c.l.b16 %v4812_v44  ;;  %v325_v42 = vld [vmem:[#allocation2 + $0x50] sm:$0x1]  ;;  %4514 = vmatpush.bf16.msrb.mxu0 %v6590_v61 }
 0x280   : > { %3106 = vst [vmem:[#allocation2 + $0x30] sm:$0xf] %v3105_v51  ;;  %v8111_v31 = vld [vmem:[#allocation2 + $0x2c] sm:$0x1]  ;;  %v3487_v23 = vshll.u32 %v8107_v3, 16  ;;  %v4928_v29 = vunpack.c.l.b16 %v4815_v35  ;;  %v3491_v6 = vshrl.u32 %v8107_v3, 16 }
 0x281   : > { %v2820_v48 = vshrl.u32 %v2733_v33, 16  ;;  %v2634_v49 = vadd.f32 %v2567_v10, %v9273_v38  ;;  %v2823_v11 = vshll.u32 %v2733_v33, 16  ;;  %v3497_v32 = vshll.u32 %v8111_v31, 16  ;;  %v2390_v44 = vpop.f32.mrf.mxu2  ;;  %v6630_v51 = vld [vmem:[#allocation3 + $0x168] sm:$0xff] }
 0x282   : > { %v3489_v55 = vrot.slane %v3487_v23, 5  ;;  %v8118_v28 = vpack.c.b16 %v4928_v29, %v4927_v2  ;;  %v3493_v17 = vrot.slane %v3491_v6, 4  ;;  %v326_v35 = vsel %vm7853_vm10, 0, %v325_v42  ;;  %v6622_v10 = vld [vmem:[#allocation3 + $0x128] sm:$0xff]  ;;  %4281 = vmatpush.bf16.msrb.mxu3 %v6630_v51  ;;  %v6589_v51 = vld [vmem:[#allocation3 + $0x20] sm:$0xff] }
 0x283   : > { %v2822_v63 = vrot.slane %v2820_v48, 7  ;;  %v2670_v12 = vadd.f32 %v7907_v18, %v2634_v49  ;;  %v2818_v33 = vrot.slane %v8089_v8, 4  ;;  %v3485_v23 = vrot.slane %v3484_v21, 4  ;;  %327 = vst [vmem:[#allocation2 + $0x50] sm:$0x1] %v326_v35  ;;  %4192 = vmatpush.bf16.msrb.mxu2 %v6622_v10  ;;  %4515 = vmatpush.bf16.msrb.mxu0 %v6589_v51 }
 0x284   : > { %9274 = vst [vmem:[#allocation9_spill] sm:$0xff] %v8118_v28  ;;  %v2479_v38 = vpop.f32.mrf.mxu3  ;;  %v8126_v2 = vsel %vm7661_vm5, %v2084_v0, %v2085_v40  ;;  %v4818_v29 = vrot.slane %v8107_v3, 5  ;;  %v8129_v28 = vpop.f32.mrf.mxu0  ;;  %v3494_v42 = vor.u32 %v3493_v17, %v3489_v55  ;;  %v3499_v21 = vrot.slane %v3497_v32, 5  ;;  %v272_v32 = vld [vmem:[#allocation2 + $0x54] sm:$0x1] }
 0x285   : > { %v2825_v48 = vor.u32 %v2823_v11, %v2822_v63  ;;  %v2827_v49 = vrot.slane %v2822_v63, 4  ;;  %v2702_v6 = vmax.f32 %v2670_v12, 0.0  ;;  %v2480_v60 = vadd.f32 %v2479_v38, %v2390_v44  ;;  %v6621_v12 = vld [vmem:[#allocation3 + $0x120] sm:$0xff]  ;;  %v6878_v10 = vld [vmem:[%s7101_s6 + $0xd0] sm:$0xf] }
 0x286   : > { %v3490_v8 = vsel %vm7128_vm2, %v3485_v23, %v3489_v55  ;;  %v6361_v35 = vrot.slane %v8071_v14, 9  ;;  %v6629_v44 = vld [vmem:[#allocation3 + $0x160] sm:$0xff]  ;;  %2432 = vmatmul.bf16.gmra.mxu2 %v7980_v53  ;;  %2610 = vmatmul.bf16.gmra.mxu0 %v8095_v54  ;;  %v3495_v55 = vrot.slane %v3494_v42, 4  ;;  %v2160_v14 = vunpack.c.l.b16 %v8126_v2  ;;  %v6879_v2 = vld [vmem:[%s7101_s6 + $0xcc] sm:$0xf] }
 0x287   : > { %v2826_v0 = vsel %vm7944_vm14, %v2818_v33, %v2825_v48  ;;  %v3109_v3 = vsel %vm7839_vm8, %v2827_v49, %v3108_v50  ;;  %v2734_v40 = vpack.c.bf16 %v2702_v6, %v2702_v6  ;;  %v2569_v11 = vadd.f32 %v2568_v46, %v2480_v60  ;;  %v8138_v63 = vld [vmem:[#allocation2 + $0x30] sm:$0xf]  ;;  %4193 = vmatpush.bf16.msrb.mxu2 %v6621_v12  ;;  %v3111_v6 = vld [vmem:[#allocation2 + $0x3c] sm:$0xf] }
 0x288   : > { %3107 = vst [vmem:[#allocation2 + $0x34] sm:$0xf] %v2826_v0  ;;  %v3502_v17 = vshrl.u32 %v8138_v63, 16  ;;  %v8146_v46 = vsel %vm7661_vm5, %v6361_v35, %v4818_v29  ;;  %v273_v53 = vsel %vm7839_vm8, 0, %v272_v32  ;;  %v2090_v61 = vrot.slane %v6878_v10, 5  ;;  %4282 = vmatpush.bf16.msrb.mxu3 %v6629_v44 }
 0x289   : > { %3110 = vst [vmem:[#allocation2 + $0x38] sm:$0x1] %v3109_v3  ;;  %v2829_v60 = vshrl.u32 %v2734_v40, 16  ;;  %v2635_v50 = vadd.f32 %v2569_v11, %v7976_v15  ;;  %2521 = vmatmul.bf16.gmra.mxu3 %v8046_v5  ;;  %v3500_v33 = vsel %vm7128_vm2, %v3495_v55, %v3499_v21  ;;  %v3843_v38 = vunpack.c.l.b16 %v3490_v8  ;;  %v2393_v35 = vpop.f32.mrf.mxu2  ;;  %v6620_v3 = vld [vmem:[#allocation3 + $0x118] sm:$0xff] }
 0x28a   : > { %274 = vst [vmem:[#allocation2 + $0x54] sm:$0x1] %v273_v53  ;;  %v3505_v23 = vshll.u32 %v8138_v63, 16  ;;  %v5997_v48 = vrot.slane %v6879_v2, 9  ;;  %v2832_v49 = vshll.u32 %v2734_v40, 16  ;;  %v3844_v0 = vunpack.c.l.b16 %v3500_v33  ;;  %v6628_v11 = vld [vmem:[#allocation3 + $0x158] sm:$0xff] }
 0x28b   : > { %v8157_v15 = vrot.slane %v2829_v60, 7  ;;  %v2671_v42 = vadd.f32 %v7907_v18, %v2635_v50  ;;  %v3504_v21 = vrot.slane %v3502_v17, 4  ;;  %v6588_v55 = vld [vmem:[#allocation3 + $0x18] sm:$0xff]  ;;  %v4820_v32 = vrot.slane %v4818_v29, 4  ;;  %4194 = vmatpush.bf16.msrb.mxu2 %v6620_v3 }
 0x28c   : > { %v2482_v12 = vpop.f32.mrf.mxu3  ;;  %v3507_v8 = vrot.slane %v3505_v23, 5  ;;  %v4821_v44 = vrot.slane %v8111_v31, 5  ;;  %v9275_v53 = vld [vmem:[#allocation12_spill] sm:$0xff]  ;;  %v8166_v2 = vpop.f32.mrf.mxu0  ;;  %v8168_v51 = vpack.c.b16 %v3844_v0, %v3843_v38  ;;  %v9276_v17 = vunpack.c.l.b16 %v8101_v57  ;;  %4283 = vmatpush.bf16.msrb.mxu3 %v6628_v11  ;;  %4516 = vmatpush.bf16.msrb.mxu0 %v6588_v55  ;;  %v6619_v57 = vld [vmem:[#allocation3 + $0x110] sm:$0xff] }
 0x28d   : > { %v8163_v60 = vadd.f32 %v9275_v53, %v7681_v45  ;;  %v2834_v40 = vor.u32 %v2832_v49, %v8157_v15  ;;  %v2703_v10 = vmax.f32 %v2671_v42, 0.0  ;;  %v2483_v50 = vadd.f32 %v2482_v12, %v2393_v35  ;;  %v9277_v12 = vld [vmem:[#allocation13_spill] sm:$0xff]  ;;  %v6598_v53 = vld [vmem:[#allocation3 + $0x68] sm:$0xff] }
 0x28e   : > { %v8172_v33 = vpack.c.b16 %v2160_v14, %v9276_v17  ;;  %v8174_v29 = vrot.slane %v2090_v61, 4  ;;  %v4822_v45 = vsel %vm7661_vm5, %v4820_v32, %v4821_v44  ;;  %v8183_v38 = vsel %vm7661_vm5, %v5997_v48, %v2090_v61  ;;  %v6627_v14 = vld [vmem:[#allocation3 + $0x150] sm:$0xff]  ;;  %v6880_v61 = vld [vmem:[%s7101_s6 + $0xd4] sm:$0x1]  ;;  %v328_v17 = vld [vmem:[#allocation2 + $0x5c] sm:$0x1]  ;;  %4603 = vmatpush.bf16.msrb.mxu1 %v6598_v53 }
 0x28f   : > { %v3112_v31 = vsel %vm7930_vm12, %v2834_v40, %v3111_v6  ;;  %v2735_v23 = vpack.c.bf16 %v2703_v10, %v2703_v10  ;;  %v2572_v49 = vadd.f32 %v8129_v28, %v2483_v50  ;;  %v3208_v42 = vld [vmem:[#allocation2 + $0x34] sm:$0xf]  ;;  %4124 = vmatmul.bf16.gmra.mxu1 %v8168_v51  ;;  %v3508_v0 = vor.u32 %v3507_v8, %v3504_v21  ;;  %v3115_v40 = vld [vmem:[#allocation2 + $0x44] sm:$0x1]  ;;  %v6587_v21 = vld [vmem:[#allocation3 + $0x10] sm:$0xff]  ;;  %s6941_s6 = scalar_lea.hbm %s6940_s11, 128 }
 0x290   : > { %3113 = vst [vmem:[#allocation2 + $0x3c] sm:$0xf] %v3112_v31  ;;  %v8186_v35 = vld [vmem:[#allocation2 + $0x38] sm:$0x1]  ;;  %v3511_v3 = vshll.u32 %v3208_v42, 16  ;;  %v4929_v6 = vunpack.c.l.b16 %v8146_v46  ;;  %v4930_v11 = vunpack.c.l.b16 %v4822_v45  ;;  %v3515_v44 = vshrl.u32 %v3208_v42, 16  ;;  %4195 = vmatpush.bf16.msrb.mxu2 %v6619_v57  ;;  %4284 = vmatpush.bf16.msrb.mxu3 %v6627_v14  ;;  %p6942_p0 = scmp.ne.s32.totalorder %s6940_s11, %s6941_s6  ;;  %p6947_p4 = scmp.lt.s32.totalorder %s6945_s14, %s6941_s6 }
 0x291   : > { %v2837_v28 = vshrl.u32 %v2735_v23, 16  ;;  %v2636_v32 = vadd.f32 %v2572_v49, %v9277_v12  ;;  %v2093_v48 = vrot.slane %v6880_v61, 5  ;;  %v2840_v55 = vshll.u32 %v2735_v23, 16  ;;  %v2395_v31 = vpop.f32.mrf.mxu2  ;;  %v6618_v23 = vld [vmem:[#allocation3 + $0x108] sm:$0xff]  ;;  %4517 = vmatpush.bf16.msrb.mxu0 %v6587_v21 }
 0x292   : > { %v8191_v10 = vrot.slane %v3511_v3, 5  ;;  %v3521_v50 = vshll.u32 %v8186_v35, 16  ;;  %v8194_v8 = vpack.c.b16 %v4930_v11, %v4929_v6  ;;  %v3517_v49 = vrot.slane %v3515_v44, 4  ;;  %v6626_v12 = vld [vmem:[#allocation3 + $0x148] sm:$0xff]  ;;  %p6943_p1 = pnand %p6942_p0, %p7067_p5  ;;  %p6948_p7 = por %p6947_p4, %p6946_p3 }
 0x293   : > { %v2839_v46 = vrot.slane %v2837_v28, 7  ;;  %v2672_v45 = vadd.f32 %v7907_v18, %v2636_v32  ;;  %v329_v57 = vsel %vm7853_vm10, 0, %v328_v17  ;;  %v2835_v3 = vrot.slane %v8157_v15, 4  ;;  %v6586_v53 = vld [vmem:[#allocation3 + $0x8] sm:$0xff] }
 0x294   : > { %9278 = vst [vmem:[#allocation10_spill] sm:$0xff] %v8194_v8  ;;  %v2484_v61 = vpop.f32.mrf.mxu3  ;;  %v3509_v13 = vrot.slane %v3508_v0, 4  ;;  %v6362_v14 = vrot.slane %v8138_v63, 9  ;;  %v4825_v6 = vrot.slane %v3208_v42, 5  ;;  %v2576_v44 = vpop.f32.mrf.mxu0  ;;  %4196 = vmatpush.bf16.msrb.mxu2 %v6618_v23  ;;  %v3518_v17 = vor.u32 %v3517_v49, %v8191_v10  ;;  %4285 = vmatpush.bf16.msrb.mxu3 %v6626_v12  ;;  %v6585_v12 = vld [vmem:[#allocation3] sm:$0xff]  ;;  %p6944_p2 = pneg %p6943_p1 }
 0x295   : > { %330 = vst [vmem:[#allocation2 + $0x5c] sm:$0x1] %v329_v57  ;;  %v2842_v11 = vor.u32 %v2840_v55, %v2839_v46  ;;  %v2844_v28 = vrot.slane %v2839_v46, 4  ;;  %v2704_v32 = vmax.f32 %v2672_v45, 0.0  ;;  %v2485_v8 = vadd.f32 %v2484_v61, %v2395_v31  ;;  %v6617_v45 = vld [vmem:[#allocation3 + $0x100] sm:$0xff]  ;;  %4518 = vmatpush.bf16.msrb.mxu0 %v6586_v53 }
 0x296   : > { %v3523_v52 = vrot.slane %v3521_v50, 5  ;;  %v4826_v15 = vsel %vm7661_vm5, %v6362_v14, %v4825_v6  ;;  %v4827_v0 = vrot.slane %v4825_v6, 4  ;;  %v6625_v31 = vld [vmem:[#allocation3 + $0x140] sm:$0xff]  ;;  %2437 = vmatmul.bf16.gmra.mxu2 %v8046_v5  ;;  %2615 = vmatmul.bf16.gmra.mxu0 %v8172_v33  ;;  %v3519_v50 = vrot.slane %v3518_v17, 4  ;;  %v275_v57 = vld [vmem:[#allocation2 + $0x60] sm:$0x1]  ;;  %p6949_p8 = pnand %p6948_p7, %p6944_p2 }
 0x297   : > { %v2843_v21 = vsel %vm7944_vm14, %v2835_v3, %v2842_v11  ;;  %v3116_v63 = vsel %vm7839_vm8, %v2844_v28, %v3115_v40  ;;  %v2736_v42 = vpack.c.bf16 %v2704_v32, %v2704_v32  ;;  %v2574_v55 = vadd.f32 %v8166_v2, %v2485_v8  ;;  %v8209_v46 = vld [vmem:[#allocation2 + $0x3c] sm:$0xf]  ;;  %v3118_v11 = vld [vmem:[#allocation2 + $0x48] sm:$0xf] }
 0x298   : > { %3114 = vst [vmem:[#allocation2 + $0x40] sm:$0xf] %v2843_v21  ;;  %v2094_v49 = vsel %vm7661_vm5, %v8174_v29, %v2093_v48  ;;  %v3526_v40 = vshrl.u32 %v8209_v46, 16  ;;  %v3514_v5 = vsel %vm7128_vm2, %v3509_v13, %v8191_v10  ;;  %v276_v8 = vsel %vm7839_vm8, 0, %v275_v57  ;;  %4197 = vmatpush.bf16.msrb.mxu2 %v6617_v45  ;;  %4286 = vmatpush.bf16.msrb.mxu3 %v6625_v31 }
 0x299   : > { %3117 = vst [vmem:[#allocation2 + $0x44] sm:$0x1] %v3116_v63  ;;  %v2846_v23 = vshrl.u32 %v2736_v42, 16  ;;  %v2637_v2 = vadd.f32 %v2574_v55, %v8163_v60  ;;  %2526 = vmatmul.bf16.gmra.mxu3 %v8095_v54  ;;  %v3524_v29 = vsel %vm7128_vm2, %v3519_v50, %v3523_v52  ;;  %v2163_v48 = vunpack.c.l.b16 %v8183_v38  ;;  %v2398_v14 = vpop.f32.mrf.mxu2  ;;  %4519 = vmatpush.bf16.msrb.mxu0 %v6585_v12 }
 0x29a   : > { %277 = vst [vmem:[#allocation2 + $0x60] sm:$0x1] %v276_v8  ;;  %v3529_v3 = vshll.u32 %v8209_v46, 16  ;;  %v4828_v60 = vrot.slane %v8186_v35, 5  ;;  %v2849_v13 = vshll.u32 %v2736_v42, 16  ;;  %v3846_v6 = vunpack.c.l.b16 %v3524_v29 }
 0x29b   : > { %v8229_v61 = vrot.slane %v2846_v23, 7  ;;  %v2673_v10 = vadd.f32 %v7907_v18, %v2637_v2  ;;  %v3845_v32 = vunpack.c.l.b16 %v3514_v5  ;;  %v2164_v52 = vunpack.c.l.b16 %v2094_v49 }
 0x29c   : > { %v2487_v28 = vpop.f32.mrf.mxu3  ;;  %v3528_v53 = vrot.slane %v3526_v40, 4  ;;  %v4829_v38 = vsel %vm7661_vm5, %v4827_v0, %v4828_v60  ;;  %v2578_v35 = vpop.f32.mrf.mxu0  ;;  %v3531_v55 = vrot.slane %v3529_v3, 5  ;;  %v4931_v18 = vunpack.c.l.b16 %v4826_v15 }
 0x29d   : > { %v2851_v17 = vor.u32 %v2849_v13, %v8229_v61  ;;  %v2705_v21 = vmax.f32 %v2673_v10, 0.0  ;;  %v2488_v63 = vadd.f32 %v2487_v28, %v2398_v14  ;;  %v8235_v42 = vpack.c.b16 %v3846_v6, %v3845_v32  ;;  %v3122_v14 = vld [vmem:[#allocation2 + $0x50] sm:$0x1] }
 0x29e   : > { %v4932_v45 = vunpack.c.l.b16 %v4829_v38  ;;  %v1901_v31 = vadd.f32 %v7694_v9, %v7700_v62  ;;  %v2165_v40 = vpack.c.b16 %v2164_v52, %v2163_v48  ;;  %v6363_v15 = vrot.slane %v8209_v46, 9  ;;  %v8249_v48 = vld [vmem:[%s9219_s2] ss:$0 sm:$0xff] }
 0x29f   : > { %v3119_v50 = vsel %vm7930_vm12, %v2851_v17, %v3118_v11  ;;  %v2737_v49 = vpack.c.bf16 %v2705_v21, %v2705_v21  ;;  %v2577_v57 = vadd.f32 %v2576_v44, %v2488_v63  ;;  %v3211_v0 = vld [vmem:[#allocation2 + $0x40] sm:$0xf]  ;;  %4129 = vmatmul.bf16.gmra.mxu1 %v8235_v42  ;;  %v3532_v9 = vor.u32 %v3531_v55, %v3528_v53  ;;  %v331_v44 = vld [vmem:[#allocation2 + $0x68] sm:$0x1] }
 0x2a0   : > { %3120 = vst [vmem:[#allocation2 + $0x48] sm:$0xf] %v3119_v50  ;;  %v3212_v23 = vld [vmem:[#allocation2 + $0x44] sm:$0x1]  ;;  %v3535_v2 = vshll.u32 %v3211_v0, 16  ;;  %v8242_v5 = vpack.c.b16 %v4932_v45, %v4931_v18  ;;  %v3539_v62 = vshrl.u32 %v3211_v0, 16 }
 0x2a1   : > { %v2854_v8 = vshrl.u32 %v2737_v49, 16  ;;  %v2638_v12 = vadd.f32 %v2577_v57, %v7696_v56  ;;  %v2857_v29 = vshll.u32 %v2737_v49, 16  ;;  %v3545_v60 = vshll.u32 %v3212_v23, 16  ;;  %v2400_v46 = vpop.f32.mrf.mxu2 }
 0x2a2   : > { %v3537_v3 = vrot.slane %v3535_v2, 5  ;;  %v4832_v13 = vrot.slane %v3211_v0, 5  ;;  %v3541_v11 = vrot.slane %v3539_v62, 4  ;;  %v332_v56 = vsel %vm7853_vm10, 0, %v331_v44 }
 0x2a3   : > { %v2856_v10 = vrot.slane %v2854_v8, 7  ;;  %v2674_v6 = vadd.f32 %v8249_v48, %v2638_v12  ;;  %v2852_v28 = vrot.slane %v8229_v61, 4  ;;  %333 = vst [vmem:[#allocation2 + $0x68] sm:$0x1] %v332_v56  ;;  %v4835_v38 = vrot.slane %v3212_v23, 5 }
 0x2a4   : > { %v2489_v32 = vpop.f32.mrf.mxu3  ;;  %v4833_v52 = vsel %vm7661_vm5, %v6363_v15, %v4832_v13  ;;  %v4834_v53 = vrot.slane %v4832_v13, 4  ;;  %v2581_v18 = vpop.f32.mrf.mxu0  ;;  %v3533_v45 = vrot.slane %v3532_v9, 4  ;;  %v3542_v50 = vor.u32 %v3541_v11, %v3537_v3  ;;  %v278_v12 = vld [vmem:[#allocation2 + $0x6c] sm:$0x1]  ;;  %v3125_v11 = vld [vmem:[#allocation2 + $0x54] sm:$0xf] }
 0x2a5   : > { %v2859_v17 = vor.u32 %v2857_v29, %v2856_v10  ;;  %v2861_v21 = vrot.slane %v2856_v10, 4  ;;  %v2706_v63 = vmax.f32 %v2674_v6, 0.0  ;;  %v2490_v55 = vadd.f32 %v2489_v32, %v2400_v46 }
 0x2a6   : > { %v3547_v49 = vrot.slane %v3545_v60, 5  ;;  %v4836_v57 = vsel %vm7661_vm5, %v4834_v53, %v4835_v38  ;;  %2442 = vmatmul.bf16.gmra.mxu2 %v8095_v54  ;;  %2620 = vmatmul.bf16.gmra.mxu0 %v2165_v40  ;;  %v3543_v8 = vrot.slane %v3542_v50, 4  ;;  %v4933_v62 = vunpack.c.l.b16 %v4833_v52 }
 0x2a7   : > { %v2860_v61 = vsel %vm7944_vm14, %v2852_v28, %v2859_v17  ;;  %v3123_v0 = vsel %vm7839_vm8, %v2861_v21, %v3122_v14  ;;  %v2738_v2 = vpack.c.bf16 %v2706_v63, %v2706_v63  ;;  %v2579_v15 = vadd.f32 %v2578_v35, %v2490_v55  ;;  %v8263_v23 = vld [vmem:[#allocation2 + $0x48] sm:$0xf] }
 0x2a8   : > { %3121 = vst [vmem:[#allocation2 + $0x4c] sm:$0xf] %v2860_v61  ;;  %v3550_v9 = vshrl.u32 %v8263_v23, 16  ;;  %v4934_v29 = vunpack.c.l.b16 %v4836_v57  ;;  %v3538_v35 = vsel %vm7128_vm2, %v3533_v45, %v3537_v3  ;;  %v279_v13 = vsel %vm7839_vm8, 0, %v278_v12 }
 0x2a9   : > { %3124 = vst [vmem:[#allocation2 + $0x50] sm:$0x1] %v3123_v0  ;;  %v2863_v60 = vshrl.u32 %v2738_v2, 16  ;;  %v2639_v44 = vadd.f32 %v2579_v15, %v1901_v31  ;;  %2531 = vmatmul.bf16.gmra.mxu3 %v8172_v33  ;;  %v3548_v54 = vsel %vm7128_vm2, %v3543_v8, %v3547_v49  ;;  %v3553_v40 = vshll.u32 %v8263_v23, 16  ;;  %v2403_v46 = vpop.f32.mrf.mxu2 }
 0x2aa   : > { %280 = vst [vmem:[#allocation2 + $0x6c] sm:$0x1] %v279_v13  ;;  %v8275_v10 = vpack.c.b16 %v4934_v29, %v4933_v62  ;;  %v2866_v6 = vshll.u32 %v2738_v2, 16  ;;  %v3848_v33 = vunpack.c.l.b16 %v3548_v54  ;;  %v3847_v3 = vunpack.c.l.b16 %v3538_v35 }
 0x2ab   : > { %v2865_v14 = vrot.slane %v2863_v60, 7  ;;  %v2675_v31 = vadd.f32 %v8249_v48, %v2639_v44  ;;  %v3552_v28 = vrot.slane %v3550_v9, 4  ;;  %v3555_v17 = vrot.slane %v3553_v40, 5  ;;  %v6597_v9 = vld [vmem:[#allocation3 + $0x60] sm:$0xff]  ;;  %v334_v60 = vld [vmem:[#allocation2 + $0x74] sm:$0x1] }
 0x2ac   : > { %v2492_v56 = vpop.f32.mrf.mxu3  ;;  %v2583_v38 = vpop.f32.mrf.mxu0  ;;  %v8278_v21 = vpack.c.b16 %v3848_v33, %v3847_v3  ;;  %v1906_v49 = vadd.f32 %v7704_v16, %v7711_v47  ;;  %v6364_v0 = vrot.slane %v8263_v23, 9  ;;  %v3129_v16 = vld [vmem:[#allocation2 + $0x5c] sm:$0x1]  ;;  %4604 = vmatpush.bf16.msrb.mxu1 %v6597_v9  ;;  %v335_v23 = vsel %vm7853_vm10, 0, %v334_v60 }
 0x2ad   : > { %v2868_v32 = vor.u32 %v2866_v6, %v2865_v14  ;;  %v2707_v52 = vmax.f32 %v2675_v31, 0.0  ;;  %v2493_v53 = vadd.f32 %v2492_v56, %v2403_v46  ;;  %v3556_v8 = vor.u32 %v3555_v17, %v3552_v28  ;;  %v6567_v6 = vld [vmem:[#allocation2] sm:$0xff]  ;;  %336 = vst [vmem:[#allocation2 + $0x74] sm:$0x1] %v335_v23 }
 0x2ae   : > { %v2869_v40 = vrot.slane %v2865_v14, 4 }
 0x2af   : > { %v3126_v63 = vsel %vm7930_vm12, %v2868_v32, %v3125_v11  ;;  %v2739_v55 = vpack.c.bf16 %v2707_v52, %v2707_v52  ;;  %v2582_v45 = vadd.f32 %v2581_v18, %v2493_v53  ;;  %v3214_v50 = vld [vmem:[#allocation2 + $0x4c] sm:$0xf]  ;;  %4134 = vmatmul.bf16.gmra.mxu1 %v8278_v21  ;;  %v3557_v52 = vrot.slane %v3556_v8, 4 }
 0x2b0   : > { %3127 = vst [vmem:[#allocation2 + $0x54] sm:$0xf] %v3126_v63  ;;  %v3215_v57 = vld [vmem:[#allocation2 + $0x50] sm:$0x1]  ;;  %v3559_v61 = vshll.u32 %v3214_v50, 16  ;;  %v3563_v12 = vshrl.u32 %v3214_v50, 16 }
 0x2b1   : > { %v2871_v2 = vshrl.u32 %v2739_v55, 16  ;;  %v2640_v15 = vadd.f32 %v2582_v45, %v7706_v7  ;;  %v2874_v62 = vshll.u32 %v2739_v55, 16  ;;  %v3569_v18 = vshll.u32 %v3215_v57, 16  ;;  %v2405_v13 = vpop.f32.mrf.mxu2 }
 0x2b2   : > { %v3561_v29 = vrot.slane %v3559_v61, 5  ;;  %v4839_v44 = vrot.slane %v3214_v50, 5  ;;  %v3565_v54 = vrot.slane %v3563_v12, 4  ;;  %v4842_v33 = vrot.slane %v3215_v57, 5 }
 0x2b3   : > { %v2873_v35 = vrot.slane %v2871_v2, 7  ;;  %v2676_v47 = vadd.f32 %v8249_v48, %v2640_v15  ;;  %v3571_v17 = vrot.slane %v3569_v18, 5 }
 0x2b4   : > { %v2494_v7 = vpop.f32.mrf.mxu3  ;;  %v4840_v31 = vsel %vm7661_vm5, %v6364_v0, %v4839_v44  ;;  %v4841_v46 = vrot.slane %v4839_v44, 4  ;;  %v2586_v32 = vpop.f32.mrf.mxu0  ;;  %v3566_v53 = vor.u32 %v3565_v54, %v3561_v29  ;;  %v281_v0 = vld [vmem:[#allocation2 + $0x78] sm:$0x1] }
 0x2b5   : > { %v2876_v11 = vor.u32 %v2874_v62, %v2873_v35  ;;  %v2878_v56 = vrot.slane %v2873_v35, 4  ;;  %v2708_v3 = vmax.f32 %v2676_v47, 0.0  ;;  %v2495_v28 = vadd.f32 %v2494_v7, %v2405_v13  ;;  %v3132_v13 = vld [vmem:[#allocation2 + $0x60] sm:$0xf] }
 0x2b6   : > { %v4843_v63 = vsel %vm7661_vm5, %v4841_v46, %v4842_v33  ;;  %4198 = vmatmul.bf16.vlgmr.msrb.gmra.mxu2 %v8039_v26  ;;  %4520 = vmatmul.bf16.vlgmr.msrb.gmra.mxu0 %v6567_v6  ;;  %v3567_v61 = vrot.slane %v3566_v53, 4  ;;  %v4935_v15 = vunpack.c.l.b16 %v4840_v31  ;;  %v282_v62 = vsel %vm7839_vm8, 0, %v281_v0 }
 0x2b7   : > { %v2877_v14 = vsel %vm7944_vm14, %v2869_v40, %v2876_v11  ;;  %v3130_v55 = vsel %vm7839_vm8, %v2878_v56, %v3129_v16  ;;  %v2740_v45 = vpack.c.bf16 %v2708_v3, %v2708_v3  ;;  %v2584_v50 = vadd.f32 %v2583_v38, %v2495_v28  ;;  %v8298_v57 = vld [vmem:[#allocation2 + $0x54] sm:$0xf]  ;;  %283 = vst [vmem:[#allocation2 + $0x78] sm:$0x1] %v282_v62 }
 0x2b8   : > { %3128 = vst [vmem:[#allocation2 + $0x58] sm:$0xf] %v2877_v14  ;;  %v3574_v2 = vshrl.u32 %v8298_v57, 16  ;;  %v4936_v8 = vunpack.c.l.b16 %v4843_v63  ;;  %v3562_v38 = vsel %vm7128_vm2, %v3557_v52, %v3561_v29  ;;  %v3572_v26 = vsel %vm7128_vm2, %v3567_v61, %v3571_v17 }
 0x2b9   : > { %3131 = vst [vmem:[#allocation2 + $0x5c] sm:$0x1] %v3130_v55  ;;  %v2880_v12 = vshrl.u32 %v2740_v45, 16  ;;  %v2641_v9 = vadd.f32 %v2584_v50, %v1906_v49  ;;  %4287 = vmatmul.bf16.vlgmr.msrb.gmra.mxu3 %v8097_v27  ;;  %v3577_v18 = vshll.u32 %v8298_v57, 16  ;;  %v2883_v35 = vshll.u32 %v2740_v45, 16  ;;  %v2408_v16 = vpop.f32.mrf.mxu2 }
 0x2ba   : > { %v8310_v60 = vpack.c.b16 %v4936_v8, %v4935_v15  ;;  %v3850_v47 = vunpack.c.l.b16 %v3572_v26  ;;  %v3849_v29 = vunpack.c.l.b16 %v3562_v38  ;;  %v3576_v23 = vrot.slane %v3574_v2, 4 }
 0x2bb   : > { %v2882_v44 = vrot.slane %v2880_v12, 7  ;;  %v2677_v49 = vadd.f32 %v8249_v48, %v2641_v9  ;;  %v3579_v46 = vrot.slane %v3577_v18, 5  ;;  %v1911_v52 = vadd.f32 %v7721_v41, %v7731_v1  ;;  %v3136_v12 = vld [vmem:[#allocation2 + $0x68] sm:$0x1] }
 0x2bc   : > { %v2497_v54 = vpop.f32.mrf.mxu3  ;;  %v2588_v31 = vpop.f32.mrf.mxu0  ;;  %v8313_v33 = vpack.c.b16 %v3850_v47, %v3849_v29  ;;  %v6365_v63 = vrot.slane %v8298_v57, 9 }
 0x2bd   : > { %v2885_v40 = vor.u32 %v2883_v35, %v2882_v44  ;;  %v2709_v7 = vmax.f32 %v2677_v49, 0.0  ;;  %v2498_v6 = vadd.f32 %v2497_v54, %v2408_v16  ;;  %v3580_v45 = vor.u32 %v3579_v46, %v3576_v23  ;;  %v6568_v54 = vld [vmem:[#allocation2 + $0xc] sm:$0xff] }
 0x2be   : > { %v2886_v57 = vrot.slane %v2882_v44, 4 }
 0x2bf   : > { %v3133_v11 = vsel %vm7930_vm12, %v2885_v40, %v3132_v13  ;;  %v2741_v56 = vpack.c.bf16 %v2709_v7, %v2709_v7  ;;  %v2587_v3 = vadd.f32 %v2586_v32, %v2498_v6  ;;  %v3217_v28 = vld [vmem:[#allocation2 + $0x58] sm:$0xf]  ;;  %4139 = vmatmul.bf16.gmra.mxu1 %v8313_v33  ;;  %v337_v32 = vld [vmem:[#allocation2 + $0x80] sm:$0x1]  ;;  %v3581_v29 = vrot.slane %v3580_v45, 4 }
 0x2c0   : > { %3134 = vst [vmem:[#allocation2 + $0x60] sm:$0xf] %v3133_v11  ;;  %v3218_v53 = vld [vmem:[#allocation2 + $0x5c] sm:$0x1]  ;;  %v3583_v17 = vshll.u32 %v3217_v28, 16  ;;  %v3587_v50 = vshrl.u32 %v3217_v28, 16 }
 0x2c1   : > { %v2888_v14 = vshrl.u32 %v2741_v56, 16  ;;  %v2642_v55 = vadd.f32 %v2587_v3, %v7723_v43  ;;  %v2891_v61 = vshll.u32 %v2741_v56, 16  ;;  %v3593_v2 = vshll.u32 %v3218_v53, 16  ;;  %v2410_v1 = vpop.f32.mrf.mxu2 }
 0x2c2   : > { %v3585_v0 = vrot.slane %v3583_v17, 5  ;;  %v4846_v15 = vrot.slane %v3217_v28, 5  ;;  %v3589_v9 = vrot.slane %v3587_v50, 4  ;;  %v338_v38 = vsel %vm7853_vm10, 0, %v337_v32  ;;  %v284_v28 = vld [vmem:[#allocation2 + $0x84] sm:$0x1] }
 0x2c3   : > { %v2890_v8 = vrot.slane %v2888_v14, 7  ;;  %v2678_v41 = vadd.f32 %v8249_v48, %v2642_v55  ;;  %339 = vst [vmem:[#allocation2 + $0x80] sm:$0x1] %v338_v38  ;;  %v4849_v18 = vrot.slane %v3218_v53, 5  ;;  %v3595_v40 = vrot.slane %v3593_v2, 5 }
 0x2c4   : > { %v2499_v62 = vpop.f32.mrf.mxu3  ;;  %v4847_v43 = vsel %vm7661_vm5, %v6365_v63, %v4846_v15  ;;  %v4848_v26 = vrot.slane %v4846_v15, 4  ;;  %v2591_v13 = vpop.f32.mrf.mxu0  ;;  %v3590_v23 = vor.u32 %v3589_v9, %v3585_v0  ;;  %v285_v45 = vsel %vm7839_vm8, 0, %v284_v28  ;;  %v340_v28 = vld [vmem:[#allocation2 + $0x8c] sm:$0x1] }
 0x2c5   : > { %v2893_v35 = vor.u32 %v2891_v61, %v2890_v8  ;;  %v2895_v49 = vrot.slane %v2890_v8, 4  ;;  %v2710_v16 = vmax.f32 %v2678_v41, 0.0  ;;  %v2500_v47 = vadd.f32 %v2499_v62, %v2410_v1  ;;  %286 = vst [vmem:[#allocation2 + $0x84] sm:$0x1] %v285_v45 }
 0x2c6   : > { %v4850_v7 = vsel %vm7661_vm5, %v4848_v26, %v4849_v18  ;;  %4203 = vmatmul.bf16.gmra.mxu2 %v8097_v27  ;;  %4525 = vmatmul.bf16.gmra.mxu0 %v6568_v54  ;;  %v3591_v3 = vrot.slane %v3590_v23, 4  ;;  %v4937_v17 = vunpack.c.l.b16 %v4847_v43 }
 0x2c7   : > { %v2894_v44 = vsel %vm7944_vm14, %v2886_v57, %v2893_v35  ;;  %v3137_v6 = vsel %vm7839_vm8, %v2895_v49, %v3136_v12  ;;  %v2742_v46 = vpack.c.bf16 %v2710_v16, %v2710_v16  ;;  %v2589_v11 = vadd.f32 %v2588_v31, %v2500_v47  ;;  %v8333_v56 = vld [vmem:[#allocation2 + $0x60] sm:$0xf]  ;;  %v3139_v12 = vld [vmem:[#allocation2 + $0x6c] sm:$0xf] }
 0x2c8   : > { %3135 = vst [vmem:[#allocation2 + $0x64] sm:$0xf] %v2894_v44  ;;  %v3598_v53 = vshrl.u32 %v8333_v56, 16  ;;  %v4938_v63 = vunpack.c.l.b16 %v4850_v7  ;;  %v3586_v31 = vsel %vm7128_vm2, %v3581_v29, %v3585_v0  ;;  %v3596_v27 = vsel %vm7128_vm2, %v3591_v3, %v3595_v40 }
 0x2c9   : > { %3138 = vst [vmem:[#allocation2 + $0x68] sm:$0x1] %v3137_v6  ;;  %v2897_v14 = vshrl.u32 %v2742_v46, 16  ;;  %v2643_v55 = vadd.f32 %v2589_v11, %v1911_v52  ;;  %4292 = vmatmul.bf16.gmra.mxu3 %v8168_v51  ;;  %v3601_v50 = vshll.u32 %v8333_v56, 16  ;;  %v2900_v32 = vshll.u32 %v2742_v46, 16  ;;  %v2413_v15 = vpop.f32.mrf.mxu2  ;;  %v6596_v46 = vld [vmem:[#allocation3 + $0x58] sm:$0xff] }
 0x2ca   : > { %v8345_v61 = vpack.c.b16 %v4938_v63, %v4937_v17  ;;  %v3852_v8 = vunpack.c.l.b16 %v3596_v27  ;;  %v3851_v0 = vunpack.c.l.b16 %v3586_v31  ;;  %v3600_v1 = vrot.slane %v3598_v53, 4  ;;  %v8357_v17 = vpop.f32.mrf.mxu1  ;;  %4605 = vmatpush.bf16.msrb.mxu1 %v6596_v46 }
 0x2cb   : > { %v2899_v2 = vrot.slane %v2897_v14, 7  ;;  %v2679_v52 = vadd.f32 %v8249_v48, %v2643_v55  ;;  %v3603_v43 = vrot.slane %v3601_v50, 5  ;;  %v1916_v47 = vadd.f32 %v7741_v34, %v7751_v20  ;;  %v3143_v20 = vld [vmem:[#allocation2 + $0x74] sm:$0x1] }
 0x2cc   : > { %v2502_v41 = vpop.f32.mrf.mxu3  ;;  %v2593_v62 = vpop.f32.mrf.mxu0  ;;  %v8348_v26 = vpack.c.b16 %v3852_v8, %v3851_v0  ;;  %v6366_v23 = vrot.slane %v8333_v56, 9 }
 0x2cd   : > { %v2902_v9 = vor.u32 %v2900_v32, %v2899_v2  ;;  %v2711_v38 = vmax.f32 %v2679_v52, 0.0  ;;  %v2503_v57 = vadd.f32 %v2502_v41, %v2413_v15  ;;  %v3604_v44 = vor.u32 %v3603_v43, %v3600_v1  ;;  %v6569_v41 = vld [vmem:[#allocation2 + $0x18] sm:$0xff] }
 0x2ce   : > { %v2903_v56 = vrot.slane %v2899_v2, 4 }
 0x2cf   : > { %v3140_v18 = vsel %vm7930_vm12, %v2902_v9, %v3139_v12  ;;  %v2743_v35 = vpack.c.bf16 %v2711_v38, %v2711_v38  ;;  %v2592_v49 = vadd.f32 %v2591_v13, %v2503_v57  ;;  %v3220_v16 = vld [vmem:[#allocation2 + $0x64] sm:$0xf]  ;;  %4144 = vmatmul.bf16.gmra.mxu1 %v8348_v26  ;;  %v3605_v0 = vrot.slane %v3604_v44, 4 }
 0x2d0   : > { %3141 = vst [vmem:[#allocation2 + $0x6c] sm:$0xf] %v3140_v18  ;;  %v3221_v54 = vld [vmem:[#allocation2 + $0x68] sm:$0x1]  ;;  %v3607_v29 = vshll.u32 %v3220_v16, 16  ;;  %v3611_v6 = vshrl.u32 %v3220_v16, 16 }
 0x2d1   : > { %v2905_v40 = vshrl.u32 %v2743_v35, 16  ;;  %v2644_v7 = vadd.f32 %v2592_v49, %v7743_v39  ;;  %v2908_v11 = vshll.u32 %v2743_v35, 16  ;;  %v3617_v13 = vshll.u32 %v3221_v54, 16  ;;  %v2415_v14 = vpop.f32.mrf.mxu2 }
 0x2d2   : > { %v3609_v3 = vrot.slane %v3607_v29, 5  ;;  %v4853_v53 = vrot.slane %v3220_v16, 5  ;;  %v3613_v55 = vrot.slane %v3611_v6, 4  ;;  %v341_v39 = vsel %vm7853_vm10, 0, %v340_v28  ;;  %v287_v16 = vld [vmem:[#allocation2 + $0x90] sm:$0x1]  ;;  %v8384_v28 = vpop.f32.mrf.mxu1 }
 0x2d3   : > { %v2907_v34 = vrot.slane %v2905_v40, 7  ;;  %v2680_v63 = vadd.f32 %v8249_v48, %v2644_v7  ;;  %342 = vst [vmem:[#allocation2 + $0x8c] sm:$0x1] %v341_v39  ;;  %v4856_v50 = vrot.slane %v3221_v54, 5  ;;  %v3619_v9 = vrot.slane %v3617_v13, 5 }
 0x2d4   : > { %v2504_v31 = vpop.f32.mrf.mxu3  ;;  %v4854_v45 = vsel %vm7661_vm5, %v6366_v23, %v4853_v53  ;;  %v4855_v27 = vrot.slane %v4853_v53, 4  ;;  %v2596_v12 = vpop.f32.mrf.mxu0  ;;  %v3614_v1 = vor.u32 %v3613_v55, %v3609_v3  ;;  %v288_v44 = vsel %vm7839_vm8, 0, %v287_v16 }
 0x2d5   : > { %v2910_v32 = vor.u32 %v2908_v11, %v2907_v34  ;;  %v2912_v52 = vrot.slane %v2907_v34, 4  ;;  %v2712_v15 = vmax.f32 %v2680_v63, 0.0  ;;  %v2505_v8 = vadd.f32 %v2504_v31, %v2415_v14  ;;  %289 = vst [vmem:[#allocation2 + $0x90] sm:$0x1] %v288_v44 }
 0x2d6   : > { %v4857_v38 = vsel %vm7661_vm5, %v4855_v27, %v4856_v50  ;;  %4208 = vmatmul.bf16.gmra.mxu2 %v8168_v51  ;;  %4530 = vmatmul.bf16.gmra.mxu0 %v6569_v41  ;;  %v3615_v49 = vrot.slane %v3614_v1, 4  ;;  %v4939_v29 = vunpack.c.l.b16 %v4854_v45 }
 0x2d7   : > { %v2911_v2 = vsel %vm7944_vm14, %v2903_v56, %v2910_v32  ;;  %v3144_v57 = vsel %vm7839_vm8, %v2912_v52, %v3143_v20  ;;  %v2744_v43 = vpack.c.bf16 %v2712_v15, %v2712_v15  ;;  %v2594_v18 = vadd.f32 %v2593_v62, %v2505_v8  ;;  %v8370_v35 = vld [vmem:[#allocation2 + $0x6c] sm:$0xf] }
 0x2d8   : > { %3142 = vst [vmem:[#allocation2 + $0x70] sm:$0xf] %v2911_v2  ;;  %v3622_v54 = vshrl.u32 %v8370_v35, 16  ;;  %v4940_v23 = vunpack.c.l.b16 %v4857_v38  ;;  %v3610_v62 = vsel %vm7128_vm2, %v3605_v0, %v3609_v3  ;;  %v3620_v51 = vsel %vm7128_vm2, %v3615_v49, %v3619_v9  ;;  %v3146_v3 = vld [vmem:[#allocation2 + $0x78] sm:$0xf] }
 0x2d9   : > { %3145 = vst [vmem:[#allocation2 + $0x74] sm:$0x1] %v3144_v57  ;;  %v2914_v40 = vshrl.u32 %v2744_v43, 16  ;;  %v2645_v7 = vadd.f32 %v2594_v18, %v1916_v47  ;;  %4297 = vmatmul.bf16.gmra.mxu3 %v8235_v42  ;;  %v3625_v6 = vshll.u32 %v8370_v35, 16  ;;  %v2917_v13 = vshll.u32 %v2744_v43, 16  ;;  %v2418_v53 = vpop.f32.mrf.mxu2 }
 0x2da   : > { %v8382_v46 = vpack.c.b16 %v4940_v23, %v4939_v29  ;;  %v3854_v34 = vunpack.c.l.b16 %v3620_v51  ;;  %v3853_v63 = vunpack.c.l.b16 %v3610_v62  ;;  %v3624_v14 = vrot.slane %v3622_v54, 4  ;;  %v3150_v29 = vld [vmem:[#allocation2 + $0x80] sm:$0x1] }
 0x2db   : > { %v2916_v11 = vrot.slane %v2914_v40, 7  ;;  %v2681_v47 = vadd.f32 %v8249_v48, %v2645_v7  ;;  %v3627_v45 = vrot.slane %v3625_v6, 5  ;;  %v1921_v8 = vadd.f32 %v7761_v19, %v7771_v30 }
 0x2dc   : > { %9279 = vst [vmem:[#allocation11_spill] sm:$0xff] %v8382_v46  ;;  %v2507_v20 = vpop.f32.mrf.mxu3  ;;  %v2598_v31 = vpop.f32.mrf.mxu0  ;;  %v8387_v27 = vpack.c.b16 %v3854_v34, %v3853_v63  ;;  %v6367_v1 = vrot.slane %v8370_v35, 9  ;;  %v6635_v46 = vld [vmem:[#allocation3 + $0x190] sm:$0xff] }
 0x2dd   : > { %v2919_v55 = vor.u32 %v2917_v13, %v2916_v11  ;;  %v2713_v39 = vmax.f32 %v2681_v47, 0.0  ;;  %v2508_v56 = vadd.f32 %v2507_v20, %v2418_v53  ;;  %v3628_v2 = vor.u32 %v3627_v45, %v3624_v14  ;;  %v8401_v13 = vpop.f32.mrf.mxu1 }
 0x2de   : > { %v2920_v35 = vrot.slane %v2916_v11, 4 }
 0x2df   : > { %v3147_v50 = vsel %vm7930_vm12, %v2919_v55, %v3146_v3  ;;  %v2745_v32 = vpack.c.bf16 %v2713_v39, %v2713_v39  ;;  %v2597_v52 = vadd.f32 %v2596_v12, %v2508_v56  ;;  %v3223_v15 = vld [vmem:[#allocation2 + $0x70] sm:$0xf]  ;;  %4149 = vmatmul.bf16.gmra.mxu1 %v8387_v27  ;;  %v343_v12 = vld [vmem:[#allocation2 + $0x98] sm:$0x1]  ;;  %v6570_v3 = vld [vmem:[#allocation2 + $0x24] sm:$0xff]  ;;  %v3629_v20 = vrot.slane %v3628_v2, 4 }
 0x2e0   : > { %3148 = vst [vmem:[#allocation2 + $0x78] sm:$0xf] %v3147_v50  ;;  %v3224_v41 = vld [vmem:[#allocation2 + $0x74] sm:$0x1]  ;;  %v3631_v0 = vshll.u32 %v3223_v15, 16  ;;  %v3635_v57 = vshrl.u32 %v3223_v15, 16 }
 0x2e1   : > { %v2922_v9 = vshrl.u32 %v2745_v32, 16  ;;  %v2646_v38 = vadd.f32 %v2597_v52, %v7763_v24  ;;  %v2925_v43 = vshll.u32 %v2745_v32, 16  ;;  %v3641_v49 = vshll.u32 %v3224_v41, 16  ;;  %v2420_v30 = vpop.f32.mrf.mxu2  ;;  %v290_v52 = vld [vmem:[#allocation2 + $0x9c] sm:$0x1] }
 0x2e2   : > { %v3633_v18 = vrot.slane %v3631_v0, 5  ;;  %v4860_v16 = vrot.slane %v3223_v15, 5  ;;  %v3637_v23 = vrot.slane %v3635_v57, 4  ;;  %v344_v40 = vsel %vm7853_vm10, 0, %v343_v12 }
 0x2e3   : > { %v2924_v54 = vrot.slane %v2922_v9, 7  ;;  %v2682_v19 = vadd.f32 %v8249_v48, %v2646_v38  ;;  %345 = vst [vmem:[#allocation2 + $0x98] sm:$0x1] %v344_v40  ;;  %v4863_v44 = vrot.slane %v3224_v41, 5  ;;  %v3643_v14 = vrot.slane %v3641_v49, 5 }
 0x2e4   : > { %v2509_v7 = vpop.f32.mrf.mxu3  ;;  %v4861_v24 = vsel %vm7661_vm5, %v6367_v1, %v4860_v16  ;;  %v4862_v62 = vrot.slane %v4860_v16, 4  ;;  %v2601_v34 = vpop.f32.mrf.mxu0  ;;  %v3638_v63 = vor.u32 %v3637_v23, %v3633_v18  ;;  %v291_v38 = vsel %vm7839_vm8, 0, %v290_v52 }
 0x2e5   : > { %v2927_v51 = vor.u32 %v2925_v43, %v2924_v54  ;;  %v2929_v6 = vrot.slane %v2924_v54, 4  ;;  %v2714_v47 = vmax.f32 %v2682_v19, 0.0  ;;  %v2510_v53 = vadd.f32 %v2509_v7, %v2420_v30  ;;  %292 = vst [vmem:[#allocation2 + $0x9c] sm:$0x1] %v291_v38  ;;  %v3153_v54 = vld [vmem:[#allocation2 + $0x84] sm:$0xf] }
 0x2e6   : > { %v4864_v11 = vsel %vm7661_vm5, %v4862_v62, %v4863_v44  ;;  %4213 = vmatmul.bf16.gmra.mxu2 %v8235_v42  ;;  %4535 = vmatmul.bf16.gmra.mxu0 %v6570_v3  ;;  %v3639_v32 = vrot.slane %v3638_v63, 4  ;;  %v4941_v41 = vunpack.c.l.b16 %v4861_v24 }
 0x2e7   : > { %v2928_v55 = vsel %vm7944_vm14, %v2920_v35, %v2927_v51  ;;  %v3151_v39 = vsel %vm7839_vm8, %v2929_v6, %v3150_v29  ;;  %v2746_v56 = vpack.c.bf16 %v2714_v47, %v2714_v47  ;;  %v2599_v45 = vadd.f32 %v2598_v31, %v2510_v53  ;;  %v8409_v50 = vld [vmem:[#allocation2 + $0x78] sm:$0xf]  ;;  %v9281_v53 = vld [vmem:[#allocation14_spill] sm:$0xff] }
 0x2e8   : > { %3149 = vst [vmem:[#allocation2 + $0x7c] sm:$0xf] %v2928_v55  ;;  %v3646_v15 = vshrl.u32 %v8409_v50, 16  ;;  %v4942_v0 = vunpack.c.l.b16 %v4864_v11  ;;  %v3634_v31 = vsel %vm7128_vm2, %v3629_v20, %v3633_v18  ;;  %v3644_v42 = vsel %vm7128_vm2, %v3639_v32, %v3643_v14  ;;  %v9282_v55 = vld [vmem:[#allocation15_spill] sm:$0xff] }
 0x2e9   : > { %3152 = vst [vmem:[#allocation2 + $0x80] sm:$0x1] %v3151_v39  ;;  %v2931_v1 = vshrl.u32 %v2746_v56, 16  ;;  %v2647_v9 = vadd.f32 %v2599_v45, %v1921_v8  ;;  %4302 = vmatmul.bf16.gmra.mxu3 %v8278_v21  ;;  %v3649_v2 = vshll.u32 %v8409_v50, 16  ;;  %v2934_v49 = vshll.u32 %v2746_v56, 16  ;;  %v2423_v12 = vpop.f32.mrf.mxu2  ;;  %v6595_v32 = vld [vmem:[#allocation3 + $0x50] sm:$0xff] }
 0x2ea   : > { %v8421_v57 = vpack.c.b16 %v4942_v0, %v4941_v41  ;;  %v3856_v16 = vunpack.c.l.b16 %v3644_v42  ;;  %v3855_v18 = vunpack.c.l.b16 %v3634_v31  ;;  %v3648_v19 = vrot.slane %v3646_v15, 4  ;;  %v346_v41 = vld [vmem:[#allocation2 + $0xa4] sm:$0x1]  ;;  %4606 = vmatpush.bf16.msrb.mxu1 %v6595_v32 }
 0x2eb   : > { %v2933_v43 = vrot.slane %v2931_v1, 7  ;;  %v2683_v8 = vadd.f32 %v8249_v48, %v2647_v9  ;;  %v3651_v24 = vrot.slane %v3649_v2, 5  ;;  %v1926_v3 = vadd.f32 %v9281_v53, %v7791_v58  ;;  %v3157_v58 = vld [vmem:[#allocation2 + $0x8c] sm:$0x1] }
 0x2ec   : > { %9280 = vst [vmem:[#allocation12_spill] sm:$0xff] %v8421_v57  ;;  %v2512_v29 = vpop.f32.mrf.mxu3  ;;  %v8424_v40 = vpop.f32.mrf.mxu1  ;;  %v8426_v62 = vpack.c.b16 %v3856_v16, %v3855_v18  ;;  %v6368_v14 = vrot.slane %v8409_v50, 9  ;;  %v347_v50 = vsel %vm7853_vm10, 0, %v346_v41 }
 0x2ed   : > { %v2936_v30 = vor.u32 %v2934_v49, %v2933_v43  ;;  %v2715_v23 = vmax.f32 %v2683_v8, 0.0  ;;  %v2513_v35 = vadd.f32 %v2512_v29, %v2423_v12  ;;  %v2603_v7 = vpop.f32.mrf.mxu0  ;;  %v3652_v56 = vor.u32 %v3651_v24, %v3648_v19  ;;  %348 = vst [vmem:[#allocation2 + $0xa4] sm:$0x1] %v347_v50 }
 0x2ee   : > { %v2937_v42 = vrot.slane %v2933_v43, 4 }
 0x2ef   : > { %v3154_v44 = vsel %vm7930_vm12, %v2936_v30, %v3153_v54  ;;  %v2747_v51 = vpack.c.bf16 %v2715_v23, %v2715_v23  ;;  %v2602_v6 = vadd.f32 %v2601_v34, %v2513_v35  ;;  %v3226_v47 = vld [vmem:[#allocation2 + $0x7c] sm:$0xf]  ;;  %4154 = vmatmul.bf16.gmra.mxu1 %v8426_v62  ;;  %v6571_v23 = vld [vmem:[#allocation2 + $0x30] sm:$0xff]  ;;  %v3653_v35 = vrot.slane %v3652_v56, 4 }
 0x2f0   : > { %3155 = vst [vmem:[#allocation2 + $0x84] sm:$0xf] %v3154_v44  ;;  %v3227_v20 = vld [vmem:[#allocation2 + $0x80] sm:$0x1]  ;;  %v3655_v63 = vshll.u32 %v3226_v47, 16  ;;  %v3659_v45 = vshrl.u32 %v3226_v47, 16 }
 0x2f1   : > { %v2939_v11 = vshrl.u32 %v2747_v51, 16  ;;  %v2648_v39 = vadd.f32 %v2602_v6, %v9282_v55  ;;  %v2942_v52 = vshll.u32 %v2747_v51, 16  ;;  %v3665_v34 = vshll.u32 %v3227_v20, 16  ;;  %v2425_v31 = vpop.f32.mrf.mxu2 }
 0x2f2   : > { %v3657_v15 = vrot.slane %v3655_v63, 5  ;;  %v4867_v0 = vrot.slane %v3226_v47, 5  ;;  %v3661_v38 = vrot.slane %v3659_v45, 4  ;;  %v4870_v12 = vrot.slane %v3227_v20, 5 }
 0x2f3   : > { %v2941_v1 = vrot.slane %v2939_v11, 7  ;;  %v2684_v9 = vadd.f32 %v8249_v48, %v2648_v39  ;;  %v3667_v44 = vrot.slane %v3665_v34, 5 }
 0x2f4   : > { %v2514_v2 = vpop.f32.mrf.mxu3  ;;  %v4868_v49 = vsel %vm7661_vm5, %v6368_v14, %v4867_v0  ;;  %v4869_v8 = vrot.slane %v4867_v0, 4  ;;  %v8440_v18 = vpop.f32.mrf.mxu1  ;;  %v3662_v24 = vor.u32 %v3661_v38, %v3657_v15  ;;  %v293_v14 = vld [vmem:[#allocation2 + $0xa8] sm:$0x1] }
 0x2f5   : > { %v2944_v16 = vor.u32 %v2942_v52, %v2941_v1  ;;  %v2946_v54 = vrot.slane %v2941_v1, 4  ;;  %v2716_v29 = vmax.f32 %v2684_v9, 0.0  ;;  %v2515_v19 = vadd.f32 %v2514_v2, %v2425_v31  ;;  %v2606_v30 = vpop.f32.mrf.mxu0  ;;  %v3160_v9 = vld [vmem:[#allocation2 + $0x90] sm:$0xf] }
 0x2f6   : > { %v4871_v43 = vsel %vm7661_vm5, %v4869_v8, %v4870_v12  ;;  %4218 = vmatmul.bf16.gmra.mxu2 %v8278_v21  ;;  %4540 = vmatmul.bf16.gmra.mxu0 %v6571_v23  ;;  %v3663_v63 = vrot.slane %v3662_v24, 4  ;;  %v4943_v55 = vunpack.c.l.b16 %v4868_v49  ;;  %v294_v32 = vsel %vm7839_vm8, 0, %v293_v14  ;;  %v9285_v24 = vld [vmem:[#allocation16_spill] sm:$0xff] }
 0x2f7   : > { %v2945_v51 = vsel %vm7944_vm14, %v2937_v42, %v2944_v16  ;;  %v3158_v6 = vsel %vm7839_vm8, %v2946_v54, %v3157_v58  ;;  %v2748_v47 = vpack.c.bf16 %v2716_v29, %v2716_v29  ;;  %v2604_v53 = vadd.f32 %v2603_v7, %v2515_v19  ;;  %v8448_v20 = vld [vmem:[#allocation2 + $0x84] sm:$0xf]  ;;  %295 = vst [vmem:[#allocation2 + $0xa8] sm:$0x1] %v294_v32  ;;  %v3164_v32 = vld [vmem:[#allocation2 + $0x98] sm:$0x1] }
 0x2f8   : > { %3156 = vst [vmem:[#allocation2 + $0x88] sm:$0xf] %v2945_v51  ;;  %v3670_v11 = vshrl.u32 %v8448_v20, 16  ;;  %v4944_v39 = vunpack.c.l.b16 %v4871_v43  ;;  %v3658_v7 = vsel %vm7128_vm2, %v3653_v35, %v3657_v15  ;;  %v3668_v21 = vsel %vm7128_vm2, %v3663_v63, %v3667_v44  ;;  %v9284_v35 = vld [vmem:[#allocation18_spill] sm:$0xff] }
 0x2f9   : > { %3159 = vst [vmem:[#allocation2 + $0x8c] sm:$0x1] %v3158_v6  ;;  %v2948_v56 = vshrl.u32 %v2748_v47, 16  ;;  %v2649_v45 = vadd.f32 %v2604_v53, %v1926_v3  ;;  %4307 = vmatmul.bf16.gmra.mxu3 %v8313_v33  ;;  %v3673_v52 = vshll.u32 %v8448_v20, 16  ;;  %v2951_v0 = vshll.u32 %v2748_v47, 16  ;;  %v2428_v1 = vpop.f32.mrf.mxu2  ;;  %v9286_v53 = vld [vmem:[#allocation17_spill] sm:$0xff] }
 0x2fa   : > { %v8460_v34 = vpack.c.b16 %v4944_v39, %v4943_v55  ;;  %v3858_v58 = vunpack.c.l.b16 %v3668_v21  ;;  %v3857_v15 = vunpack.c.l.b16 %v3658_v7  ;;  %v3672_v38 = vrot.slane %v3670_v11, 4 }
 0x2fb   : > { %v2950_v41 = vrot.slane %v2948_v56, 7  ;;  %v2685_v3 = vadd.f32 %v8249_v48, %v2649_v45  ;;  %v3675_v12 = vrot.slane %v3673_v52, 5  ;;  %v1931_v44 = vadd.f32 %v9285_v24, %v9284_v35 }
 0x2fc   : > { %9283 = vst [vmem:[#allocation13_spill] sm:$0xff] %v8460_v34  ;;  %v2517_v31 = vpop.f32.mrf.mxu3  ;;  %v8463_v2 = vpop.f32.mrf.mxu1  ;;  %v8465_v16 = vpack.c.b16 %v3858_v58, %v3857_v15  ;;  %v6369_v6 = vrot.slane %v8448_v20, 9 }
 0x2fd   : > { %v2953_v50 = vor.u32 %v2951_v0, %v2950_v41  ;;  %v2717_v42 = vmax.f32 %v2685_v3, 0.0  ;;  %v2518_v49 = vadd.f32 %v2517_v31, %v2428_v1  ;;  %v2608_v8 = vpop.f32.mrf.mxu0  ;;  %v3676_v14 = vor.u32 %v3675_v12, %v3672_v38  ;;  %v6572_v12 = vld [vmem:[#allocation2 + $0x3c] sm:$0xff] }
 0x2fe   : > { %v2954_v20 = vrot.slane %v2950_v41, 4 }
 0x2ff   : > { %v3161_v54 = vsel %vm7930_vm12, %v2953_v50, %v3160_v9  ;;  %v2749_v29 = vpack.c.bf16 %v2717_v42, %v2717_v42  ;;  %v2607_v19 = vadd.f32 %v2606_v30, %v2518_v49  ;;  %v3229_v23 = vld [vmem:[#allocation2 + $0x88] sm:$0xf]  ;;  %4159 = vmatmul.bf16.gmra.mxu1 %v8465_v16  ;;  %v349_v30 = vld [vmem:[#allocation2 + $0xb0] sm:$0x1] }
 0x300   : > { %3162 = vst [vmem:[#allocation2 + $0x90] sm:$0xf] %v3161_v54  ;;  %v3230_v43 = vld [vmem:[#allocation2 + $0x8c] sm:$0x1]  ;;  %v3679_v51 = vshll.u32 %v3229_v23, 16  ;;  %v3683_v11 = vshrl.u32 %v3229_v23, 16 }
 0x301   : > { %v2956_v47 = vshrl.u32 %v2749_v29, 16  ;;  %v2650_v63 = vadd.f32 %v2607_v19, %v9286_v53  ;;  %v2959_v55 = vshll.u32 %v2749_v29, 16  ;;  %v3689_v56 = vshll.u32 %v3230_v43, 16  ;;  %v2430_v52 = vpop.f32.mrf.mxu2 }
 0x302   : > { %v3681_v39 = vrot.slane %v3679_v51, 5  ;;  %v4874_v45 = vrot.slane %v3229_v23, 5  ;;  %v3685_v0 = vrot.slane %v3683_v11, 4  ;;  %v350_v3 = vsel %vm7853_vm10, 0, %v349_v30 }
 0x303   : > { %v2958_v7 = vrot.slane %v2956_v47, 7  ;;  %v2686_v21 = vadd.f32 %v8249_v48, %v2650_v63  ;;  %351 = vst [vmem:[#allocation2 + $0xb0] sm:$0x1] %v350_v3  ;;  %v4877_v31 = vrot.slane %v3230_v43, 5  ;;  %v3677_v54 = vrot.slane %v3676_v14, 4 }
 0x304   : > { %v2519_v1 = vpop.f32.mrf.mxu3  ;;  %v4875_v58 = vsel %vm7661_vm5, %v6369_v6, %v4874_v45  ;;  %v4876_v9 = vrot.slane %v4874_v45, 4  ;;  %v8479_v42 = vpop.f32.mrf.mxu1  ;;  %v3686_v29 = vor.u32 %v3685_v0, %v3681_v39  ;;  %v3691_v19 = vrot.slane %v3689_v56, 5  ;;  %v296_v47 = vld [vmem:[#allocation2 + $0xb4] sm:$0x1]  ;;  %v3167_v0 = vld [vmem:[#allocation2 + $0x9c] sm:$0xf] }
 0x305   : > { %v2961_v15 = vor.u32 %v2959_v55, %v2958_v7  ;;  %v2963_v38 = vrot.slane %v2958_v7, 4  ;;  %v2718_v50 = vmax.f32 %v2686_v21, 0.0  ;;  %v2520_v49 = vadd.f32 %v2519_v1, %v2430_v52  ;;  %v2611_v48 = vpop.f32.mrf.mxu0 }
 0x306   : > { %v4878_v41 = vsel %vm7661_vm5, %v4876_v9, %v4877_v31  ;;  %4223 = vmatmul.bf16.gmra.mxu2 %v8313_v33  ;;  %4545 = vmatmul.bf16.gmra.mxu0 %v6572_v12  ;;  %v3687_v6 = vrot.slane %v3686_v29, 4  ;;  %v4945_v63 = vunpack.c.l.b16 %v4875_v58  ;;  %v297_v56 = vsel %vm7839_vm8, 0, %v296_v47 }
 0x307   : > { %v2962_v23 = vsel %vm7944_vm14, %v2954_v20, %v2961_v15  ;;  %v3165_v35 = vsel %vm7839_vm8, %v2963_v38, %v3164_v32  ;;  %v2750_v24 = vpack.c.bf16 %v2718_v50, %v2718_v50  ;;  %v2609_v43 = vadd.f32 %v2608_v8, %v2520_v49  ;;  %v8487_v51 = vld [vmem:[#allocation2 + $0x90] sm:$0xf]  ;;  %298 = vst [vmem:[#allocation2 + $0xb4] sm:$0x1] %v297_v56 }
 0x308   : > { %3163 = vst [vmem:[#allocation2 + $0x94] sm:$0xf] %v2962_v23  ;;  %v3694_v53 = vshrl.u32 %v8487_v51, 16  ;;  %v4946_v14 = vunpack.c.l.b16 %v4878_v41  ;;  %v3682_v8 = vsel %vm7128_vm2, %v3677_v54, %v3681_v39  ;;  %v3692_v33 = vsel %vm7128_vm2, %v3687_v6, %v3691_v19  ;;  %v9288_v41 = vld [vmem:[#allocation21_spill] sm:$0xff]  ;;  %v9289_v23 = vld [vmem:[#allocation19_spill] sm:$0xff] }
 0x309   : > { %3166 = vst [vmem:[#allocation2 + $0x98] sm:$0x1] %v3165_v35  ;;  %v2965_v11 = vshrl.u32 %v2750_v24, 16  ;;  %v2651_v55 = vadd.f32 %v2609_v43, %v1931_v44  ;;  %4312 = vmatmul.bf16.gmra.mxu3 %v8348_v26  ;;  %v3697_v30 = vshll.u32 %v8487_v51, 16  ;;  %v2968_v32 = vshll.u32 %v2750_v24, 16  ;;  %v2433_v21 = vpop.f32.mrf.mxu2 }
 0x30a   : > { %v8499_v45 = vpack.c.b16 %v4946_v14, %v4945_v63  ;;  %v8506_v44 = vld [vmem:[%s9219_s2] ss:$0 sm:$0xff]  ;;  %v3860_v52 = vunpack.c.l.b16 %v3692_v33  ;;  %v3859_v20 = vunpack.c.l.b16 %v3682_v8  ;;  %v3696_v1 = vrot.slane %v3694_v53, 4  ;;  %v9290_v53 = vld [vmem:[#allocation20_spill] sm:$0xff]  ;;  %v352_v33 = vld [vmem:[#allocation2 + $0xbc] sm:$0x1] }
 0x30b   : > { %v8501_v7 = vrot.slane %v2965_v11, 7  ;;  %v2687_v39 = vadd.f32 %v8506_v44, %v2651_v55  ;;  %v3699_v50 = vrot.slane %v3697_v30, 5  ;;  %v1936_v35 = vadd.f32 %v9289_v23, %v9288_v41  ;;  %v6594_v55 = vld [vmem:[#allocation3 + $0x48] sm:$0xff]  ;;  %v8529_v41 = vld [vmem:[#allocation2 + $0x48] sm:$0xff] }
 0x30c   : > { %9287 = vst [vmem:[#allocation14_spill] sm:$0xff] %v8499_v45  ;;  %v2522_v3 = vpop.f32.mrf.mxu3  ;;  %v8510_v31 = vpop.f32.mrf.mxu1  ;;  %v8512_v49 = vpack.c.b16 %v3860_v52, %v3859_v20  ;;  %v6370_v6 = vrot.slane %v8487_v51, 9  ;;  %4607 = vmatpush.bf16.msrb.mxu1 %v6594_v55  ;;  %v353_v51 = vsel %vm7853_vm10, 0, %v352_v33  ;;  %v299_v55 = vld [vmem:[#allocation2 + $0xc0] sm:$0x1] }
 0x30d   : > { %v2970_v58 = vor.u32 %v2968_v32, %v8501_v7  ;;  %v2719_v9 = vmax.f32 %v2687_v39, 0.0  ;;  %v2523_v15 = vadd.f32 %v2522_v3, %v2433_v21  ;;  %v2613_v38 = vpop.f32.mrf.mxu0  ;;  %v3700_v14 = vor.u32 %v3699_v50, %v3696_v1  ;;  %v3171_v39 = vld [vmem:[#allocation2 + $0xa4] sm:$0x1]  ;;  %354 = vst [vmem:[#allocation2 + $0xbc] sm:$0x1] %v353_v51 }
 0x30e   : > { %v2971_v3 = vrot.slane %v8501_v7, 4 }
 0x30f   : > { %v3168_v12 = vsel %vm7930_vm12, %v2970_v58, %v3167_v0  ;;  %v2751_v54 = vpack.c.bf16 %v2719_v9, %v2719_v9  ;;  %v2612_v29 = vadd.f32 %v2611_v48, %v2523_v15  ;;  %v3232_v19 = vld [vmem:[#allocation2 + $0x94] sm:$0xf]  ;;  %4164 = vmatmul.bf16.gmra.mxu1 %v8512_v49  ;;  %v3701_v23 = vrot.slane %v3700_v14, 4 }
 0x310   : > { %3169 = vst [vmem:[#allocation2 + $0x9c] sm:$0xf] %v3168_v12  ;;  %v3233_v24 = vld [vmem:[#allocation2 + $0x98] sm:$0x1]  ;;  %v3703_v43 = vshll.u32 %v3232_v19, 16  ;;  %v3707_v11 = vshrl.u32 %v3232_v19, 16 }
 0x311   : > { %v2973_v47 = vshrl.u32 %v2751_v54, 16  ;;  %v2652_v63 = vadd.f32 %v2612_v29, %v9290_v53  ;;  %v2976_v8 = vshll.u32 %v2751_v54, 16  ;;  %v3713_v48 = vshll.u32 %v3233_v24, 16  ;;  %v2435_v52 = vpop.f32.mrf.mxu2 }
 0x312   : > { %v3705_v56 = vrot.slane %v3703_v43, 5  ;;  %v4881_v30 = vrot.slane %v3232_v19, 5  ;;  %v3709_v0 = vrot.slane %v3707_v11, 4  ;;  %v4884_v9 = vrot.slane %v3233_v24, 5 }
 0x313   : > { %v2975_v32 = vrot.slane %v2973_v47, 7  ;;  %v2688_v21 = vadd.f32 %v8506_v44, %v2652_v63  ;;  %v3715_v47 = vrot.slane %v3713_v48, 5 }
 0x314   : > { %v2524_v20 = vpop.f32.mrf.mxu3  ;;  %v4882_v1 = vsel %vm7661_vm5, %v6370_v6, %v4881_v30  ;;  %v4883_v58 = vrot.slane %v4881_v30, 4  ;;  %v8527_v54 = vpop.f32.mrf.mxu1  ;;  %v3710_v43 = vor.u32 %v3709_v0, %v3705_v56 }
 0x315   : > { %v2978_v15 = vor.u32 %v2976_v8, %v2975_v32  ;;  %v2980_v50 = vrot.slane %v2975_v32, 4  ;;  %v2720_v12 = vmax.f32 %v2688_v21, 0.0  ;;  %v2525_v29 = vadd.f32 %v2524_v20, %v2435_v52  ;;  %v2616_v19 = vpop.f32.mrf.mxu0 }
 0x316   : > { %v4885_v7 = vsel %vm7661_vm5, %v4883_v58, %v4884_v9  ;;  %4228 = vmatmul.bf16.gmra.mxu2 %v8348_v26  ;;  %4550 = vmatmul.bf16.gmra.mxu0 %v8529_v41  ;;  %v3711_v14 = vrot.slane %v3710_v43, 4  ;;  %v4947_v48 = vunpack.c.l.b16 %v4882_v1  ;;  %v3174_v1 = vld [vmem:[#allocation2 + $0xa8] sm:$0xf] }
 0x317   : > { %v2979_v6 = vsel %vm7944_vm14, %v2971_v3, %v2978_v15  ;;  %v3172_v24 = vsel %vm7839_vm8, %v2980_v50, %v3171_v39  ;;  %v2752_v53 = vpack.c.bf16 %v2720_v12, %v2720_v12  ;;  %v2614_v63 = vadd.f32 %v2613_v38, %v2525_v29  ;;  %v8537_v11 = vld [vmem:[#allocation2 + $0x9c] sm:$0xf] }
 0x318   : > { %3170 = vst [vmem:[#allocation2 + $0xa0] sm:$0xf] %v2979_v6  ;;  %v3718_v8 = vshrl.u32 %v8537_v11, 16  ;;  %v4948_v33 = vunpack.c.l.b16 %v4885_v7  ;;  %v3706_v38 = vsel %vm7128_vm2, %v3701_v23, %v3705_v56  ;;  %v300_v39 = vsel %vm7839_vm8, 0, %v299_v55 }
 0x319   : > { %3173 = vst [vmem:[#allocation2 + $0xa4] sm:$0x1] %v3172_v24  ;;  %v2982_v30 = vshrl.u32 %v2752_v53, 16  ;;  %v2653_v32 = vadd.f32 %v2614_v63, %v1936_v35  ;;  %4317 = vmatmul.bf16.gmra.mxu3 %v8387_v27  ;;  %v3716_v26 = vsel %vm7128_vm2, %v3711_v14, %v3715_v47  ;;  %v3721_v21 = vshll.u32 %v8537_v11, 16  ;;  %v2438_v3 = vpop.f32.mrf.mxu2  ;;  %v9292_v63 = vld [vmem:[#allocation24_spill] sm:$0xff]  ;;  %v9293_v14 = vld [vmem:[#allocation23_spill] sm:$0xff] }
 0x31a   : > { %301 = vst [vmem:[#allocation2 + $0xc0] sm:$0x1] %v300_v39  ;;  %v8550_v52 = vpack.c.b16 %v4948_v33, %v4947_v48  ;;  %v2985_v51 = vshll.u32 %v2752_v53, 16  ;;  %v3862_v20 = vunpack.c.l.b16 %v3716_v26  ;;  %v3861_v56 = vunpack.c.l.b16 %v3706_v38  ;;  %v9294_v39 = vld [vmem:[#allocation22_spill] sm:$0xff] }
 0x31b   : > { %v2984_v0 = vrot.slane %v2982_v30, 7  ;;  %v2689_v35 = vadd.f32 %v8506_v44, %v2653_v32  ;;  %v3720_v9 = vrot.slane %v3718_v8, 4  ;;  %v3723_v15 = vrot.slane %v3721_v21, 5 }
 0x31c   : > { %9291 = vst [vmem:[#allocation15_spill] sm:$0xff] %v8550_v52  ;;  %v2527_v58 = vpop.f32.mrf.mxu3  ;;  %v8553_v29 = vpop.f32.mrf.mxu1  ;;  %v8555_v47 = vpack.c.b16 %v3862_v20, %v3861_v56  ;;  %v1941_v55 = vadd.f32 %v9293_v14, %v9292_v63  ;;  %v6371_v30 = vrot.slane %v8537_v11, 9  ;;  %v6608_v52 = vld [vmem:[#allocation3 + $0xb8] sm:$0xff] }
 0x31d   : > { %v2987_v50 = vor.u32 %v2985_v51, %v2984_v0  ;;  %v2721_v12 = vmax.f32 %v2689_v35, 0.0  ;;  %v2528_v23 = vadd.f32 %v2527_v58, %v2438_v3  ;;  %v2618_v43 = vpop.f32.mrf.mxu0  ;;  %v3724_v48 = vor.u32 %v3723_v15, %v3720_v9  ;;  %v355_v3 = vld [vmem:[#allocation2 + $0xc8] sm:$0x1]  ;;  %v3178_v58 = vld [vmem:[#allocation2 + $0xb0] sm:$0x1]  ;;  %4690 = vmatpush.bf16.msra.mxu2 %v6608_v52 }
 0x31e   : > { %v2988_v32 = vrot.slane %v2984_v0, 4  ;;  %v356_v9 = vsel %vm7853_vm10, 0, %v355_v3 }
 0x31f   : > { %v3175_v7 = vsel %vm7930_vm12, %v2987_v50, %v3174_v1  ;;  %v2753_v6 = vpack.c.bf16 %v2721_v12, %v2721_v12  ;;  %v2617_v24 = vadd.f32 %v2616_v19, %v2528_v23  ;;  %v3235_v53 = vld [vmem:[#allocation2 + $0xa0] sm:$0xf]  ;;  %4169 = vmatmul.bf16.gmra.mxu1 %v8555_v47  ;;  %v3725_v0 = vrot.slane %v3724_v48, 4  ;;  %357 = vst [vmem:[#allocation2 + $0xc8] sm:$0x1] %v356_v9 }
 0x320   : > { %3176 = vst [vmem:[#allocation2 + $0xa8] sm:$0xf] %v3175_v7  ;;  %v3236_v8 = vld [vmem:[#allocation2 + $0xa4] sm:$0x1]  ;;  %v3727_v33 = vshll.u32 %v3235_v53, 16  ;;  %v3731_v21 = vshrl.u32 %v3235_v53, 16 }
 0x321   : > { %v2990_v38 = vshrl.u32 %v2753_v6, 16  ;;  %v2654_v26 = vadd.f32 %v2617_v24, %v9294_v39  ;;  %v2993_v51 = vshll.u32 %v2753_v6, 16  ;;  %v3737_v19 = vshll.u32 %v3236_v8, 16  ;;  %v2440_v50 = vpop.f32.mrf.mxu2 }
 0x322   : > { %v3729_v35 = vrot.slane %v3727_v33, 5  ;;  %v4888_v20 = vrot.slane %v3235_v53, 5  ;;  %v3733_v12 = vrot.slane %v3731_v21, 4  ;;  %v4891_v7 = vrot.slane %v3236_v8, 5 }
 0x323   : > { %v2992_v1 = vrot.slane %v2990_v38, 7  ;;  %v2690_v56 = vadd.f32 %v8506_v44, %v2654_v26  ;;  %v8571_v38 = vld [vmem:[#allocation2 + $0x54] sm:$0xff]  ;;  %v3739_v26 = vrot.slane %v3737_v19, 5 }
 0x324   : > { %v2529_v11 = vpop.f32.mrf.mxu3  ;;  %v4889_v15 = vsel %vm7661_vm5, %v6371_v30, %v4888_v20  ;;  %v4890_v23 = vrot.slane %v4888_v20, 4  ;;  %v8569_v63 = vpop.f32.mrf.mxu1  ;;  %v3734_v39 = vor.u32 %v3733_v12, %v3729_v35 }
 0x325   : > { %v2995_v6 = vor.u32 %v2993_v51, %v2992_v1  ;;  %v2997_v24 = vrot.slane %v2992_v1, 4  ;;  %v2722_v53 = vmax.f32 %v2690_v56, 0.0  ;;  %v2530_v14 = vadd.f32 %v2529_v11, %v2440_v50  ;;  %v2621_v33 = vpop.f32.mrf.mxu0 }
 0x326   : > { %v4892_v48 = vsel %vm7661_vm5, %v4890_v23, %v4891_v7  ;;  %v4949_v21 = vunpack.c.l.b16 %v4889_v15  ;;  %4233 = vmatmul.bf16.gmra.mxu2 %v8387_v27  ;;  %4555 = vmatmul.bf16.gmra.mxu0 %v8571_v38  ;;  %v3735_v1 = vrot.slane %v3734_v39, 4 }
 0x327   : > { %v2996_v30 = vsel %vm7944_vm14, %v2988_v32, %v2995_v6  ;;  %v3179_v8 = vsel %vm7839_vm8, %v2997_v24, %v3178_v58  ;;  %v2754_v51 = vpack.c.bf16 %v2722_v53, %v2722_v53  ;;  %v2619_v3 = vadd.f32 %v2618_v43, %v2530_v14  ;;  %v3237_v20 = vld [vmem:[#allocation2 + $0xa8] sm:$0xf]  ;;  %v6593_v58 = vld [vmem:[#allocation3 + $0x40] sm:$0xff] }
 0x328   : > { %3177 = vst [vmem:[#allocation2 + $0xac] sm:$0xf] %v2996_v30  ;;  %v3742_v19 = vshrl.u32 %v3237_v20, 16  ;;  %v3745_v56 = vshll.u32 %v3237_v20, 16  ;;  %v4950_v50 = vunpack.c.l.b16 %v4892_v48  ;;  %v3730_v32 = vsel %vm7128_vm2, %v3725_v0, %v3729_v35  ;;  %4608 = vmatpush.bf16.msrb.mxu1 %v6593_v58 }
 0x329   : > { %3180 = vst [vmem:[#allocation2 + $0xb0] sm:$0x1] %v3179_v8  ;;  %v2999_v12 = vshrl.u32 %v2754_v51, 16  ;;  %v2655_v9 = vadd.f32 %v2619_v3, %v1941_v55  ;;  %4322 = vmatmul.bf16.gmra.mxu3 %v8426_v62  ;;  %v3002_v43 = vshll.u32 %v2754_v51, 16  ;;  %v3740_v11 = vsel %vm7128_vm2, %v3735_v1, %v3739_v26  ;;  %v2443_v6 = vpop.f32.mrf.mxu2  ;;  %v3181_v55 = vld [vmem:[#allocation2 + $0xb4] sm:$0xf] }
 0x32a   : > { %v3744_v27 = vrot.slane %v3742_v19, 4  ;;  %v8586_v15 = vpack.c.b16 %v4950_v50, %v4949_v21  ;;  %v3864_v24 = vunpack.c.l.b16 %v3740_v11  ;;  %v3747_v53 = vrot.slane %v3745_v56, 5  ;;  %v9296_v56 = vld [vmem:[#allocation26_spill] sm:$0xff]  ;;  %v9297_v11 = vld [vmem:[#allocation25_spill] sm:$0xff] }
 0x32b   : > { %v3001_v23 = vrot.slane %v2999_v12, 7  ;;  %v2691_v7 = vadd.f32 %v8506_v44, %v2655_v9  ;;  %v3863_v39 = vunpack.c.l.b16 %v3730_v32  ;;  %v1946_v50 = vadd.f32 %v8357_v17, %v9296_v56 }
 0x32c   : > { %9295 = vst [vmem:[#allocation18_spill] sm:$0xff] %v8586_v15  ;;  %v2532_v14 = vpop.f32.mrf.mxu3  ;;  %v8589_v0 = vpop.f32.mrf.mxu1  ;;  %v3748_v19 = vor.u32 %v3747_v53, %v3744_v27 }
 0x32d   : > { %v3004_v48 = vor.u32 %v3002_v43, %v3001_v23  ;;  %v2723_v35 = vmax.f32 %v2691_v7, 0.0  ;;  %v2533_v30 = vadd.f32 %v2532_v14, %v2443_v6  ;;  %v2623_v8 = vpop.f32.mrf.mxu0  ;;  %v8591_v26 = vpack.c.b16 %v3864_v24, %v3863_v39 }
 0x32e   : > { %v3005_v58 = vrot.slane %v3001_v23, 4  ;;  %v6372_v6 = vrot.slane %v3237_v20, 9 }
 0x32f   : > { %v3182_v21 = vsel %vm7930_vm12, %v3004_v48, %v3181_v55  ;;  %v2755_v51 = vpack.c.bf16 %v2723_v35, %v2723_v35  ;;  %v2622_v3 = vadd.f32 %v2621_v33, %v2533_v30  ;;  %v3238_v1 = vld [vmem:[#allocation2 + $0xac] sm:$0xf]  ;;  %4174 = vmatmul.bf16.gmra.mxu1 %v8591_v26  ;;  %v3749_v48 = vrot.slane %v3748_v19, 4  ;;  %v3185_v35 = vld [vmem:[#allocation2 + $0xbc] sm:$0x1] }
 0x330   : > { %3183 = vst [vmem:[#allocation2 + $0xb4] sm:$0xf] %v3182_v21  ;;  %v3239_v12 = vld [vmem:[#allocation2 + $0xb0] sm:$0x1]  ;;  %v3751_v9 = vshll.u32 %v3238_v1, 16  ;;  %v3755_v32 = vshrl.u32 %v3238_v1, 16 }
 0x331   : > { %v3007_v43 = vshrl.u32 %v2755_v51, 16  ;;  %v2656_v7 = vadd.f32 %v2622_v3, %v9297_v11  ;;  %v3761_v14 = vshll.u32 %v3239_v12, 16  ;;  %v4895_v33 = vrot.slane %v3238_v1, 5  ;;  %v2445_v17 = vpop.f32.mrf.mxu2 }
 0x332   : > { %v3753_v24 = vrot.slane %v3751_v9, 5  ;;  %v3757_v55 = vrot.slane %v3755_v32, 4  ;;  %v3010_v27 = vshll.u32 %v2755_v51, 16  ;;  %v4898_v15 = vrot.slane %v3239_v12, 5  ;;  %v8604_v51 = vld [vmem:[#allocation2 + $0x60] sm:$0xff] }
 0x333   : > { %v3009_v39 = vrot.slane %v3007_v43, 7  ;;  %v2692_v53 = vadd.f32 %v8506_v44, %v2656_v7  ;;  %v4896_v23 = vsel %vm7661_vm5, %v6372_v6, %v4895_v33  ;;  %v4897_v56 = vrot.slane %v4895_v33, 4 }
 0x334   : > { %v2534_v30 = vpop.f32.mrf.mxu3  ;;  %v3758_v21 = vor.u32 %v3757_v55, %v3753_v24  ;;  %v8602_v32 = vpop.f32.mrf.mxu1  ;;  %v3754_v19 = vsel %vm7128_vm2, %v3749_v48, %v3753_v24  ;;  %v3763_v7 = vrot.slane %v3761_v14, 5  ;;  %v6640_v55 = vld [vmem:[#allocation3 + $0x1b8] sm:$0xff] }
 0x335   : > { %v3012_v3 = vor.u32 %v3010_v27, %v3009_v39  ;;  %v3014_v20 = vrot.slane %v3009_v39, 4  ;;  %v2724_v9 = vmax.f32 %v2692_v53, 0.0  ;;  %v2535_v1 = vadd.f32 %v2534_v30, %v2445_v17  ;;  %v4521_v43 = vpop.f32.mrf.mxu0  ;;  %5187 = vmatpush.bf16.msra.mxu3 %v6640_v55 }
 0x336   : > { %v3759_v11 = vrot.slane %v3758_v21, 4  ;;  %v4899_v6 = vsel %vm7661_vm5, %v4897_v56, %v4898_v15  ;;  %4238 = vmatmul.bf16.gmra.mxu2 %v8426_v62  ;;  %4560 = vmatmul.bf16.gmra.mxu0 %v8604_v51  ;;  %v4951_v17 = vunpack.c.l.b16 %v4896_v23 }
 0x337   : > { %v3013_v12 = vsel %vm7944_vm14, %v3005_v58, %v3012_v3  ;;  %v3186_v33 = vsel %vm7839_vm8, %v3014_v20, %v3185_v35  ;;  %v2756_v39 = vpack.c.bf16 %v2724_v9, %v2724_v9  ;;  %v2624_v27 = vadd.f32 %v2623_v8, %v2535_v1  ;;  %v3240_v53 = vld [vmem:[#allocation2 + $0xb4] sm:$0xf]  ;;  %v3188_v9 = vld [vmem:[#allocation2 + $0xc0] sm:$0xf] }
 0x338   : > { %3184 = vst [vmem:[#allocation2 + $0xb8] sm:$0xf] %v3013_v12  ;;  %v3764_v24 = vsel %vm7128_vm2, %v3759_v11, %v3763_v7  ;;  %v3766_v14 = vshrl.u32 %v3240_v53, 16  ;;  %v4952_v15 = vunpack.c.l.b16 %v4899_v6  ;;  %v3769_v30 = vshll.u32 %v3240_v53, 16  ;;  %v6648_v12 = vld [vmem:[#allocation3 + $0x1f8] sm:$0xff] }
 0x339   : > { %3187 = vst [vmem:[#allocation2 + $0xbc] sm:$0x1] %v3186_v33  ;;  %v3016_v48 = vshrl.u32 %v2756_v39, 16  ;;  %v2657_v58 = vadd.f32 %v2624_v27, %v1946_v50  ;;  %4327 = vmatmul.bf16.gmra.mxu3 %v8465_v16  ;;  %v3866_v35 = vunpack.c.l.b16 %v3764_v24  ;;  %v3865_v8 = vunpack.c.l.b16 %v3754_v19  ;;  %v4199_v20 = vpop.f32.mrf.mxu2  ;;  %5276 = vmatpush.bf16.msra.mxu0 %v6648_v12 }
 0x33a   : > { %v8619_v21 = vpack.c.b16 %v4952_v15, %v4951_v17  ;;  %v3019_v56 = vshll.u32 %v2756_v39, 16  ;;  %v4200_v23 = vadd.f32 %v4199_v20, %v8384_v28  ;;  %v3768_v19 = vrot.slane %v3766_v14, 4  ;;  %v6656_v14 = vld [vmem:[#allocation3 + $0x238] sm:$0xff] }
 0x33b   : > { %v3018_v62 = vrot.slane %v3016_v48, 7  ;;  %v2693_v3 = vadd.f32 %v8506_v44, %v2657_v58  ;;  %v8623_v11 = vpack.c.b16 %v3866_v35, %v3865_v8  ;;  %v3771_v55 = vrot.slane %v3769_v30, 5  ;;  %5365 = vmatpush.bf16.msra.mxu1 %v6656_v14 }
 0x33c   : > { %9298 = vst [vmem:[#allocation16_spill] sm:$0xff] %v8619_v21  ;;  %v4288_v1 = vpop.f32.mrf.mxu3  ;;  %v8625_v6 = vpop.f32.mrf.mxu1  ;;  %v6373_v35 = vrot.slane %v3240_v53, 9 }
 0x33d   : > { %v3021_v50 = vor.u32 %v3019_v56, %v3018_v62  ;;  %v2725_v7 = vmax.f32 %v2693_v3, 0.0  ;;  %v4523_v52 = vpop.f32.mrf.mxu0  ;;  %v4289_v33 = vadd.f32 %v4288_v1, %v4200_v23  ;;  %v3772_v58 = vor.u32 %v3771_v55, %v3768_v19 }
 0x33f   : > { %v3189_v39 = vsel %vm7930_vm12, %v3021_v50, %v3188_v9  ;;  %v2757_v44 = vpack.c.bf16 %v2725_v7, %v2725_v7  ;;  %v3241_v27 = vld [vmem:[#allocation2 + $0xb8] sm:$0xf]  ;;  %4179 = vmatmul.bf16.gmra.mxu1 %v8623_v11  ;;  %v8630_v15 = vadd.f32 %v4521_v43, %v4289_v33  ;;  %v3022_v7 = vrot.slane %v3018_v62, 4  ;;  %v3192_v43 = vld [vmem:[#allocation2 + $0xc8] sm:$0x1] }
 0x340   : > { %3190 = vst [vmem:[#allocation2 + $0xc0] sm:$0xf] %v3189_v39  ;;  %v3242_v28 = vld [vmem:[#allocation2 + $0xbc] sm:$0x1]  ;;  %v3775_v24 = vshll.u32 %v3241_v27, 16  ;;  %v3779_v17 = vshrl.u32 %v3241_v27, 16 }
 0x341   : > { %v3024_v48 = vshrl.u32 %v2757_v44, 16  ;;  %v4902_v30 = vrot.slane %v3241_v27, 5  ;;  %v3027_v8 = vshll.u32 %v2757_v44, 16  ;;  %v3785_v3 = vshll.u32 %v3242_v28, 16  ;;  %v4201_v9 = vpop.f32.mrf.mxu2 }
 0x342   : > { %v3777_v56 = vrot.slane %v3775_v24, 5  ;;  %v3781_v4 = vrot.slane %v3779_v17, 4  ;;  %v4905_v50 = vrot.slane %v3242_v28, 5  ;;  %v4202_v12 = vadd.f32 %v4201_v9, %v8401_v13 }
 0x343   : > { %v3026_v20 = vrot.slane %v3024_v48, 7  ;;  %v4903_v23 = vsel %vm7661_vm5, %v6373_v35, %v4902_v30  ;;  %v4904_v1 = vrot.slane %v4902_v30, 4  ;;  %v3773_v27 = vrot.slane %v3772_v58, 4  ;;  %v8639_v48 = vld [vmem:[#allocation2 + $0x6c] sm:$0xff] }
 0x344   : > { %v4290_v19 = vpop.f32.mrf.mxu3  ;;  %v3782_v55 = vor.u32 %v3781_v4, %v3777_v56  ;;  %v8635_v39 = vpop.f32.mrf.mxu1  ;;  %v3787_v28 = vrot.slane %v3785_v3, 5 }
 0x345   : > { %v3029_v53 = vor.u32 %v3027_v8, %v3026_v20  ;;  %v3031_v33 = vrot.slane %v3026_v20, 4  ;;  %v4526_v44 = vpop.f32.mrf.mxu0  ;;  %v4906_v24 = vsel %vm7661_vm5, %v4904_v1, %v4905_v50  ;;  %v4291_v17 = vadd.f32 %v4290_v19, %v4202_v12 }
 0x346   : > { %v3783_v14 = vrot.slane %v3782_v55, 4  ;;  %v4954_v62 = vunpack.c.l.b16 %v4906_v24  ;;  %v3778_v30 = vsel %vm7128_vm2, %v3773_v27, %v3777_v56  ;;  %v4953_v8 = vunpack.c.l.b16 %v4903_v23  ;;  %4243 = vmatmul.bf16.gmra.mxu2 %v8465_v16  ;;  %4565 = vmatmul.bf16.gmra.mxu0 %v8639_v48 }
 0x347   : > { %v3030_v13 = vsel %vm7944_vm14, %v3022_v7, %v3029_v53  ;;  %v3193_v35 = vsel %vm7839_vm8, %v3031_v33, %v3192_v43  ;;  %v8651_v4 = vadd.f32 %v4523_v52, %v4291_v17  ;;  %v3867_v20 = vunpack.c.l.b16 %v3778_v30  ;;  %v8661_v7 = vld [vmem:[#allocation2 + $0xc0] sm:$0xf] }
 0x348   : > { %3191 = vst [vmem:[#allocation2 + $0xc4] sm:$0xf] %v3030_v13  ;;  %v3788_v58 = vsel %vm7128_vm2, %v3783_v14, %v3787_v28  ;;  %v8654_v3 = vpack.c.b16 %v4954_v62, %v4953_v8  ;;  %v6374_v55 = vrot.slane %v8661_v7, 9  ;;  %v8680_v8 = vld [vmem:[#allocation2 + $0x78] sm:$0xff] }
 0x349   : > { %3194 = vst [vmem:[#allocation2 + $0xc8] sm:$0x1] %v3193_v35  ;;  %4332 = vmatmul.bf16.gmra.mxu3 %v8512_v49  ;;  %v3868_v59 = vunpack.c.l.b16 %v3788_v58  ;;  %v4204_v9 = vpop.f32.mrf.mxu2  ;;  %v6639_v58 = vld [vmem:[#allocation3 + $0x1b0] sm:$0xff] }
 0x34a   : > { %9299 = vst [vmem:[#allocation17_spill] sm:$0xff] %v8654_v3  ;;  %v4205_v56 = vadd.f32 %v4204_v9, %v8424_v40  ;;  %5188 = vmatpush.bf16.msra.mxu3 %v6639_v58 }
 0x34b   : > { %v8657_v1 = vpack.c.b16 %v3868_v59, %v3867_v20  ;;  %v6607_v59 = vld [vmem:[#allocation3 + $0xb0] sm:$0xff] }
 0x34c   : > { %v4293_v23 = vpop.f32.mrf.mxu3  ;;  %v8659_v16 = vpop.f32.mrf.mxu1  ;;  %4691 = vmatpush.bf16.msra.mxu2 %v6607_v59 }
 0x34d   : > { %v4528_v50 = vpop.f32.mrf.mxu0  ;;  %v4294_v52 = vadd.f32 %v4293_v23, %v4205_v56 }
 0x34f   : > { %v8663_v43 = vld [vmem:[#allocation2 + $0xc4] sm:$0xf]  ;;  %4184 = vmatmul.bf16.gmra.mxu1 %v8657_v1  ;;  %v8668_v19 = vadd.f32 %v4526_v44, %v4294_v52 }
 0x350   : > { %v8666_v12 = vld [vmem:[#allocation2 + $0xc8] sm:$0x1]  ;;  %v4910_v40 = vrot.slane %v8663_v43, 5  ;;  %v3803_v22 = vshrl.u32 %v8663_v43, 16 }
 0x351   : > { %v4913_v27 = vrot.slane %v8666_v12, 5  ;;  %v4206_v24 = vpop.f32.mrf.mxu2 }
 0x352   : > { %v4911_v53 = vsel %vm7661_vm5, %v6374_v55, %v4910_v40  ;;  %v4912_v33 = vrot.slane %v4910_v40, 4  ;;  %v4207_v17 = vadd.f32 %v4206_v24, %v8440_v18  ;;  %v6647_v40 = vld [vmem:[#allocation3 + $0x1f0] sm:$0xff] }
 0x353   : > { %v4987_v13 = vunpack.c.l.b16 %v4911_v53  ;;  %5277 = vmatpush.bf16.msra.mxu0 %v6647_v40 }
 0x354   : > { %v4295_v14 = vpop.f32.mrf.mxu3  ;;  %v4914_v28 = vsel %vm7661_vm5, %v4912_v33, %v4913_v27  ;;  %v8678_v62 = vpop.f32.mrf.mxu1  ;;  %v6883_v33 = vld [vmem:[#allocation2 + $0xc] sm:$0xff] }
 0x355   : > { %v4531_v44 = vpop.f32.mrf.mxu0  ;;  %v4988_v35 = vunpack.c.l.b16 %v4914_v28  ;;  %v4296_v30 = vadd.f32 %v4295_v14, %v4207_v17 }
 0x356   : > { %4248 = vmatmul.bf16.gmra.mxu2 %v8512_v49  ;;  %4570 = vmatmul.bf16.gmra.mxu0 %v8680_v8  ;;  %v6655_v49 = vld [vmem:[#allocation3 + $0x230] sm:$0xff] }
 0x357   : > { %v8682_v20 = vpack.c.b16 %v4988_v35, %v4987_v13  ;;  %v8686_v18 = vadd.f32 %v4528_v50, %v4296_v30  ;;  %5366 = vmatpush.bf16.msra.mxu1 %v6655_v49  ;;  %v8697_v13 = vld [vmem:[#allocation2 + $0x84] sm:$0xff]  ;;  %v302_v49 = vld [vmem:[#allocation2 + $0xcc] sm:$0x1] }
 0x359   : > { %9300 = vst [vmem:[#allocation21_spill] sm:$0xff] %v8682_v20  ;;  %4337 = vmatmul.bf16.gmra.mxu3 %v8555_v47  ;;  %v4209_v9 = vpop.f32.mrf.mxu2 }
 0x35a   : > { %v4210_v56 = vadd.f32 %v4209_v9, %v8463_v2 }
 0x35c   : > { %v4298_v23 = vpop.f32.mrf.mxu3  ;;  %v8690_v52 = vpop.f32.mrf.mxu1 }
 0x35d   : > { %v4533_v55 = vpop.f32.mrf.mxu0  ;;  %v4299_v53 = vadd.f32 %v4298_v23, %v4210_v56  ;;  %v8707_v56 = vld [vmem:[#allocation2 + $0x18] sm:$0xff] }
 0x35f   : > { %4609 = vmatmul.bf16.vlgmr.msrb.gmra.mxu1 %v6883_v33  ;;  %v8692_v27 = vadd.f32 %v4531_v44, %v4299_v53 }
 0x361   : > { %v4211_v50 = vpop.f32.mrf.mxu2 }
 0x362   : > { %v4212_v24 = vadd.f32 %v4211_v50, %v8479_v42  ;;  %v8715_v50 = vld [vmem:[#allocation2 + $0x90] sm:$0xff] }
 0x364   : > { %v4300_v17 = vpop.f32.mrf.mxu3  ;;  %v8695_v14 = vpop.f32.mrf.mxu1 }
 0x365   : > { %v4536_v2 = vpop.f32.mrf.mxu0  ;;  %v4301_v28 = vadd.f32 %v4300_v17, %v4212_v24  ;;  %v6638_v24 = vld [vmem:[#allocation3 + $0x1a8] sm:$0xff] }
 0x366   : > { %4253 = vmatmul.bf16.gmra.mxu2 %v8555_v47  ;;  %4575 = vmatmul.bf16.gmra.mxu0 %v8697_v13  ;;  %v6606_v17 = vld [vmem:[#allocation3 + $0xa8] sm:$0xff] }
 0x367   : > { %v8701_v35 = vadd.f32 %v4533_v55, %v4301_v28  ;;  %v303_v28 = vsel %vm7839_vm8, 0, %v302_v49  ;;  %4692 = vmatpush.bf16.msra.mxu2 %v6606_v17  ;;  %5189 = vmatpush.bf16.msra.mxu3 %v6638_v24  ;;  %v6654_v49 = vld [vmem:[#allocation3 + $0x228] sm:$0xff]  ;;  %v3790_v24 = vshrl.u32 %v8661_v7, 16  ;;  %v3793_v17 = vshll.u32 %v8661_v7, 16 }
 0x368   : > { %304 = vst [vmem:[#allocation2 + $0xcc] sm:$0x1] %v303_v28  ;;  %5367 = vmatpush.bf16.msra.mxu1 %v6654_v49  ;;  %v6645_v49 = vld [vmem:[#allocation3 + $0x1e0] sm:$0xff] }
 0x369   : > { %4342 = vmatmul.bf16.gmra.mxu3 %v8591_v26  ;;  %v4214_v44 = vpop.f32.mrf.mxu2  ;;  %v3792_v20 = vrot.slane %v3790_v24, 4  ;;  %v3795_v3 = vrot.slane %v3793_v17, 5  ;;  %v6604_v17 = vld [vmem:[#allocation3 + $0x98] sm:$0xff] }
 0x36a   : > { %v4215_v30 = vadd.f32 %v4214_v44, %v8510_v31 }
 0x36b   : > { %v3796_v24 = vor.u32 %v3795_v3, %v3792_v20  ;;  %v6603_v20 = vld [vmem:[#allocation3 + $0x90] sm:$0xff] }
 0x36c   : > { %v4303_v58 = vpop.f32.mrf.mxu3  ;;  %v8705_v42 = vpop.f32.mrf.mxu1 }
 0x36d   : > { %v4538_v59 = vpop.f32.mrf.mxu0  ;;  %v4304_v9 = vadd.f32 %v4303_v58, %v4215_v30  ;;  %v3797_v3 = vrot.slane %v3796_v24, 4 }
 0x36f   : > { %4614 = vmatmul.bf16.gmra.mxu1 %v8707_v56  ;;  %v8710_v23 = vadd.f32 %v4536_v2, %v4304_v9 }
 0x371   : > { %v4216_v47 = vpop.f32.mrf.mxu2 }
 0x372   : > { %v4217_v55 = vadd.f32 %v4216_v47, %v8527_v54  ;;  %v358_v54 = vld [vmem:[#allocation2 + $0xd4] sm:$0x1]  ;;  %v6646_v47 = vld [vmem:[#allocation3 + $0x1e8] sm:$0xff] }
 0x373   : > { %v359_v44 = vsel %vm7853_vm10, 0, %v358_v54  ;;  %5278 = vmatpush.bf16.msra.mxu0 %v6646_v47  ;;  %v8743_v47 = vld [vmem:[#allocation2 + $0x9c] sm:$0xff] }
 0x374   : > { %v4305_v40 = vpop.f32.mrf.mxu3  ;;  %v8713_v53 = vpop.f32.mrf.mxu1  ;;  %360 = vst [vmem:[#allocation2 + $0xd4] sm:$0x1] %v359_v44 }
 0x375   : > { %v4541_v33 = vpop.f32.mrf.mxu0  ;;  %v4306_v31 = vadd.f32 %v4305_v40, %v4217_v55  ;;  %v3799_v40 = vshll.u32 %v8663_v43, 16  ;;  %9301 = vst [vmem:[#allocation19_spill] sm:$0xff] %v8743_v47 }
 0x376   : > { %4258 = vmatmul.bf16.gmra.mxu2 %v8591_v26  ;;  %4580 = vmatmul.bf16.gmra.mxu0 %v8715_v50 }
 0x377   : > { %v8721_v2 = vadd.f32 %v4538_v59, %v4306_v31  ;;  %v8729_v59 = vld [vmem:[#allocation2 + $0x24] sm:$0xff]  ;;  %v8739_v44 = vrot.slane %v3799_v40, 5  ;;  %v3809_v40 = vshll.u32 %v8666_v12, 16  ;;  %5279 = vmatpush.bf16.msra.mxu0 %v6645_v49 }
 0x379   : > { %4347 = vmatmul.bf16.gmra.mxu3 %v8623_v11  ;;  %v4219_v30 = vpop.f32.mrf.mxu2  ;;  %v3811_v34 = vrot.slane %v3809_v40, 5 }
 0x37a   : > { %v4220_v37 = vadd.f32 %v4219_v30, %v8553_v29  ;;  %v3805_v30 = vrot.slane %v3803_v22, 4  ;;  %v3246_v22 = vld [vmem:[#allocation2 + $0xcc] sm:$0xf] }
 0x37b   : > { %v3814_v57 = vshrl.u32 %v3246_v22, 16 }
 0x37c   : > { %v4308_v58 = vpop.f32.mrf.mxu3  ;;  %v8727_v9 = vpop.f32.mrf.mxu1 }
 0x37d   : > { %v4543_v26 = vpop.f32.mrf.mxu0  ;;  %v4309_v55 = vadd.f32 %v4308_v58, %v4220_v37  ;;  %v3816_v40 = vrot.slane %v3814_v57, 4 }
 0x37f   : > { %4619 = vmatmul.bf16.gmra.mxu1 %v8729_v59  ;;  %v8734_v31 = vadd.f32 %v4541_v33, %v4309_v55  ;;  %v6605_v33 = vld [vmem:[#allocation3 + $0xa0] sm:$0xff] }
 0x380   : > { %v6637_v55 = vld [vmem:[#allocation3 + $0x1a0] sm:$0xff]  ;;  %4693 = vmatpush.bf16.msra.mxu2 %v6605_v33  ;;  %v3817_v33 = vshll.u32 %v3246_v22, 16 }
 0x381   : > { %v4221_v29 = vpop.f32.mrf.mxu2  ;;  %5190 = vmatpush.bf16.msra.mxu3 %v6637_v55 }
 0x382   : > { %v4222_v28 = vadd.f32 %v4221_v29, %v8569_v63  ;;  %v3806_v63 = vor.u32 %v3805_v30, %v8739_v44  ;;  %v3247_v29 = vld [vmem:[#allocation2 + $0xd0] sm:$0xf]  ;;  %v3819_v22 = vrot.slane %v3817_v33, 5 }
 0x383   : > { %v3823_v55 = vshll.u32 %v3247_v29, 16  ;;  %v3827_v49 = vshrl.u32 %v3247_v29, 16 }
 0x384   : > { %v4310_v54 = vpop.f32.mrf.mxu3  ;;  %v8741_v37 = vpop.f32.mrf.mxu1  ;;  %v3807_v30 = vrot.slane %v3806_v63, 4  ;;  %4694 = vmatpush.bf16.msra.mxu2 %v6604_v17  ;;  %v3820_v33 = vor.u32 %v3819_v22, %v3816_v40 }
 0x385   : > { %v4546_v58 = vpop.f32.mrf.mxu0  ;;  %v4311_v43 = vadd.f32 %v4310_v54, %v4222_v28  ;;  %v6636_v54 = vld [vmem:[#allocation3 + $0x198] sm:$0xff]  ;;  %v3825_v29 = vrot.slane %v3823_v55, 5 }
 0x386   : > { %4263 = vmatmul.bf16.gmra.mxu2 %v8623_v11  ;;  %4585 = vmatmul.bf16.gmra.mxu0 %v8743_v47  ;;  %v6644_v11 = vld [vmem:[#allocation3 + $0x1d8] sm:$0xff] }
 0x387   : > { %v8748_v7 = vadd.f32 %v4543_v26, %v4311_v43  ;;  %5191 = vmatpush.bf16.msra.mxu3 %v6636_v54  ;;  %5280 = vmatpush.bf16.msra.mxu0 %v6644_v11  ;;  %v8755_v47 = vld [vmem:[#allocation2 + $0x30] sm:$0xff]  ;;  %v6602_v54 = vld [vmem:[#allocation3 + $0x88] sm:$0xff] }
 0x388   : > { %4695 = vmatpush.bf16.msra.mxu2 %v6603_v20  ;;  %v6634_v11 = vld [vmem:[#allocation3 + $0x188] sm:$0xff]  ;;  %v8770_v20 = vld [vmem:[#allocation2 + $0xa8] sm:$0xff] }
 0x389   : > { %9302 = vst [vmem:[#allocation20_spill] sm:$0xff] %v8748_v7  ;;  %4352 = vmatmul.bf16.gmra.mxu3 %v8657_v1  ;;  %v4224_v28 = vpop.f32.mrf.mxu2  ;;  %v6643_v7 = vld [vmem:[#allocation3 + $0x1d0] sm:$0xff] }
 0x38a   : > { %v4225_v21 = vadd.f32 %v4224_v28, %v8589_v0  ;;  %v3812_v0 = vsel %vm7128_vm2, %v3807_v30, %v3811_v34  ;;  %v3829_v28 = vrot.slane %v3827_v49, 4  ;;  %v6642_v34 = vld [vmem:[#allocation3 + $0x1c8] sm:$0xff]  ;;  %v6633_v49 = vld [vmem:[#allocation3 + $0x180] sm:$0xff] }
 0x38b   : > { %5192 = vmatpush.bf16.msra.mxu3 %v6635_v46  ;;  %5281 = vmatpush.bf16.msra.mxu0 %v6643_v7  ;;  %v3902_v17 = vunpack.c.l.b16 %v3812_v0  ;;  %v6601_v7 = vld [vmem:[#allocation3 + $0x80] sm:$0xff] }
 0x38c   : > { %v4313_v45 = vpop.f32.mrf.mxu3  ;;  %v8753_v26 = vpop.f32.mrf.mxu1  ;;  %4696 = vmatpush.bf16.msra.mxu2 %v6602_v54  ;;  %v3830_v55 = vor.u32 %v3829_v28, %v3825_v29  ;;  %v6641_v0 = vld [vmem:[#allocation3 + $0x1c0] sm:$0xff] }
 0x38d   : > { %v4548_v43 = vpop.f32.mrf.mxu0  ;;  %v4314_v12 = vadd.f32 %v4313_v45, %v4225_v21  ;;  %v3802_v45 = vsel %vm7128_vm2, %v3797_v3, %v8739_v44  ;;  %v8765_v21 = vld [vmem:[#allocation2 + $0xd4] sm:$0x1] }
 0x38e   : > { %v3901_v3 = vunpack.c.l.b16 %v3802_v45  ;;  %v3833_v46 = vshll.u32 %v8765_v21, 16  ;;  %v3821_v45 = vrot.slane %v3820_v33, 4 }
 0x38f   : > { %4624 = vmatmul.bf16.gmra.mxu1 %v8755_v47  ;;  %v8760_v63 = vadd.f32 %v4546_v58, %v4314_v12  ;;  %5193 = vmatpush.bf16.msra.mxu3 %v6634_v11 }
 0x390   : > { %5282 = vmatpush.bf16.msra.mxu0 %v6642_v34  ;;  %4697 = vmatpush.bf16.msra.mxu2 %v6601_v7  ;;  %v3835_v40 = vrot.slane %v3833_v46, 5 }
 0x391   : > { %9303 = vst [vmem:[#allocation24_spill] sm:$0xff] %v8760_v63  ;;  %v4226_v24 = vpop.f32.mrf.mxu2  ;;  %v3903_v63 = vpack.c.b16 %v3902_v17, %v3901_v3 }
 0x392   : > { %v4227_v58 = vadd.f32 %v4226_v24, %v8602_v32  ;;  %v3831_v24 = vrot.slane %v3830_v55, 4 }
 0x393   : > { %5194 = vmatpush.bf16.msra.mxu3 %v6633_v49 }
 0x394   : > { %v4315_v30 = vpop.f32.mrf.mxu3  ;;  %v8768_v12 = vpop.f32.mrf.mxu1  ;;  %5283 = vmatpush.bf16.msra.mxu0 %v6641_v0  ;;  %v8792_v0 = vld [vmem:[#allocation2 + $0xb4] sm:$0xff] }
 0x395   : > { %v4551_v44 = vpop.f32.mrf.mxu0  ;;  %v4316_v57 = vadd.f32 %v4315_v30, %v4227_v58  ;;  %v8784_v58 = vld [vmem:[#allocation2 + $0x3c] sm:$0xff] }
 0x396   : > { %4268 = vmatmul.bf16.gmra.mxu2 %v8657_v1  ;;  %4590 = vmatmul.bf16.gmra.mxu0 %v8770_v20  ;;  %v3826_v1 = vsel %vm7128_vm2, %v3821_v45, %v3825_v29  ;;  %v6653_v30 = vld [vmem:[#allocation3 + $0x220] sm:$0xff]  ;;  %v6888_v45 = vld [vmem:[#allocation2 + $0x4] sm:$0xf] }
 0x397   : > { %v8775_v32 = vadd.f32 %v4548_v43, %v4316_v57  ;;  %v3836_v43 = vsel %vm7128_vm2, %v3831_v24, %v3835_v40  ;;  %v3905_v57 = vunpack.c.l.b16 %v3826_v1  ;;  %5368 = vmatpush.bf16.msra.mxu1 %v6653_v30  ;;  %v4797_v24 = vrot.slane %v6888_v45, 5  ;;  %v6889_v40 = vld [vmem:[#allocation2] sm:$0xf] }
 0x399   : > { %4357 = vmatmul.bf16.gmra.mxu3 %v3903_v63  ;;  %v4229_v22 = vpop.f32.mrf.mxu2 }
 0x39a   : > { %v4230_v28 = vadd.f32 %v4229_v22, %v8625_v6  ;;  %v3906_v6 = vunpack.c.l.b16 %v3836_v43  ;;  %v6358_v22 = vrot.slane %v6889_v40, 9 }
 0x39c   : > { %v4318_v54 = vpop.f32.mrf.mxu3  ;;  %v8778_v11 = vpop.f32.mrf.mxu1  ;;  %v3907_v49 = vpack.c.b16 %v3906_v6, %v3905_v57 }
 0x39d   : > { %v4553_v17 = vpop.f32.mrf.mxu0  ;;  %v4319_v34 = vadd.f32 %v4318_v54, %v4230_v28  ;;  %v4799_v28 = vrot.slane %v4797_v24, 4 }
 0x39f   : > { %4629 = vmatmul.bf16.gmra.mxu1 %v8784_v58  ;;  %v8787_v3 = vadd.f32 %v4551_v44, %v4319_v34 }
 0x3a1   : > { %v4231_v33 = vpop.f32.mrf.mxu2 }
 0x3a2   : > { %v4232_v55 = vadd.f32 %v4231_v33, %v8635_v39  ;;  %v6890_v39 = vld [vmem:[#allocation2 + $0x8] sm:$0x1] }
 0x3a3   : > { %v4800_v54 = vrot.slane %v6890_v39, 5 }
 0x3a4   : > { %v4320_v46 = vpop.f32.mrf.mxu3  ;;  %v8790_v7 = vpop.f32.mrf.mxu1 }
 0x3a5   : > { %v4556_v29 = vpop.f32.mrf.mxu0  ;;  %v4321_v36 = vadd.f32 %v4320_v46, %v4232_v55 }
 0x3a6   : > { %4273 = vmatmul.bf16.gmra.mxu2 %v3903_v63  ;;  %4595 = vmatmul.bf16.gmra.mxu0 %v8792_v0  ;;  %v4798_v63 = vsel %vm7661_vm5, %v6358_v22, %v4797_v24  ;;  %v9304_v24 = vld [vmem:[#allocation27_spill] sm:$0xff] }
 0x3a7   : > { %v8795_v44 = vadd.f32 %v4553_v17, %v4321_v36  ;;  %v4801_v17 = vsel %vm7661_vm5, %v4799_v28, %v4800_v54  ;;  %v4923_v55 = vunpack.c.l.b16 %v4798_v63 }
 0x3a8   : > { %v4924_v46 = vunpack.c.l.b16 %v4801_v17 }
 0x3a9   : > { %4362 = vmatmul.bf16.gmra.mxu3 %v3907_v49  ;;  %v4234_v34 = vpop.f32.mrf.mxu2 }
 0x3aa   : > { %v4235_v1 = vadd.f32 %v4234_v34, %v8659_v16  ;;  %v4955_v39 = vpack.c.b16 %v4924_v46, %v4923_v55 }
 0x3ac   : > { %v4323_v43 = vpop.f32.mrf.mxu3  ;;  %v8798_v30 = vpop.f32.mrf.mxu1 }
 0x3ad   : > { %v4558_v57 = vpop.f32.mrf.mxu0  ;;  %v4324_v6 = vadd.f32 %v4323_v43, %v4235_v1  ;;  %v6652_v43 = vld [vmem:[#allocation3 + $0x218] sm:$0xff] }
 0x3ae   : > { %5369 = vmatpush.bf16.msra.mxu1 %v6652_v43 }
 0x3af   : > { %4634 = vmatmul.bf16.gmra.mxu1 %v8529_v41  ;;  %v8805_v33 = vadd.f32 %v4556_v29, %v4324_v6 }
 0x3b1   : > { %v4236_v49 = vpop.f32.mrf.mxu2 }
 0x3b2   : > { %v4237_v16 = vadd.f32 %v4236_v49, %v8678_v62 }
 0x3b4   : > { %v4325_v36 = vpop.f32.mrf.mxu3  ;;  %v8808_v45 = vpop.f32.mrf.mxu1 }
 0x3b5   : > { %v4561_v40 = vpop.f32.mrf.mxu0  ;;  %v4326_v34 = vadd.f32 %v4325_v36, %v4237_v16 }
 0x3b6   : > { %4698 = vmatmul.bf16.vlgmr.msra.gmra.mxu2 %v8707_v56  ;;  %5284 = vmatmul.bf16.vlgmr.msra.gmra.mxu0 %v9304_v24 }
 0x3b7   : > { %v8812_v22 = vadd.f32 %v4558_v57, %v4326_v34 }
 0x3b9   : > { %5195 = vmatmul.bf16.vlgmr.msra.gmra.mxu3 %v4955_v39  ;;  %v4239_v41 = vpop.f32.mrf.mxu2 }
 0x3ba   : > { %v4240_v29 = vadd.f32 %v4239_v41, %v8690_v52  ;;  %v9305_v52 = vld [vmem:[#allocation9_spill] sm:$0xff] }
 0x3bc   : > { %v4328_v28 = vpop.f32.mrf.mxu3  ;;  %v8815_v54 = vpop.f32.mrf.mxu1 }
 0x3bd   : > { %v4563_v62 = vpop.f32.mrf.mxu0  ;;  %v4329_v1 = vadd.f32 %v4328_v28, %v4240_v29 }
 0x3bf   : > { %4639 = vmatmul.bf16.gmra.mxu1 %v8571_v38  ;;  %v8818_v6 = vadd.f32 %v4561_v40, %v4329_v1 }
 0x3c1   : > { %v4241_v56 = vpop.f32.mrf.mxu2 }
 0x3c2   : > { %v4242_v63 = vadd.f32 %v4241_v56, %v8695_v14 }
 0x3c4   : > { %v4330_v57 = vpop.f32.mrf.mxu3  ;;  %v8821_v17 = vpop.f32.mrf.mxu1 }
 0x3c5   : > { %v4566_v55 = vpop.f32.mrf.mxu0  ;;  %v4331_v46 = vadd.f32 %v4330_v57, %v4242_v63 }
 0x3c6   : > { %4703 = vmatmul.bf16.gmra.mxu2 %v8729_v59  ;;  %5289 = vmatmul.bf16.gmra.mxu0 %v9305_v52 }
 0x3c7   : > { %v8825_v49 = vadd.f32 %v4563_v62, %v4331_v46 }
 0x3c9   : > { %5200 = vmatmul.bf16.gmra.mxu3 %v9304_v24  ;;  %v4244_v38 = vpop.f32.mrf.mxu2 }
 0x3ca   : > { %v4245_v16 = vadd.f32 %v4244_v38, %v8705_v42  ;;  %v9306_v42 = vld [vmem:[#allocation10_spill] sm:$0xff]  ;;  %v6651_v38 = vld [vmem:[#allocation3 + $0x210] sm:$0xff] }
 0x3cb   : > { %5370 = vmatpush.bf16.msra.mxu1 %v6651_v38 }
 0x3cc   : > { %v4333_v36 = vpop.f32.mrf.mxu3  ;;  %v8829_v40 = vpop.f32.mrf.mxu1 }
 0x3cd   : > { %v4568_v14 = vpop.f32.mrf.mxu0  ;;  %v4334_v39 = vadd.f32 %v4333_v36, %v4245_v16 }
 0x3cf   : > { %4644 = vmatmul.bf16.gmra.mxu1 %v8604_v51  ;;  %v8832_v34 = vadd.f32 %v4566_v55, %v4334_v39 }
 0x3d1   : > { %v4246_v41 = vpop.f32.mrf.mxu2 }
 0x3d2   : > { %v4247_v59 = vadd.f32 %v4246_v41, %v8713_v53 }
 0x3d4   : > { %v4335_v29 = vpop.f32.mrf.mxu3  ;;  %v8835_v28 = vpop.f32.mrf.mxu1 }
 0x3d5   : > { %v4571_v62 = vpop.f32.mrf.mxu0  ;;  %v4336_v24 = vadd.f32 %v4335_v29, %v4247_v59 }
 0x3d6   : > { %4708 = vmatmul.bf16.gmra.mxu2 %v8755_v47  ;;  %5294 = vmatmul.bf16.gmra.mxu0 %v9306_v42 }
 0x3d7   : > { %v8839_v1 = vadd.f32 %v4568_v14, %v4336_v24 }
 0x3d9   : > { %5205 = vmatmul.bf16.gmra.mxu3 %v9305_v52  ;;  %v4249_v43 = vpop.f32.mrf.mxu2 }
 0x3da   : > { %v4250_v56 = vadd.f32 %v4249_v43, %v8727_v9 }
 0x3dc   : > { %v4338_v63 = vpop.f32.mrf.mxu3  ;;  %v4610_v57 = vpop.f32.mrf.mxu1 }
 0x3dd   : > { %v4573_v55 = vpop.f32.mrf.mxu0  ;;  %v8844_v53 = vadd.f32 %v4610_v57, %v8630_v15  ;;  %v4339_v46 = vadd.f32 %v4338_v63, %v4250_v56 }
 0x3df   : > { %4649 = vmatmul.bf16.gmra.mxu1 %v8639_v48  ;;  %v8847_v47 = vadd.f32 %v4571_v62, %v4339_v46 }
 0x3e1   : > { %v4251_v16 = vpop.f32.mrf.mxu2 }
 0x3e2   : > { %v4252_v36 = vadd.f32 %v4251_v16, %v8741_v37 }
 0x3e4   : > { %v4340_v14 = vpop.f32.mrf.mxu3  ;;  %v4612_v39 = vpop.f32.mrf.mxu1 }
 0x3e5   : > { %v4576_v41 = vpop.f32.mrf.mxu0  ;;  %v8851_v9 = vadd.f32 %v4612_v39, %v8651_v4  ;;  %v4341_v59 = vadd.f32 %v4340_v14, %v4252_v36  ;;  %v6891_v36 = vld [vmem:[#allocation2 + $0x48] sm:$0xff] }
 0x3e6   : > { %4713 = vmatmul.bf16.gmra.mxu2 %v8784_v58  ;;  %5299 = vmatmul.bf16.gmra.mxu0 %v8242_v5 }
 0x3e7   : > { %v8855_v15 = vadd.f32 %v4573_v55, %v4341_v59 }
 0x3e9   : > { %5210 = vmatmul.bf16.gmra.mxu3 %v9306_v42  ;;  %v4254_v29 = vpop.f32.mrf.mxu2 }
 0x3ea   : > { %v4255_v62 = vadd.f32 %v4254_v29, %v8753_v26 }
 0x3ec   : > { %v4343_v24 = vpop.f32.mrf.mxu3  ;;  %v4615_v37 = vpop.f32.mrf.mxu1 }
 0x3ed   : > { %v4578_v43 = vpop.f32.mrf.mxu0  ;;  %v8860_v56 = vadd.f32 %v4615_v37, %v8668_v19  ;;  %v4344_v4 = vadd.f32 %v4343_v24, %v4255_v62  ;;  %v6650_v62 = vld [vmem:[#allocation3 + $0x208] sm:$0xff] }
 0x3ee   : > { %5371 = vmatpush.bf16.msra.mxu1 %v6650_v62 }
 0x3ef   : > { %4654 = vmatmul.bf16.gmra.mxu1 %v8680_v8  ;;  %v8863_v63 = vadd.f32 %v4576_v41, %v4344_v4 }
 0x3f1   : > { %v4256_v58 = vpop.f32.mrf.mxu2 }
 0x3f2   : > { %v4257_v57 = vadd.f32 %v4256_v58, %v8768_v12 }
 0x3f4   : > { %v4345_v55 = vpop.f32.mrf.mxu3  ;;  %v4617_v46 = vpop.f32.mrf.mxu1 }
 0x3f5   : > { %v4581_v38 = vpop.f32.mrf.mxu0  ;;  %v8867_v16 = vadd.f32 %v4617_v46, %v8686_v18  ;;  %v4346_v26 = vadd.f32 %v4345_v55, %v4257_v57  ;;  %v6892_v46 = vld [vmem:[#allocation2 + $0x54] sm:$0xff] }
 0x3f6   : > { %4718 = vmatmul.bf16.gmra.mxu2 %v6891_v36  ;;  %5304 = vmatmul.bf16.gmra.mxu0 %v8275_v10 }
 0x3f7   : > { %v8870_v19 = vadd.f32 %v4578_v43, %v4346_v26 }
 0x3f9   : > { %5215 = vmatmul.bf16.gmra.mxu3 %v8242_v5  ;;  %v4259_v14 = vpop.f32.mrf.mxu2 }
 0x3fa   : > { %v4260_v39 = vadd.f32 %v4259_v14, %v8778_v11 }
 0x3fc   : > { %v4348_v41 = vpop.f32.mrf.mxu3  ;;  %v4620_v12 = vpop.f32.mrf.mxu1 }
 0x3fd   : > { %v4583_v59 = vpop.f32.mrf.mxu0  ;;  %v8875_v29 = vadd.f32 %v4620_v12, %v8692_v27  ;;  %v4349_v18 = vadd.f32 %v4348_v41, %v4260_v39 }
 0x3ff   : > { %4659 = vmatmul.bf16.gmra.mxu1 %v8697_v13  ;;  %v8878_v24 = vadd.f32 %v4581_v38, %v4349_v18 }
 0x401   : > { %v4261_v37 = vpop.f32.mrf.mxu2 }
 0x402   : > { %v4262_v43 = vadd.f32 %v4261_v37, %v8790_v7 }
 0x404   : > { %v4350_v4 = vpop.f32.mrf.mxu3  ;;  %v4622_v58 = vpop.f32.mrf.mxu1 }
 0x405   : > { %v4586_v57 = vpop.f32.mrf.mxu0  ;;  %v8882_v11 = vadd.f32 %v4622_v58, %v8701_v35  ;;  %v4351_v55 = vadd.f32 %v4350_v4, %v4262_v43 }
 0x406   : > { %4723 = vmatmul.bf16.gmra.mxu2 %v6892_v46  ;;  %5309 = vmatmul.bf16.gmra.mxu0 %v8310_v60 }
 0x407   : > { %v8885_v27 = vadd.f32 %v4583_v59, %v4351_v55 }
 0x409   : > { %5220 = vmatmul.bf16.gmra.mxu3 %v8275_v10  ;;  %v4264_v38 = vpop.f32.mrf.mxu2 }
 0x40a   : > { %v4265_v26 = vadd.f32 %v4264_v38, %v8798_v30  ;;  %v9307_v38 = vld [vmem:[#allocation19_spill] sm:$0xff] }
 0x40c   : > { %v4353_v36 = vpop.f32.mrf.mxu3  ;;  %v4625_v7 = vpop.f32.mrf.mxu1 }
 0x40d   : > { %v4588_v14 = vpop.f32.mrf.mxu0  ;;  %v8890_v39 = vadd.f32 %v4625_v7, %v8710_v23  ;;  %v4354_v35 = vadd.f32 %v4353_v36, %v4265_v26  ;;  %v6649_v26 = vld [vmem:[#allocation3 + $0x200] sm:$0xff] }
 0x40e   : > { %5372 = vmatpush.bf16.msra.mxu1 %v6649_v26 }
 0x40f   : > { %4664 = vmatmul.bf16.gmra.mxu1 %v8715_v50  ;;  %v8893_v41 = vadd.f32 %v4586_v57, %v4354_v35 }
 0x411   : > { %v4266_v12 = vpop.f32.mrf.mxu2 }
 0x412   : > { %v4267_v59 = vadd.f32 %v4266_v12, %v8808_v45 }
 0x414   : > { %v4355_v18 = vpop.f32.mrf.mxu3  ;;  %v4627_v62 = vpop.f32.mrf.mxu1 }
 0x415   : > { %v4591_v37 = vpop.f32.mrf.mxu0  ;;  %v8897_v43 = vadd.f32 %v4627_v62, %v8721_v2  ;;  %v4356_v30 = vadd.f32 %v4355_v18, %v4267_v59 }
 0x416   : > { %4728 = vmatmul.bf16.gmra.mxu2 %v8604_v51  ;;  %5314 = vmatmul.bf16.gmra.mxu0 %v8345_v61 }
 0x417   : > { %v8901_v23 = vadd.f32 %v4588_v14, %v4356_v30 }
 0x419   : > { %5225 = vmatmul.bf16.gmra.mxu3 %v8310_v60  ;;  %v4269_v4 = vpop.f32.mrf.mxu2 }
 0x41a   : > { %v4270_v58 = vadd.f32 %v4269_v4, %v8815_v54  ;;  %v9308_v54 = vld [vmem:[#allocation20_spill] sm:$0xff] }
 0x41c   : > { %v4358_v57 = vpop.f32.mrf.mxu3  ;;  %v4630_v45 = vpop.f32.mrf.mxu1 }
 0x41d   : > { %v4593_v55 = vpop.f32.mrf.mxu0  ;;  %v8906_v46 = vadd.f32 %v4630_v45, %v8734_v31  ;;  %v4359_v2 = vadd.f32 %v4358_v57, %v4270_v58  ;;  %v9309_v31 = vld [vmem:[#allocation11_spill] sm:$0xff]  ;;  %v9310_v57 = vld [vmem:[#allocation24_spill] sm:$0xff] }
 0x41f   : > { %4669 = vmatmul.bf16.gmra.mxu1 %v9307_v38  ;;  %v8909_v51 = vadd.f32 %v4591_v37, %v4359_v2 }
 0x421   : > { %v4271_v36 = vpop.f32.mrf.mxu2 }
 0x422   : > { %v4272_v7 = vadd.f32 %v4271_v36, %v8821_v17 }
 0x424   : > { %v4360_v14 = vpop.f32.mrf.mxu3  ;;  %v4632_v35 = vpop.f32.mrf.mxu1 }
 0x425   : > { %v4596_v12 = vpop.f32.mrf.mxu0  ;;  %v8913_v59 = vadd.f32 %v4632_v35, %v9308_v54  ;;  %v4361_v18 = vadd.f32 %v4360_v14, %v4272_v7  ;;  %v9311_v54 = vld [vmem:[#allocation12_spill] sm:$0xff] }
 0x426   : > { %4733 = vmatmul.bf16.gmra.mxu2 %v8639_v48  ;;  %5319 = vmatmul.bf16.gmra.mxu0 %v9309_v31 }
 0x427   : > { %v8917_v62 = vadd.f32 %v4593_v55, %v4361_v18 }
 0x429   : > { %5230 = vmatmul.bf16.gmra.mxu3 %v8345_v61  ;;  %v4274_v37 = vpop.f32.mrf.mxu2 }
 0x42a   : > { %v4275_v30 = vadd.f32 %v4274_v37, %v8829_v40 }
 0x42c   : > { %v4363_v4 = vpop.f32.mrf.mxu3  ;;  %v4635_v17 = vpop.f32.mrf.mxu1 }
 0x42d   : > { %v4598_v58 = vpop.f32.mrf.mxu0  ;;  %v8922_v45 = vadd.f32 %v4635_v17, %v9310_v57  ;;  %v4364_v2 = vadd.f32 %v4363_v4, %v4275_v30 }
 0x42f   : > { %4674 = vmatmul.bf16.gmra.mxu1 %v8770_v20  ;;  %v8925_v26 = vadd.f32 %v4596_v12, %v4364_v2 }
 0x431   : > { %v4276_v48 = vpop.f32.mrf.mxu2 }
 0x432   : > { %v4277_v55 = vadd.f32 %v4276_v48, %v8835_v28 }
 0x434   : > { %v4365_v36 = vpop.f32.mrf.mxu3  ;;  %v4637_v7 = vpop.f32.mrf.mxu1 }
 0x435   : > { %v5285_v14 = vpop.f32.mrf.mxu0  ;;  %v8929_v35 = vadd.f32 %v4637_v7, %v8775_v32  ;;  %v4366_v40 = vadd.f32 %v4365_v36, %v4277_v55  ;;  %v9312_v36 = vld [vmem:[#allocation13_spill] sm:$0xff] }
 0x436   : > { %4738 = vmatmul.bf16.gmra.mxu2 %v8680_v8  ;;  %5324 = vmatmul.bf16.gmra.mxu0 %v9311_v54 }
 0x437   : > { %v8933_v18 = vadd.f32 %v4598_v58, %v4366_v40 }
 0x439   : > { %5235 = vmatmul.bf16.gmra.mxu3 %v9309_v31  ;;  %v4699_v12 = vpop.f32.mrf.mxu2 }
 0x43a   : > { %v8937_v37 = vadd.f32 %v4699_v12, %v8844_v53 }
 0x43c   : > { %v5196_v28 = vpop.f32.mrf.mxu3  ;;  %v4640_v30 = vpop.f32.mrf.mxu1 }
 0x43d   : > { %v8939_v4 = vadd.f32 %v5285_v14, %v5196_v28  ;;  %v5287_v17 = vpop.f32.mrf.mxu0  ;;  %v8942_v32 = vadd.f32 %v4640_v30, %v8787_v3 }
 0x43f   : > { %4679 = vmatmul.bf16.gmra.mxu1 %v8792_v0 }
 0x441   : > { %v4701_v8 = vpop.f32.mrf.mxu2 }
 0x442   : > { %v8946_v58 = vadd.f32 %v4701_v8, %v8851_v9 }
 0x444   : > { %v5198_v57 = vpop.f32.mrf.mxu3  ;;  %v4642_v2 = vpop.f32.mrf.mxu1 }
 0x445   : > { %v8948_v48 = vadd.f32 %v5287_v17, %v5198_v57  ;;  %v5290_v53 = vpop.f32.mrf.mxu0  ;;  %v8951_v55 = vadd.f32 %v4642_v2, %v8795_v44  ;;  %v6583_v44 = vld [vmem:[#allocation2 + $0xc0] sm:$0xff] }
 0x446   : > { %4743 = vmatmul.bf16.gmra.mxu2 %v8697_v13  ;;  %5329 = vmatmul.bf16.gmra.mxu0 %v9312_v36 }
 0x449   : > { %5240 = vmatmul.bf16.gmra.mxu3 %v9311_v54  ;;  %v4704_v3 = vpop.f32.mrf.mxu2 }
 0x44a   : > { %v8957_v7 = vadd.f32 %v4704_v3, %v8860_v56 }
 0x44c   : > { %v5201_v9 = vpop.f32.mrf.mxu3  ;;  %v4645_v14 = vpop.f32.mrf.mxu1 }
 0x44d   : > { %v8959_v40 = vadd.f32 %v5290_v53, %v5201_v9  ;;  %v5292_v12 = vpop.f32.mrf.mxu0  ;;  %v8962_v28 = vadd.f32 %v4645_v14, %v8805_v33  ;;  %v9314_v53 = vld [vmem:[#allocation14_spill] sm:$0xff] }
 0x44f   : > { %4684 = vmatmul.bf16.gmra.mxu1 %v6583_v44 }
 0x451   : > { %v4706_v30 = vpop.f32.mrf.mxu2 }
 0x452   : > { %v8965_v13 = vadd.f32 %v4706_v30, %v8867_v16 }
 0x454   : > { %v5203_v17 = vpop.f32.mrf.mxu3  ;;  %v4647_v8 = vpop.f32.mrf.mxu1 }
 0x455   : > { %v8967_v57 = vadd.f32 %v5292_v12, %v5203_v17  ;;  %v8970_v56 = vadd.f32 %v4647_v8, %v8812_v22  ;;  %v5295_v2 = vpop.f32.mrf.mxu0 }
 0x456   : > { %4748 = vmatmul.bf16.gmra.mxu2 %v8715_v50  ;;  %5334 = vmatmul.bf16.gmra.mxu0 %v9314_v53 }
 0x457   : > { %9313 = vst [vmem:[#allocation23_spill] sm:$0xff] %v8970_v56 }
 0x459   : > { %5245 = vmatmul.bf16.gmra.mxu3 %v9312_v36  ;;  %v4709_v33 = vpop.f32.mrf.mxu2 }
 0x45a   : > { %v8976_v3 = vadd.f32 %v4709_v33, %v8875_v29 }
 0x45c   : > { %v5206_v16 = vpop.f32.mrf.mxu3  ;;  %v4650_v9 = vpop.f32.mrf.mxu1 }
 0x45d   : > { %v8978_v14 = vadd.f32 %v5295_v2, %v5206_v16  ;;  %v8981_v12 = vadd.f32 %v4650_v9, %v8818_v6  ;;  %v5297_v22 = vpop.f32.mrf.mxu0  ;;  %v9316_v2 = vld [vmem:[#allocation15_spill] sm:$0xff] }
 0x45f   : > { %5373 = vmatmul.bf16.vlgmr.msra.gmra.mxu1 %v9305_v52 }
 0x461   : > { %v4711_v30 = vpop.f32.mrf.mxu2 }
 0x462   : > { %v8985_v50 = vadd.f32 %v4711_v30, %v8882_v11 }
 0x464   : > { %v5208_v17 = vpop.f32.mrf.mxu3  ;;  %v4652_v8 = vpop.f32.mrf.mxu1 }
 0x465   : > { %v8987_v56 = vadd.f32 %v5297_v22, %v5208_v17  ;;  %v8990_v29 = vadd.f32 %v4652_v8, %v8825_v49  ;;  %v5300_v6 = vpop.f32.mrf.mxu0 }
 0x466   : > { %4753 = vmatmul.bf16.gmra.mxu2 %v9307_v38  ;;  %5339 = vmatmul.bf16.gmra.mxu0 %v9316_v2 }
 0x467   : > { %9315 = vst [vmem:[#allocation22_spill] sm:$0xff] %v8990_v29 }
 0x469   : > { %5250 = vmatmul.bf16.gmra.mxu3 %v9314_v53  ;;  %v4714_v52 = vpop.f32.mrf.mxu2 }
 0x46a   : > { %v8996_v33 = vadd.f32 %v4714_v52, %v8890_v39 }
 0x46c   : > { %v5211_v11 = vpop.f32.mrf.mxu3  ;;  %v4655_v16 = vpop.f32.mrf.mxu1 }
 0x46d   : > { %v8998_v9 = vadd.f32 %v5300_v6, %v5211_v11  ;;  %v9001_v22 = vadd.f32 %v4655_v16, %v8832_v34  ;;  %v5302_v38 = vpop.f32.mrf.mxu0  ;;  %v9317_v6 = vld [vmem:[#allocation18_spill] sm:$0xff] }
 0x46f   : > { %5378 = vmatmul.bf16.gmra.mxu1 %v9306_v42 }
 0x471   : > { %v4716_v49 = vpop.f32.mrf.mxu2 }
 0x472   : > { %v9005_v30 = vadd.f32 %v4716_v49, %v8897_v43  ;;  %v6584_v49 = vld [vmem:[#allocation2 + $0xcc] sm:$0xff] }
 0x474   : > { %v5213_v17 = vpop.f32.mrf.mxu3  ;;  %v4657_v8 = vpop.f32.mrf.mxu1 }
 0x475   : > { %v9007_v29 = vadd.f32 %v5302_v38, %v5213_v17  ;;  %v9010_v39 = vadd.f32 %v4657_v8, %v8839_v1  ;;  %v9318_v1 = vld [vmem:[#allocation16_spill] sm:$0xff] }
 0x476   : > { %4758 = vmatmul.bf16.gmra.mxu2 %v8770_v20  ;;  %5344 = vmatmul.bf16.gmra.mxu0 %v9317_v6 }
 0x479   : > { %5255 = vmatmul.bf16.gmra.mxu3 %v9316_v2 }
 0x47c   : > { %v4660_v34 = vpop.f32.mrf.mxu1 }
 0x47d   : > { %v9016_v42 = vadd.f32 %v4660_v34, %v8847_v47 }
 0x47f   : > { %5383 = vmatmul.bf16.gmra.mxu1 %v8242_v5  ;;  %v9319_v5 = vld [vmem:[#allocation17_spill] sm:$0xff] }
 0x484   : > { %v4662_v43 = vpop.f32.mrf.mxu1 }
 0x485   : > { %v9020_v52 = vadd.f32 %v4662_v43, %v8855_v15 }
 0x486   : > { %4763 = vmatmul.bf16.gmra.mxu2 %v8792_v0  ;;  %5349 = vmatmul.bf16.gmra.mxu0 %v9318_v1 }
 0x489   : > { %5260 = vmatmul.bf16.gmra.mxu3 %v9317_v6 }
 0x48c   : > { %v4665_v20 = vpop.f32.mrf.mxu1 }
 0x48d   : > { %v9026_v11 = vadd.f32 %v4665_v20, %v8863_v63 }
 0x48f   : > { %5388 = vmatmul.bf16.gmra.mxu1 %v8275_v10  ;;  %v9320_v10 = vld [vmem:[#allocation21_spill] sm:$0xff] }
 0x494   : > { %v4667_v47 = vpop.f32.mrf.mxu1 }
 0x495   : > { %v9030_v16 = vadd.f32 %v4667_v47, %v8870_v19 }
 0x496   : > { %4768 = vmatmul.bf16.gmra.mxu2 %v6583_v44  ;;  %5354 = vmatmul.bf16.gmra.mxu0 %v9319_v5 }
 0x499   : > { %5265 = vmatmul.bf16.gmra.mxu3 %v9318_v1 }
 0x49c   : > { %v4670_v0 = vpop.f32.mrf.mxu1 }
 0x49d   : > { %v9035_v15 = vadd.f32 %v4670_v0, %v8878_v24  ;;  %v5305_v0 = vpop.f32.mrf.mxu0 }
 0x49f   : > { %5393 = vmatmul.bf16.gmra.mxu1 %v8310_v60 }
 0x4a4   : > { %v4672_v63 = vpop.f32.mrf.mxu1 }
 0x4a5   : > { %v9039_v38 = vadd.f32 %v4672_v63, %v8885_v27  ;;  %v4719_v63 = vpop.f32.mrf.mxu2 }
 0x4a6   : > { %4773 = vmatmul.bf16.gmra.mxu2 %v6584_v49  ;;  %5359 = vmatmul.bf16.gmra.mxu0 %v9320_v10 }
 0x4a9   : > { %5270 = vmatmul.bf16.gmra.mxu3 %v9319_v5 }
 0x4ac   : > { %v4675_v19 = vpop.f32.mrf.mxu1 }
 0x4ad   : > { %v9044_v44 = vadd.f32 %v4675_v19, %v8893_v41 }
 0x4af   : > { %5398 = vmatmul.bf16.gmra.mxu1 %v8345_v61 }
 0x4b4   : > { %v4677_v24 = vpop.f32.mrf.mxu1 }
 0x4b5   : > { %v9048_v17 = vadd.f32 %v4677_v24, %v8901_v23 }
 0x4bc   : > { %v4680_v60 = vpop.f32.mrf.mxu1 }
 0x4bd   : > { %v9051_v8 = vadd.f32 %v4680_v60, %v8909_v51 }
 0x4bf   : > { %5403 = vmatmul.bf16.gmra.mxu1 %v9309_v31 }
 0x4c4   : > { %v4682_v27 = vpop.f32.mrf.mxu1 }
 0x4c5   : > { %v9055_v34 = vadd.f32 %v4682_v27, %v8917_v62  ;;  %v9070_v62 = vld [vmem:[%s9221_s4] ss:$0 sm:$0xff] }
 0x4cc   : > { %v4685_v41 = vpop.f32.mrf.mxu1 }
 0x4cd   : > { %v9058_v43 = vadd.f32 %v4685_v41, %v8925_v26  ;;  %v5307_v41 = vpop.f32.mrf.mxu0 }
 0x4cf   : > { %5408 = vmatmul.bf16.gmra.mxu1 %v9311_v54 }
 0x4d4   : > { %v4687_v61 = vpop.f32.mrf.mxu1 }
 0x4d5   : > { %v9062_v23 = vadd.f32 %v4687_v61, %v8933_v18 }
 0x4dc   : > { %v5374_v51 = vpop.f32.mrf.mxu1 }
 0x4dd   : > { %v5375_v20 = vadd.f32 %v5374_v51, %v8939_v4  ;;  %v4721_v51 = vpop.f32.mrf.mxu2 }
 0x4df   : > { %v5454_v31 = vadd.f32 %v5375_v20, %v8937_v37  ;;  %5413 = vmatmul.bf16.gmra.mxu1 %v9312_v36  ;;  %v5216_v37 = vpop.f32.mrf.mxu3 }
 0x4e1   : > { %v5490_v54 = vadd.f32 %v9070_v62, %v5454_v31 }
 0x4e3   : > { %v5522_v36 = vmax.f32 %v5490_v54, 0.0 }
 0x4e4   : > { %v5376_v26 = vpop.f32.mrf.mxu1 }
 0x4e5   : > { %v5377_v47 = vadd.f32 %v5376_v26, %v8948_v48 }
 0x4e7   : > { %v5455_v18 = vadd.f32 %v5377_v47, %v8946_v58  ;;  %v5218_v58 = vpop.f32.mrf.mxu3 }
 0x4e9   : > { %v5491_v4 = vadd.f32 %v9070_v62, %v5455_v18 }
 0x4eb   : > { %v5523_v49 = vmax.f32 %v5491_v4, 0.0  ;;  %v5310_v4 = vpop.f32.mrf.mxu0 }
 0x4ec   : > { %v5379_v19 = vpop.f32.mrf.mxu1 }
 0x4ed   : > { %v6661_v24 = vpack.c.bf16 %v5523_v49, %v5522_v36  ;;  %v5380_v60 = vadd.f32 %v5379_v19, %v8959_v40 }
 0x4ef   : > { %6662 = vst [vmem:[%s9080_s25] sm:$0xff] %v6661_v24   ;;  %v5456_v48 = vadd.f32 %v5380_v60, %v8957_v7  ;;  %5418 = vmatmul.bf16.gmra.mxu1 %v9314_v53  ;;  %v5221_v53 = vpop.f32.mrf.mxu3 }
 0x4f1   : > { %v5492_v20 = vadd.f32 %v9070_v62, %v5456_v48 }
 0x4f3   : > { %v5524_v26 = vmax.f32 %v5492_v20, 0.0  ;;  %v5312_v48 = vpop.f32.mrf.mxu0 }
 0x4f4   : > { %v5381_v27 = vpop.f32.mrf.mxu1 }
 0x4f5   : > { %v5382_v61 = vadd.f32 %v5381_v27, %v8967_v57  ;;  %v4724_v57 = vpop.f32.mrf.mxu2 }
 0x4f7   : > { %v5457_v31 = vadd.f32 %v5382_v61, %v8965_v13  ;;  %v5223_v60 = vpop.f32.mrf.mxu3 }
 0x4f9   : > { %v5493_v40 = vadd.f32 %v9070_v62, %v5457_v31 }
 0x4fb   : > { %v5525_v47 = vmax.f32 %v5493_v40, 0.0 }
 0x4fc   : > { %v5384_v54 = vpop.f32.mrf.mxu1 }
 0x4fd   : > { %v6666_v18 = vpack.c.bf16 %v5525_v47, %v5524_v26  ;;  %v5385_v7 = vadd.f32 %v5384_v54, %v8978_v14  ;;  %v4726_v27 = vpop.f32.mrf.mxu2  ;;  %v5315_v26 = vpop.f32.mrf.mxu0 }
 0x4ff   : > { %6738 = vst [vmem:[%s9080_s25 + $0x8] sm:$0xff] %v6666_v18   ;;  %v5458_v36 = vadd.f32 %v5385_v7, %v8976_v3  ;;  %5423 = vmatmul.bf16.gmra.mxu1 %v9316_v2 }
 0x501   : > { %v5494_v19 = vadd.f32 %v9070_v62, %v5458_v36 }
 0x503   : > { %v5526_v61 = vmax.f32 %v5494_v19, 0.0  ;;  %v5306_v19 = vadd.f32 %v5305_v0, %v5216_v37 }
 0x504   : > { %v5386_v49 = vpop.f32.mrf.mxu1 }
 0x505   : > { %v5387_v13 = vadd.f32 %v5386_v49, %v8987_v56  ;;  %v5226_v56 = vpop.f32.mrf.mxu3 }
 0x507   : > { %v5459_v24 = vadd.f32 %v5387_v13, %v8985_v50  ;;  %v9101_v50 = vpop.f32.mrf.mxu2 }
 0x509   : > { %v5495_v14 = vadd.f32 %v9070_v62, %v5459_v24 }
 0x50b   : > { %v5527_v20 = vmax.f32 %v5495_v14, 0.0 }
 0x50c   : > { %v5389_v31 = vpop.f32.mrf.mxu1 }
 0x50d   : > { %v6671_v3 = vpack.c.bf16 %v5527_v20, %v5526_v61  ;;  %v5390_v40 = vadd.f32 %v5389_v31, %v8998_v9  ;;  %v5228_v13 = vpop.f32.mrf.mxu3  ;;  %v5308_v20 = vadd.f32 %v5307_v41, %v5218_v58 }
 0x50f   : > { %6739 = vst [vmem:[%s9080_s25 + $0x10] sm:$0xff] %v6671_v3   ;;  %v5460_v2 = vadd.f32 %v5390_v40, %v8996_v33  ;;  %5428 = vmatmul.bf16.gmra.mxu1 %v9317_v6  ;;  %v5317_v6 = vpop.f32.mrf.mxu0  ;;  %v4731_v14 = vpop.f32.mrf.mxu2  ;;  %v4722_v3 = vadd.f32 %v4721_v51, %v8913_v59  ;;  %v4725_v51 = vadd.f32 %v4724_v57, %v8922_v45  ;;  %v6893_v57 = vld [vmem:[#allocation2 + $0xd0] sm:$0xf] }
 0x511   : > { %v5496_v18 = vadd.f32 %v9070_v62, %v5460_v2 }
 0x513   : > { %v5528_v9 = vmax.f32 %v5496_v18, 0.0 }
 0x514   : > { %v5391_v47 = vpop.f32.mrf.mxu1 }
 0x515   : > { %v5392_v54 = vadd.f32 %v5391_v47, %v9007_v29  ;;  %v4720_v29 = vadd.f32 %v4719_v63, %v8906_v46  ;;  %v9111_v2 = vpop.f32.mrf.mxu3  ;;  %v5311_v63 = vadd.f32 %v5310_v4, %v5221_v53 }
 0x517   : > { %v5461_v7 = vadd.f32 %v5392_v54, %v9005_v30  ;;  %v5320_v47 = vpop.f32.mrf.mxu0  ;;  %v9114_v54 = vpop.f32.mrf.mxu2 }
 0x518   : > { %v5321_v25 = vadd.f32 %v5320_v47, %v9111_v2 }
 0x519   : > { %v5497_v36 = vadd.f32 %v9070_v62, %v5461_v7 }
 0x51b   : > { %v5529_v49 = vmax.f32 %v5497_v36, 0.0 }
 0x51c   : > { %v5394_v33 = vpop.f32.mrf.mxu1 }
 0x51d   : > { %v6676_v24 = vpack.c.bf16 %v5529_v49, %v5528_v9  ;;  %v5395_v61 = vadd.f32 %v5394_v33, %v5306_v19  ;;  %v5233_v59 = vpop.f32.mrf.mxu3  ;;  %v5313_v49 = vadd.f32 %v5312_v48, %v5223_v60  ;;  %v5316_v60 = vadd.f32 %v5315_v26, %v5226_v56 }
 0x51f   : > { %6740 = vst [vmem:[%s9080_s25 + $0x18] sm:$0xff] %v6676_v24   ;;  %5433 = vmatmul.bf16.gmra.mxu1 %v9318_v1  ;;  %v5462_v31 = vadd.f32 %v5395_v61, %v4720_v29  ;;  %v5322_v36 = vpop.f32.mrf.mxu0  ;;  %v4736_v9 = vpop.f32.mrf.mxu2  ;;  %v4727_v24 = vadd.f32 %v4726_v27, %v8929_v35  ;;  %v6894_v35 = vld [vmem:[#allocation2 + $0xcc] sm:$0xf] }
 0x520   : > { %v6375_v27 = vrot.slane %v6894_v35, 9 }
 0x521   : > { %v5498_v37 = vadd.f32 %v9070_v62, %v5462_v31 }
 0x523   : > { %v5530_v1 = vmax.f32 %v5498_v37, 0.0 }
 0x524   : > { %v5396_v30 = vpop.f32.mrf.mxu1 }
 0x525   : > { %v5397_v40 = vadd.f32 %v5396_v30, %v5308_v20  ;;  %v5236_v20 = vpop.f32.mrf.mxu3 }
 0x527   : > { %v5463_v0 = vadd.f32 %v5397_v40, %v4722_v3  ;;  %v5325_v31 = vpop.f32.mrf.mxu0  ;;  %v4739_v3 = vpop.f32.mrf.mxu2  ;;  %v4918_v40 = vrot.slane %v6893_v57, 5 }
 0x529   : > { %v5499_v18 = vadd.f32 %v9070_v62, %v5463_v0  ;;  %v4920_v0 = vrot.slane %v4918_v40, 4  ;;  %v4919_v56 = vsel %vm7661_vm5, %v6375_v27, %v4918_v40  ;;  %v9321_v40 = vld [vmem:[#allocation23_spill] sm:$0xff] }
 0x52b   : > { %v5531_v7 = vmax.f32 %v5499_v18, 0.0  ;;  %v4921_v18 = vrot.slane %v8765_v21, 5 }
 0x52c   : > { %v5399_v46 = vpop.f32.mrf.mxu1 }
 0x52d   : > { %v6681_v58 = vpack.c.bf16 %v5531_v7, %v5530_v1  ;;  %v5400_v41 = vadd.f32 %v5399_v46, %v5311_v63  ;;  %v4730_v1 = vadd.f32 %v9101_v50, %v8942_v32  ;;  %v5318_v7 = vadd.f32 %v5317_v6, %v5228_v13  ;;  %v5238_v63 = vpop.f32.mrf.mxu3 }
 0x52e   : > { %v4922_v26 = vsel %vm7661_vm5, %v4920_v0, %v4921_v18  ;;  %v4991_v32 = vunpack.c.l.b16 %v4919_v56 }
 0x52f   : > { %6741 = vst [vmem:[%s9080_s25 + $0x20] sm:$0xff] %v6681_v58   ;;  %5438 = vmatmul.bf16.gmra.mxu1 %v9319_v5  ;;  %v5464_v33 = vadd.f32 %v5400_v41, %v4725_v51  ;;  %v5327_v41 = vpop.f32.mrf.mxu0  ;;  %v4992_v50 = vunpack.c.l.b16 %v4922_v26 }
 0x531   : > { %v5500_v29 = vadd.f32 %v9070_v62, %v5464_v33 }
 0x533   : > { %v5532_v5 = vmax.f32 %v5500_v29, 0.0 }
 0x534   : > { %v5401_v19 = vpop.f32.mrf.mxu1 }
 0x535   : > { %v5402_v61 = vadd.f32 %v5401_v19, %v5313_v49  ;;  %v4741_v49 = vpop.f32.mrf.mxu2 }
 0x537   : > { %v5465_v53 = vadd.f32 %v5402_v61, %v4727_v24  ;;  %v4993_v24 = vpack.c.b16 %v4992_v50, %v4991_v32 }
 0x539   : > { %v5501_v4 = vadd.f32 %v9070_v62, %v5465_v53  ;;  %v5241_v53 = vpop.f32.mrf.mxu3 }
 0x53b   : > { %v5533_v30 = vmax.f32 %v5501_v4, 0.0 }
 0x53c   : > { %v5404_v45 = vpop.f32.mrf.mxu1 }
 0x53d   : > { %v6686_v48 = vpack.c.bf16 %v5533_v30, %v5532_v5  ;;  %v5405_v37 = vadd.f32 %v5404_v45, %v5316_v60  ;;  %v4744_v4 = vpop.f32.mrf.mxu2  ;;  %v4735_v5 = vadd.f32 %v9114_v54, %v8962_v28  ;;  %v5323_v30 = vadd.f32 %v5322_v36, %v5233_v59 }
 0x53e   : > { %v4737_v60 = vadd.f32 %v4736_v9, %v9321_v40  ;;  %v4740_v59 = vadd.f32 %v4739_v3, %v8981_v12  ;;  %v5328_v9 = vadd.f32 %v5327_v41, %v5238_v63 }
 0x53f   : > { %6742 = vst [vmem:[%s9080_s25 + $0x28] sm:$0xff] %v6686_v48   ;;  %5443 = vmatmul.bf16.gmra.mxu1 %v9320_v10  ;;  %v5466_v46 = vadd.f32 %v5405_v37, %v4730_v1  ;;  %v4732_v10 = vadd.f32 %v4731_v14, %v8951_v55  ;;  %v5330_v55 = vpop.f32.mrf.mxu0 }
 0x540   : > { %v5331_v12 = vadd.f32 %v5330_v55, %v5241_v53 }
 0x541   : > { %v5502_v21 = vadd.f32 %v9070_v62, %v5466_v46  ;;  %v5243_v47 = vpop.f32.mrf.mxu3  ;;  %v5326_v46 = vadd.f32 %v5325_v31, %v5236_v20 }
 0x543   : > { %v5534_v6 = vmax.f32 %v5502_v21, 0.0 }
 0x544   : > { %v5406_v58 = vpop.f32.mrf.mxu1 }
 0x545   : > { %v5407_v51 = vadd.f32 %v5406_v58, %v5318_v7  ;;  %v4746_v0 = vpop.f32.mrf.mxu2 }
 0x547   : > { %v5467_v33 = vadd.f32 %v5407_v51, %v4732_v10  ;;  %v5332_v35 = vpop.f32.mrf.mxu0  ;;  %v9322_v51 = vld [vmem:[#allocation22_spill] sm:$0xff] }
 0x548   : > { %v4742_v21 = vadd.f32 %v4741_v49, %v9322_v51 }
 0x549   : > { %v5503_v13 = vadd.f32 %v9070_v62, %v5467_v33  ;;  %v5246_v36 = vpop.f32.mrf.mxu3 }
 0x54b   : > { %v5535_v19 = vmax.f32 %v5503_v13, 0.0 }
 0x54c   : > { %v5409_v61 = vpop.f32.mrf.mxu1 }
 0x54d   : > { %v6691_v29 = vpack.c.bf16 %v5535_v19, %v5534_v6  ;;  %v5410_v14 = vadd.f32 %v5409_v61, %v5321_v25  ;;  %v4749_v26 = vpop.f32.mrf.mxu2  ;;  %v4745_v61 = vadd.f32 %v4744_v4, %v9001_v22  ;;  %v5333_v25 = vadd.f32 %v5332_v35, %v5243_v47 }
 0x54e   : > { %v4750_v35 = vadd.f32 %v4749_v26, %v9016_v42 }
 0x54f   : > { %6743 = vst [vmem:[%s9080_s25 + $0x30] sm:$0xff] %v6691_v29   ;;  %5448 = vmatmul.bf16.gmra.mxu1 %v4993_v24  ;;  %v5468_v45 = vadd.f32 %v5410_v14, %v4735_v5  ;;  %v5335_v58 = vpop.f32.mrf.mxu0  ;;  %v4747_v14 = vadd.f32 %v4746_v0, %v9010_v39 }
 0x551   : > { %v5504_v37 = vadd.f32 %v9070_v62, %v5468_v45  ;;  %v5248_v6 = vpop.f32.mrf.mxu3 }
 0x553   : > { %v5536_v18 = vmax.f32 %v5504_v37, 0.0 }
 0x554   : > { %v5411_v57 = vpop.f32.mrf.mxu1 }
 0x555   : > { %v5412_v48 = vadd.f32 %v5411_v57, %v5323_v30  ;;  %v4751_v41 = vpop.f32.mrf.mxu2 }
 0x557   : > { %v5469_v2 = vadd.f32 %v5412_v48, %v4737_v60  ;;  %v5337_v3 = vpop.f32.mrf.mxu0 }
 0x558   : > { %v5338_v0 = vadd.f32 %v5337_v3, %v5248_v6 }
 0x559   : > { %v5505_v27 = vadd.f32 %v9070_v62, %v5469_v2  ;;  %v5251_v30 = vpop.f32.mrf.mxu3  ;;  %v5336_v2 = vadd.f32 %v5335_v58, %v5246_v36 }
 0x55b   : > { %v5537_v1 = vmax.f32 %v5505_v27, 0.0 }
 0x55c   : > { %v5414_v7 = vpop.f32.mrf.mxu1 }
 0x55d   : > { %v6696_v28 = vpack.c.bf16 %v5537_v1, %v5536_v18  ;;  %v5415_v54 = vadd.f32 %v5414_v7, %v5326_v46  ;;  %v4754_v53 = vpop.f32.mrf.mxu2  ;;  %v4752_v7 = vadd.f32 %v4751_v41, %v9020_v52 }
 0x55f   : > { %6744 = vst [vmem:[%s9080_s25 + $0x38] sm:$0xff] %v6696_v28   ;;  %v5470_v56 = vadd.f32 %v5415_v54, %v4740_v59  ;;  %v5340_v45 = vpop.f32.mrf.mxu0 }
 0x560   : > { %v5341_v26 = vadd.f32 %v5340_v45, %v5251_v30 }
 0x561   : > { %v5506_v32 = vadd.f32 %v9070_v62, %v5470_v56  ;;  %v5253_v47 = vpop.f32.mrf.mxu3 }
 0x563   : > { %v5538_v31 = vmax.f32 %v5506_v32, 0.0 }
 0x564   : > { %v5416_v10 = vpop.f32.mrf.mxu1 }
 0x565   : > { %v5417_v33 = vadd.f32 %v5416_v10, %v5328_v9  ;;  %v4756_v27 = vpop.f32.mrf.mxu2 }
 0x567   : > { %v5471_v50 = vadd.f32 %v5417_v33, %v4742_v21  ;;  %v5342_v39 = vpop.f32.mrf.mxu0  ;;  %v4755_v33 = vadd.f32 %v4754_v53, %v9026_v11 }
 0x568   : > { %v5343_v32 = vadd.f32 %v5342_v39, %v5253_v47 }
 0x569   : > { %v5507_v20 = vadd.f32 %v9070_v62, %v5471_v50  ;;  %v5256_v36 = vpop.f32.mrf.mxu3 }
 0x56b   : > { %v5539_v13 = vmax.f32 %v5507_v20, 0.0 }
 0x56c   : > { %v5419_v19 = vpop.f32.mrf.mxu1 }
 0x56d   : > { %v6701_v63 = vpack.c.bf16 %v5539_v13, %v5538_v31  ;;  %v5420_v24 = vadd.f32 %v5419_v19, %v5331_v12  ;;  %v4759_v10 = vpop.f32.mrf.mxu2  ;;  %v4757_v31 = vadd.f32 %v4756_v27, %v9030_v16 }
 0x56e   : > { %v4760_v16 = vadd.f32 %v4759_v10, %v9035_v15 }
 0x56f   : > { %6745 = vst [vmem:[%s9080_s25 + $0x40] sm:$0xff] %v6701_v63   ;;  %v5472_v49 = vadd.f32 %v5420_v24, %v4745_v61  ;;  %v5345_v9 = vpop.f32.mrf.mxu0 }
 0x571   : > { %v5508_v57 = vadd.f32 %v9070_v62, %v5472_v49  ;;  %v5258_v50 = vpop.f32.mrf.mxu3 }
 0x573   : > { %v5540_v60 = vmax.f32 %v5508_v57, 0.0 }
 0x574   : > { %v5421_v29 = vpop.f32.mrf.mxu1 }
 0x575   : > { %v5422_v5 = vadd.f32 %v5421_v29, %v5333_v25  ;;  %v4761_v19 = vpop.f32.mrf.mxu2  ;;  %v5346_v25 = vadd.f32 %v5345_v9, %v5256_v36 }
 0x577   : > { %v5473_v40 = vadd.f32 %v5422_v5, %v4747_v14  ;;  %v5347_v13 = vpop.f32.mrf.mxu0 }
 0x578   : > { %v5348_v30 = vadd.f32 %v5347_v13, %v5258_v50 }
 0x579   : > { %v5509_v55 = vadd.f32 %v9070_v62, %v5473_v40  ;;  %v5261_v49 = vpop.f32.mrf.mxu3  ;;  %v4762_v40 = vadd.f32 %v4761_v19, %v9039_v38 }
 0x57b   : > { %v5541_v48 = vmax.f32 %v5509_v55, 0.0 }
 0x57c   : > { %v5424_v37 = vpop.f32.mrf.mxu1 }
 0x57d   : > { %v6706_v22 = vpack.c.bf16 %v5541_v48, %v5540_v60  ;;  %v5425_v4 = vadd.f32 %v5424_v37, %v5336_v2  ;;  %v4764_v5 = vpop.f32.mrf.mxu2 }
 0x57f   : > { %6746 = vst [vmem:[%s9080_s25 + $0x48] sm:$0xff] %v6706_v22   ;;  %v5474_v18 = vadd.f32 %v5425_v4, %v4750_v35  ;;  %v5350_v29 = vpop.f32.mrf.mxu0 }
 0x580   : > { %v5351_v39 = vadd.f32 %v5350_v29, %v5261_v49 }
 0x581   : > { %v5510_v28 = vadd.f32 %v9070_v62, %v5474_v18  ;;  %v5263_v48 = vpop.f32.mrf.mxu3 }
 0x583   : > { %v5542_v58 = vmax.f32 %v5510_v28, 0.0 }
 0x584   : > { %v5426_v1 = vpop.f32.mrf.mxu1 }
 0x585   : > { %v5427_v46 = vadd.f32 %v5426_v1, %v5338_v0  ;;  %v4766_v22 = vpop.f32.mrf.mxu2  ;;  %v4765_v0 = vadd.f32 %v4764_v5, %v9044_v44 }
 0x587   : > { %v5475_v54 = vadd.f32 %v5427_v46, %v4752_v7  ;;  %v5352_v37 = vpop.f32.mrf.mxu0 }
 0x588   : > { %v5353_v38 = vadd.f32 %v5352_v37, %v5263_v48 }
 0x589   : > { %v5511_v59 = vadd.f32 %v9070_v62, %v5475_v54  ;;  %v5266_v18 = vpop.f32.mrf.mxu3  ;;  %v4767_v54 = vadd.f32 %v4766_v22, %v9048_v17 }
 0x58b   : > { %v5543_v56 = vmax.f32 %v5511_v59, 0.0 }
 0x58c   : > { %v5429_v42 = vpop.f32.mrf.mxu1 }
 0x58d   : > { %v6711_v51 = vpack.c.bf16 %v5543_v56, %v5542_v58  ;;  %v5430_v21 = vadd.f32 %v5429_v42, %v5341_v26  ;;  %v4769_v46 = vpop.f32.mrf.mxu2 }
 0x58f   : > { %6747 = vst [vmem:[%s9080_s25 + $0x50] sm:$0xff] %v6711_v51   ;;  %v5476_v52 = vadd.f32 %v5430_v21, %v4755_v33  ;;  %v5355_v1 = vpop.f32.mrf.mxu0 }
 0x590   : > { %v5356_v44 = vadd.f32 %v5355_v1, %v5266_v18 }
 0x591   : > { %v5512_v12 = vadd.f32 %v9070_v62, %v5476_v52  ;;  %v5268_v42 = vpop.f32.mrf.mxu3  ;;  %v4770_v52 = vadd.f32 %v4769_v46, %v9051_v8 }
 0x593   : > { %v5544_v41 = vmax.f32 %v5512_v12, 0.0 }
 0x594   : > { %v5431_v20 = vpop.f32.mrf.mxu1 }
 0x595   : > { %v5432_v6 = vadd.f32 %v5431_v20, %v5343_v32  ;;  %v4771_v33 = vpop.f32.mrf.mxu2 }
 0x597   : > { %v5477_v3 = vadd.f32 %v5432_v6, %v4757_v31  ;;  %v5357_v21 = vpop.f32.mrf.mxu0  ;;  %v4772_v31 = vadd.f32 %v4771_v33, %v9055_v34 }
 0x598   : > { %v5358_v50 = vadd.f32 %v5357_v21, %v5268_v42 }
 0x599   : > { %v5513_v63 = vadd.f32 %v9070_v62, %v5477_v3  ;;  %v5271_v6 = vpop.f32.mrf.mxu3 }
 0x59b   : > { %v5545_v24 = vmax.f32 %v5513_v63, 0.0 }
 0x59c   : > { %v5434_v61 = vpop.f32.mrf.mxu1 }
 0x59d   : > { %v6716_v11 = vpack.c.bf16 %v5545_v24, %v5544_v41  ;;  %v5435_v14 = vadd.f32 %v5434_v61, %v5346_v25  ;;  %v4774_v63 = vpop.f32.mrf.mxu2 }
 0x59e   : > { %v4775_v34 = vadd.f32 %v4774_v63, %v9058_v43 }
 0x59f   : > { %6748 = vst [vmem:[%s9080_s25 + $0x58] sm:$0xff] %v6716_v11   ;;  %v5478_v45 = vadd.f32 %v5435_v14, %v4760_v16  ;;  %v5360_v3 = vpop.f32.mrf.mxu0 }
 0x5a0   : > { %v5361_v8 = vadd.f32 %v5360_v3, %v5271_v6 }
 0x5a1   : > { %v5514_v55 = vadd.f32 %v9070_v62, %v5478_v45  ;;  %v5273_v29 = vpop.f32.mrf.mxu3 }
 0x5a3   : > { %v5546_v4 = vmax.f32 %v5514_v55, 0.0 }
 0x5a4   : > { %v5436_v57 = vpop.f32.mrf.mxu1 }
 0x5a5   : > { %v5437_v53 = vadd.f32 %v5436_v57, %v5348_v30  ;;  %v4776_v5 = vpop.f32.mrf.mxu2 }
 0x5a6   : > { %v4777_v57 = vadd.f32 %v4776_v5, %v9062_v23 }
 0x5a7   : > { %v5479_v60 = vadd.f32 %v5437_v53, %v4762_v40  ;;  %v5362_v14 = vpop.f32.mrf.mxu0 }
 0x5a8   : > { %v5363_v16 = vadd.f32 %v5362_v14, %v5273_v29 }
 0x5a9   : > { %v5515_v2 = vadd.f32 %v9070_v62, %v5479_v60 }
 0x5ab   : > { %v5547_v47 = vmax.f32 %v5515_v2, 0.0 }
 0x5ac   : > { %v5439_v35 = vpop.f32.mrf.mxu1 }
 0x5ad   : > { %v6721_v15 = vpack.c.bf16 %v5547_v47, %v5546_v4  ;;  %v5440_v27 = vadd.f32 %v5439_v35, %v5351_v39 }
 0x5af   : > { %6749 = vst [vmem:[%s9080_s25 + $0x60] sm:$0xff] %v6721_v15   ;;  %v5480_v7 = vadd.f32 %v5440_v27, %v4765_v0 }
 0x5b1   : > { %v5516_v36 = vadd.f32 %v9070_v62, %v5480_v7 }
 0x5b3   : > { %v5548_v56 = vmax.f32 %v5516_v36, 0.0 }
 0x5b4   : > { %v5441_v28 = vpop.f32.mrf.mxu1 }
 0x5b5   : > { %v5442_v59 = vadd.f32 %v5441_v28, %v5353_v38 }
 0x5b7   : > { %v5481_v9 = vadd.f32 %v5442_v59, %v4767_v54 }
 0x5b9   : > { %v5517_v58 = vadd.f32 %v9070_v62, %v5481_v9 }
 0x5bb   : > { %v5549_v10 = vmax.f32 %v5517_v58, 0.0 }
 0x5bc   : > { %v5444_v26 = vpop.f32.mrf.mxu1 }
 0x5bd   : > { %v6726_v51 = vpack.c.bf16 %v5549_v10, %v5548_v56  ;;  %v5445_v32 = vadd.f32 %v5444_v26, %v5356_v44 }
 0x5bf   : > { %6750 = vst [vmem:[%s9080_s25 + $0x68] sm:$0xff] %v6726_v51   ;;  %v5482_v17 = vadd.f32 %v5445_v32, %v4770_v52 }
 0x5c1   : > { %v5518_v19 = vadd.f32 %v9070_v62, %v5482_v17 }
 0x5c3   : > { %v5550_v24 = vmax.f32 %v5518_v19, 0.0 }
 0x5c4   : > { %v5446_v20 = vpop.f32.mrf.mxu1 }
 0x5c5   : > { %v5447_v13 = vadd.f32 %v5446_v20, %v5358_v50 }
 0x5c7   : > { %v5483_v12 = vadd.f32 %v5447_v13, %v4772_v31 }
 0x5c9   : > { %v5519_v41 = vadd.f32 %v9070_v62, %v5483_v12 }
 0x5cb   : > { %v5551_v61 = vmax.f32 %v5519_v41, 0.0 }
 0x5cc   : > { %v5449_v25 = vpop.f32.mrf.mxu1 }
 0x5cd   : > { %v6731_v11 = vpack.c.bf16 %v5551_v61, %v5550_v24  ;;  %v5450_v49 = vadd.f32 %v5449_v25, %v5361_v8 }
 0x5cf   : > { %6751 = vst [vmem:[%s9080_s25 + $0x70] sm:$0xff] %v6731_v11   ;;  %v5484_v30 = vadd.f32 %v5450_v49, %v4775_v34 }
 0x5d1   : > { %v5520_v53 = vadd.f32 %v9070_v62, %v5484_v30 }
 0x5d3   : > { %v5552_v60 = vmax.f32 %v5520_v53, 0.0 }
 0x5d4   : > { %v5451_v45 = vpop.f32.mrf.mxu1 }
 0x5d5   : > { %v5452_v40 = vadd.f32 %v5451_v45, %v5363_v16 }
 0x5d7   : > { %v5485_v55 = vadd.f32 %v5452_v40, %v4777_v57 }
 0x5d9   : > { %v5521_v43 = vadd.f32 %v9070_v62, %v5485_v55 }
 0x5db   : > { %v5553_v48 = vmax.f32 %v5521_v43, 0.0 }
 0x5dd   : > { %v6736_v37 = vpack.c.bf16 %v5553_v48, %v5552_v60 }
 0x5df   : > { %6752 = vst [vmem:[%s9080_s25 + $0x78] sm:$0xff] %v6736_v37  }
 0x5e0   : > { %6952 = shalt.err (!%p6949_p8)
}
 0x5e1   : > { %s6997_s17 = smov 64   ;;  %s6998_s23 = smov 4  }
 0x5e2   : > { %6774 = dma.vmem_to_hbm [thread:$0]  (%p7067_p5), %s5632_s9, 2048, %s5634_s10, %s5619_s22, %s6997_s17, %s6997_s17, %s6998_s23  }
 0x5e3 PF: > { %p6786_p9 = scmp.ge.s32.totalorder %s6991_s21, 2  ;;  %s5648_s25 = sand.u32 1, %s6979_s18  }
 0x5e4   : > { %s5649_s26 = scalar_lea.sflag [#allocation5], %s5648_s25 }
 0x5e5   : > { %p6781_p10 = pnand %p6786_p9, %p7071_p6 }
 0x5e7   : > { %p6782_p11 = pneg %p6781_p10 }
 0x5e9   : > { %6974 = dma.done.wait (%p6782_p11), %s5649_s26, 2048  }
 0x5ea   : > { %6976 = vsyncadd (%p6782_p11), %s5649_s26, 4294965248  ;;  %p16_p12 = scmp.ge.s32.totalorder %s7054_s24, 4   ;;  %s9323_s18 = smov %s6983_s19 }
 0x5eb   : > { %s9324_s19 = smov %s6987_s20  ;;  %s9325_s20 = smov %s7065_s27 }
 0x5ec   : > { %s9326_s21 = smov %s7054_s24  ;;  %18 = sbr.rel (!%p16_p12) target bundleno = 4 (0x4), region = 82 }
 0x5f1   :  { %5655 = vsyncpa [#allocation4], 1 }
 0x5f2   :  { %5657 = vsyncpa [#allocation4 + $0x1], 1 }
 0x5f3   :  { %5658 = vsyncpa [#allocation5], 1 }
 0x5f4   :  { %5660 = vsyncpa [#allocation5 + $0x1], 1 }

</bundles_post_ra>
